<compile_context>
chip_gen: v7x
topology: tpu7x:2x2x1
jax: 0.10.0
libtpu: 0.0.40
codegen_flags: <defaults>
</compile_context>

<pallas_src>
import functools

import jax
import jax.numpy as jnp
from jax.experimental import pallas as pl
from jax.experimental.pallas import tpu as pltpu

# ---- scaled-down BERT config (SciBERT is bert-base; shrunk for this synthetic run)
VOCAB = 100
MAX_POS = 64
TYPE_VOCAB = 2
H = 32          # hidden size
NH = 4          # attention heads
HD = H // NH    # head dim
I = 64          # intermediate (FFN) size
L = 2           # transformer layers
LN_EPS = 1e-12  # BERT layer-norm eps


# ----------------------------- in-kernel helpers -----------------------------
def _layer_norm(x, g, b):
    mu = jnp.mean(x, axis=-1, keepdims=True)
    var = jnp.mean((x - mu) ** 2, axis=-1, keepdims=True)
    return (x - mu) * jax.lax.rsqrt(var + LN_EPS) * g + b


def _gelu(x):
    # TODO(synk): HF BERT uses exact erf-GELU; tanh approximation used here.
    c = 0.7978845608028654  # sqrt(2/pi)
    return 0.5 * x * (1.0 + jnp.tanh(c * (x + 0.044715 * x * x * x)))


# ------------------------------ fused Pallas kernel ---------------------------
def fused_encoder_kernel(x_ref, mask_ref, emb_ln_ref,
                         wqkv_ref, bqkv_ref, woh_ref, vecs_ref,
                         wi_ref, bi_ref, wo2_ref,
                         cls_ref, *, batch, seq):
    """Whole encoder forward on one (batch*seq, H) token block.

    x_ref    : (T, H)            pre-LayerNorm embedding sums (T = batch*seq)
    mask_ref : (B, 1, S)         additive attention mask over keys
    emb_ln_ref: (2, H)           [gamma, beta] of the embedding LayerNorm
    wqkv_ref : (L*3, NH, H, HD)  head-split Q/K/V weights
    bqkv_ref : (L*3, NH, 1, HD)  head-split Q/K/V biases
    woh_ref  : (L, NH, HD, H)    head-split attention output projection
    vecs_ref : (L, 6, H)         [bo, ln1_g, ln1_b, bo2, ln2_g, ln2_b]
    wi_ref   : (L, H, I)         FFN in-projection
    bi_ref   : (L, 1, I)         FFN in-projection bias
    wo2_ref  : (L, I, H)         FFN out-projection
    cls_ref  : (B, H)            output: last_hidden_state[:, 0]
    """
    scale = 1.0 / (HD ** 0.5)

    eln = emb_ln_ref[...]                                   # (2, H)
    h = _layer_norm(x_ref[...], eln[0:1, :], eln[1:2, :])   # (T, H)

    for l in range(L):
        vecs = vecs_ref[l]                                  # (6, H)
        bo, ln1g, ln1b = vecs[0:1], vecs[1:2], vecs[2:3]
        bo2, ln2g, ln2b = vecs[3:4], vecs[4:5], vecs[5:6]
        woh = woh_ref[l]                                    # (NH, HD, H)

        # ---- multi-head self-attention, heads batched on a leading axis ----
        attn_rows = []
        for b in range(batch):
            xb = h[b * seq:(b + 1) * seq, :]                # (S, H) static slice
            xb3 = jnp.broadcast_to(xb[None], (NH, seq, H))  # (NH, S, H)

            q = jnp.einsum('nsh,nhd->nsd', xb3, wqkv_ref[l * 3 + 0],
                           preferred_element_type=jnp.float32) + bqkv_ref[l * 3 + 0]
            k = jnp.einsum('nsh,nhd->nsd', xb3, wqkv_ref[l * 3 + 1],
                           preferred_element_type=jnp.float32) + bqkv_ref[l * 3 + 1]
            v = jnp.einsum('nsh,nhd->nsd', xb3, wqkv_ref[l * 3 + 2],
                           preferred_element_type=jnp.float32) + bqkv_ref[l * 3 + 2]

            s = jnp.einsum('nqd,nkd->nqk', q, k,
                           preferred_element_type=jnp.float32) * scale
            s = s + mask_ref[b]                             # (1, S) over keys
            s = s - jnp.max(s, axis=-1, keepdims=True)
            p = jnp.exp(s)
            p = p * pl.reciprocal(jnp.sum(p, axis=-1, keepdims=True), approx=True)

            ctx = jnp.einsum('nqk,nkd->nqd', p, v,
                             preferred_element_type=jnp.float32)       # (NH, S, HD)
            ab = jnp.einsum('nqd,ndh->nqh', ctx, woh,
                            preferred_element_type=jnp.float32)        # (NH, S, H)
            attn_rows.append(jnp.sum(ab, axis=0))                      # (S, H)

        attn = jnp.concatenate(attn_rows, axis=0)                      # (T, H)
        h1 = _layer_norm(h + attn + bo, ln1g, ln1b)

        # ---- feed-forward network ----
        ffn = _gelu(jnp.dot(h1, wi_ref[l], preferred_element_type=jnp.float32)
                    + bi_ref[l])
        ffn = jnp.dot(ffn, wo2_ref[l], preferred_element_type=jnp.float32) + bo2
        h = _layer_norm(h1 + ffn, ln2g, ln2b)

    # only the [CLS] rows leave the kernel
    cls_ref[...] = jnp.concatenate(
        [h[b * seq:b * seq + 1, :] for b in range(batch)], axis=0)


# ------------------------------ Python wrappers -------------------------------
def fused_encoder(x_flat, mask_add, pk):
    B = mask_add.shape[0]
    T = x_flat.shape[0]
    S = T // B
    vmem = lambda: pl.BlockSpec(memory_space=pltpu.MemorySpace.VMEM)
    return pl.pallas_call(
        functools.partial(fused_encoder_kernel, batch=B, seq=S),
        out_shape=jax.ShapeDtypeStruct((B, H), jnp.float32),
        in_specs=[vmem() for _ in range(10)],
        out_specs=vmem(),
    )(x_flat, mask_add, pk["emb_ln"], pk["wqkv"], pk["bqkv"], pk["wo_h"],
      pk["vecs"], pk["wi"], pk["bi"], pk["wo2"])


def init_params(key):
    """Deterministic synthetic BERT weights (normal(0, 0.02) init, as in BERT)."""
    def nrm(k, shape):
        return 0.02 * jax.random.normal(k, shape, dtype=jnp.float32)

    keys = jax.random.split(key, 3 + L)
    params = {
        "word_emb": nrm(keys[0], (VOCAB, H)),
        "pos_emb": nrm(keys[1], (MAX_POS, H)),
        "type_emb": nrm(keys[2], (TYPE_VOCAB, H)),
        "emb_ln_g": jnp.ones((H,), jnp.float32),
        "emb_ln_b": jnp.zeros((H,), jnp.float32),
        "layers": [],
    }
    for li in range(L):
        lk = jax.random.split(keys[3 + li], 6)
        params["layers"].append({
            "wq": nrm(lk[0], (H, H)), "bq": jnp.zeros((H,), jnp.float32),
            "wk": nrm(lk[1], (H, H)), "bk": jnp.zeros((H,), jnp.float32),
            "wv": nrm(lk[2], (H, H)), "bv": jnp.zeros((H,), jnp.float32),
            "wo": nrm(lk[3], (H, H)), "bo": jnp.zeros((H,), jnp.float32),
            "ln1_g": jnp.ones((H,), jnp.float32), "ln1_b": jnp.zeros((H,), jnp.float32),
            "wi": nrm(lk[4], (H, I)), "bi": jnp.zeros((I,), jnp.float32),
            "wo2": nrm(lk[5], (I, H)), "bo2": jnp.zeros((H,), jnp.float32),
            "ln2_g": jnp.ones((H,), jnp.float32), "ln2_b": jnp.zeros((H,), jnp.float32),
        })
    return params


def pack_params(p):
    """Pack per-layer weights into a few stacked arrays for the fused kernel."""
    layers = p["layers"]

    def split_w(w):   # (H, H) -> (NH, H, HD): column head-split of x @ W
        return w.reshape(H, NH, HD).transpose(1, 0, 2)

    def split_b(b):   # (H,) -> (NH, 1, HD)
        return b.reshape(NH, 1, HD)

    wqkv = jnp.stack([split_w(lp[n]) for lp in layers for n in ("wq", "wk", "wv")])
    bqkv = jnp.stack([split_b(lp[n]) for lp in layers for n in ("bq", "bk", "bv")])
    wo_h = jnp.stack([lp["wo"].reshape(NH, HD, H) for lp in layers])     # (L,NH,HD,H)
    vecs = jnp.stack([
        jnp.stack([lp["bo"], lp["ln1_g"], lp["ln1_b"],
                   lp["bo2"], lp["ln2_g"], lp["ln2_b"]])
        for lp in layers])                                               # (L, 6, H)
    wi = jnp.stack([lp["wi"] for lp in layers])                          # (L, H, I)
    bi = jnp.stack([lp["bi"].reshape(1, I) for lp in layers])            # (L, 1, I)
    wo2 = jnp.stack([lp["wo2"] for lp in layers])                        # (L, I, H)
    emb_ln = jnp.stack([p["emb_ln_g"], p["emb_ln_b"]])                   # (2, H)

    return {
        "word_emb": p["word_emb"], "pos_emb": p["pos_emb"], "type_emb": p["type_emb"],
        "emb_ln": emb_ln, "wqkv": wqkv, "bqkv": bqkv, "wo_h": wo_h,
        "vecs": vecs, "wi": wi, "bi": bi, "wo2": wo2,
    }


@jax.jit
def encoder_only_forward(packed, input_ids, attention_mask):
    B, S = input_ids.shape
    # --- embeddings (gather glue in plain JAX) ---
    word = packed["word_emb"][input_ids]                        # (B, S, H)
    pos = packed["pos_emb"][jnp.arange(S)]                      # (S, H)
    typ = packed["type_emb"][0]                                 # token_type_ids == 0
    emb = word + pos[None, :, :] + typ[None, None, :]           # (B, S, H)
    x_flat = emb.reshape(B * S, H)

    # additive attention mask over keys, shape (B, 1, S)
    mask_add = ((1.0 - attention_mask.astype(jnp.float32)) * -1e9).reshape(B, 1, S)

    return fused_encoder(x_flat, mask_add, packed)              # == last_hidden_state[:, 0]


if __name__ == "__main__":
    key = jax.random.PRNGKey(0)
    pkey, ikey = jax.random.split(key)
    params = init_params(pkey)
    packed = pack_params(params)

    B, S = 2, 8
    input_ids = jax.random.randint(ikey, (B, S), 0, VOCAB, dtype=jnp.int32)
    attention_mask = jnp.array(
        [[1, 1, 1, 1, 1, 1, 1, 1],
         [1, 1, 1, 1, 1, 1, 0, 0]], dtype=jnp.int32)

    cls = encoder_only_forward(packed, input_ids, attention_mask)
    cls = jax.block_until_ready(cls)
    assert cls.shape == (B, H) and cls.dtype == jnp.float32
    assert bool(jnp.all(jnp.isfinite(cls)))
    print("KERNEL_OK")
</pallas_src>

<mosaic_0001>
module attributes {stable_mosaic.version = 11 : i64} {
  func.func @fused_encoder_kernel(%arg0: memref<16x32xf32, #tpu.memory_space<vmem>>, %arg1: memref<2x1x8xf32, #tpu.memory_space<vmem>>, %arg2: memref<2x32xf32, #tpu.memory_space<vmem>>, %arg3: memref<6x4x32x8xf32, #tpu.memory_space<vmem>>, %arg4: memref<6x4x1x8xf32, #tpu.memory_space<vmem>>, %arg5: memref<2x4x8x32xf32, #tpu.memory_space<vmem>>, %arg6: memref<2x6x32xf32, #tpu.memory_space<vmem>>, %arg7: memref<2x32x64xf32, #tpu.memory_space<vmem>>, %arg8: memref<2x1x64xf32, #tpu.memory_space<vmem>>, %arg9: memref<2x64x32xf32, #tpu.memory_space<vmem>>, %arg10: memref<2x32xf32, #tpu.memory_space<vmem>>) attributes {dimension_semantics = [], scalar_prefetch = 0 : i64, scratch_operands = 0 : i64, tpu.core_type = #tpu.core_type<tc>} {
    %c0 = arith.constant 0 : index
    %c0_0 = arith.constant 0 : index
    %0 = vector.load %arg2[%c0, %c0_0] : memref<2x32xf32, #tpu.memory_space<vmem>>, vector<2x32xf32>
    %c0_1 = arith.constant 0 : index
    %c0_2 = arith.constant 0 : index
    %1 = vector.load %arg0[%c0_1, %c0_2] : memref<16x32xf32, #tpu.memory_space<vmem>>, vector<16x32xf32>
    %2 = vector.extract_strided_slice %0 {offsets = [0, 0], sizes = [1, 32], strides = [1, 1]} : vector<2x32xf32> to vector<1x32xf32>
    %3 = vector.extract_strided_slice %0 {offsets = [1, 0], sizes = [1, 32], strides = [1, 1]} : vector<2x32xf32> to vector<1x32xf32>
    %cst = arith.constant dense<0.000000e+00> : vector<16xf32>
    %4 = vector.multi_reduction <add>, %1, %cst [1] : vector<16x32xf32> to vector<16xf32>
    %5 = vector.shape_cast %4 : vector<16xf32> to vector<16x1xf32>
    %cst_3 = arith.constant 3.200000e+01 : f32
    %6 = vector.broadcast %cst_3 : f32 to vector<16x1xf32>
    %7 = arith.divf %5, %6 : vector<16x1xf32>
    %8 = vector.broadcast %7 : vector<16x1xf32> to vector<16x32xf32>
    %9 = arith.subf %1, %8 : vector<16x32xf32>
    %10 = arith.mulf %9, %9 : vector<16x32xf32>
    %cst_4 = arith.constant dense<0.000000e+00> : vector<16xf32>
    %11 = vector.multi_reduction <add>, %10, %cst_4 [1] : vector<16x32xf32> to vector<16xf32>
    %12 = vector.shape_cast %11 : vector<16xf32> to vector<16x1xf32>
    %cst_5 = arith.constant 3.200000e+01 : f32
    %13 = vector.broadcast %cst_5 : f32 to vector<16x1xf32>
    %14 = arith.divf %12, %13 : vector<16x1xf32>
    %15 = vector.broadcast %7 : vector<16x1xf32> to vector<16x32xf32>
    %16 = arith.subf %1, %15 : vector<16x32xf32>
    %cst_6 = arith.constant 9.99999996E-13 : f32
    %17 = vector.broadcast %cst_6 : f32 to vector<16x1xf32>
    %18 = arith.addf %14, %17 : vector<16x1xf32>
    %19 = math.rsqrt %18 : vector<16x1xf32>
    %20 = vector.broadcast %19 : vector<16x1xf32> to vector<16x32xf32>
    %21 = arith.mulf %16, %20 : vector<16x32xf32>
    %22 = vector.broadcast %2 : vector<1x32xf32> to vector<16x32xf32>
    %23 = arith.mulf %21, %22 : vector<16x32xf32>
    %24 = vector.broadcast %3 : vector<1x32xf32> to vector<16x32xf32>
    %25 = arith.addf %23, %24 : vector<16x32xf32>
    %c0_7 = arith.constant 0 : index
    %c0_8 = arith.constant 0 : index
    %c0_9 = arith.constant 0 : index
    %26 = vector.load %arg6[%c0_7, %c0_8, %c0_9] : memref<2x6x32xf32, #tpu.memory_space<vmem>>, vector<1x6x32xf32>
    %27 = vector.shape_cast %26 : vector<1x6x32xf32> to vector<6x32xf32>
    %28 = vector.extract_strided_slice %27 {offsets = [0, 0], sizes = [1, 32], strides = [1, 1]} : vector<6x32xf32> to vector<1x32xf32>
    %29 = vector.extract_strided_slice %27 {offsets = [1, 0], sizes = [1, 32], strides = [1, 1]} : vector<6x32xf32> to vector<1x32xf32>
    %30 = vector.extract_strided_slice %27 {offsets = [2, 0], sizes = [1, 32], strides = [1, 1]} : vector<6x32xf32> to vector<1x32xf32>
    %31 = vector.extract_strided_slice %27 {offsets = [3, 0], sizes = [1, 32], strides = [1, 1]} : vector<6x32xf32> to vector<1x32xf32>
    %32 = vector.extract_strided_slice %27 {offsets = [4, 0], sizes = [1, 32], strides = [1, 1]} : vector<6x32xf32> to vector<1x32xf32>
    %33 = vector.extract_strided_slice %27 {offsets = [5, 0], sizes = [1, 32], strides = [1, 1]} : vector<6x32xf32> to vector<1x32xf32>
    %c0_10 = arith.constant 0 : index
    %c0_11 = arith.constant 0 : index
    %c0_12 = arith.constant 0 : index
    %c0_13 = arith.constant 0 : index
    %34 = vector.load %arg5[%c0_10, %c0_11, %c0_12, %c0_13] : memref<2x4x8x32xf32, #tpu.memory_space<vmem>>, vector<1x4x8x32xf32>
    %35 = vector.shape_cast %34 : vector<1x4x8x32xf32> to vector<4x8x32xf32>
    %36 = vector.extract_strided_slice %25 {offsets = [0, 0], sizes = [8, 32], strides = [1, 1]} : vector<16x32xf32> to vector<8x32xf32>
    %37 = vector.shape_cast %36 : vector<8x32xf32> to vector<1x8x32xf32>
    %38 = vector.shape_cast %37 : vector<1x8x32xf32> to vector<1x8x32xf32>
    %39 = vector.broadcast %38 : vector<1x8x32xf32> to vector<4x8x32xf32>
    %c0_14 = arith.constant 0 : index
    %c0_15 = arith.constant 0 : index
    %c0_16 = arith.constant 0 : index
    %c0_17 = arith.constant 0 : index
    %40 = vector.load %arg3[%c0_14, %c0_15, %c0_16, %c0_17] : memref<6x4x32x8xf32, #tpu.memory_space<vmem>>, vector<1x4x32x8xf32>
    %41 = vector.shape_cast %40 : vector<1x4x32x8xf32> to vector<4x32x8xf32>
    "tpu.trace_start"() <{level = 10 : i32, message = "nsh,nhd->nsd"}> : () -> ()
    %cst_18 = arith.constant dense<0.000000e+00> : vector<4x8x8xf32>
    %42 = tpu.matmul %39, %41, %cst_18 {dimension_numbers = #tpu.dot_dimension_numbers<[2], [1], [1], [2], [0, 0, 0, 1, 1, 2], [0], [0]>} : vector<4x8x32xf32>, vector<4x32x8xf32>, vector<4x8x8xf32> -> vector<4x8x8xf32>
    "tpu.trace_stop"() : () -> ()
    %c0_19 = arith.constant 0 : index
    %c0_20 = arith.constant 0 : index
    %c0_21 = arith.constant 0 : index
    %c0_22 = arith.constant 0 : index
    %43 = vector.load %arg4[%c0_19, %c0_20, %c0_21, %c0_22] : memref<6x4x1x8xf32, #tpu.memory_space<vmem>>, vector<1x4x1x8xf32>
    %44 = vector.shape_cast %43 : vector<1x4x1x8xf32> to vector<4x1x8xf32>
    %45 = vector.broadcast %44 : vector<4x1x8xf32> to vector<4x8x8xf32>
    %46 = arith.addf %42, %45 : vector<4x8x8xf32>
    %c1 = arith.constant 1 : index
    %c0_23 = arith.constant 0 : index
    %c0_24 = arith.constant 0 : index
    %c0_25 = arith.constant 0 : index
    %47 = vector.load %arg3[%c1, %c0_23, %c0_24, %c0_25] : memref<6x4x32x8xf32, #tpu.memory_space<vmem>>, vector<1x4x32x8xf32>
    %48 = vector.shape_cast %47 : vector<1x4x32x8xf32> to vector<4x32x8xf32>
    "tpu.trace_start"() <{level = 10 : i32, message = "nsh,nhd->nsd"}> : () -> ()
    %cst_26 = arith.constant dense<0.000000e+00> : vector<4x8x8xf32>
    %49 = tpu.matmul %39, %48, %cst_26 {dimension_numbers = #tpu.dot_dimension_numbers<[2], [1], [1], [2], [0, 0, 0, 1, 1, 2], [0], [0]>} : vector<4x8x32xf32>, vector<4x32x8xf32>, vector<4x8x8xf32> -> vector<4x8x8xf32>
    "tpu.trace_stop"() : () -> ()
    %c1_27 = arith.constant 1 : index
    %c0_28 = arith.constant 0 : index
    %c0_29 = arith.constant 0 : index
    %c0_30 = arith.constant 0 : index
    %50 = vector.load %arg4[%c1_27, %c0_28, %c0_29, %c0_30] : memref<6x4x1x8xf32, #tpu.memory_space<vmem>>, vector<1x4x1x8xf32>
    %51 = vector.shape_cast %50 : vector<1x4x1x8xf32> to vector<4x1x8xf32>
    %52 = vector.broadcast %51 : vector<4x1x8xf32> to vector<4x8x8xf32>
    %53 = arith.addf %49, %52 : vector<4x8x8xf32>
    %c2 = arith.constant 2 : index
    %c0_31 = arith.constant 0 : index
    %c0_32 = arith.constant 0 : index
    %c0_33 = arith.constant 0 : index
    %54 = vector.load %arg3[%c2, %c0_31, %c0_32, %c0_33] : memref<6x4x32x8xf32, #tpu.memory_space<vmem>>, vector<1x4x32x8xf32>
    %55 = vector.shape_cast %54 : vector<1x4x32x8xf32> to vector<4x32x8xf32>
    "tpu.trace_start"() <{level = 10 : i32, message = "nsh,nhd->nsd"}> : () -> ()
    %cst_34 = arith.constant dense<0.000000e+00> : vector<4x8x8xf32>
    %56 = tpu.matmul %39, %55, %cst_34 {dimension_numbers = #tpu.dot_dimension_numbers<[2], [1], [1], [2], [0, 0, 0, 1, 1, 2], [0], [0]>} : vector<4x8x32xf32>, vector<4x32x8xf32>, vector<4x8x8xf32> -> vector<4x8x8xf32>
    "tpu.trace_stop"() : () -> ()
    %c2_35 = arith.constant 2 : index
    %c0_36 = arith.constant 0 : index
    %c0_37 = arith.constant 0 : index
    %c0_38 = arith.constant 0 : index
    %57 = vector.load %arg4[%c2_35, %c0_36, %c0_37, %c0_38] : memref<6x4x1x8xf32, #tpu.memory_space<vmem>>, vector<1x4x1x8xf32>
    %58 = vector.shape_cast %57 : vector<1x4x1x8xf32> to vector<4x1x8xf32>
    %59 = vector.broadcast %58 : vector<4x1x8xf32> to vector<4x8x8xf32>
    %60 = arith.addf %56, %59 : vector<4x8x8xf32>
    "tpu.trace_start"() <{level = 10 : i32, message = "nqd,nkd->nqk"}> : () -> ()
    %cst_39 = arith.constant dense<0.000000e+00> : vector<4x8x8xf32>
    %61 = tpu.matmul %46, %53, %cst_39 {dimension_numbers = #tpu.dot_dimension_numbers<[2], [2], [1], [1], [0, 0, 0, 1, 1, 1], [0], [0]>} : vector<4x8x8xf32>, vector<4x8x8xf32>, vector<4x8x8xf32> -> vector<4x8x8xf32>
    "tpu.trace_stop"() : () -> ()
    %cst_40 = arith.constant 0.353553385 : f32
    %62 = vector.broadcast %cst_40 : f32 to vector<4x8x8xf32>
    %63 = arith.mulf %61, %62 : vector<4x8x8xf32>
    %c0_41 = arith.constant 0 : index
    %c0_42 = arith.constant 0 : index
    %c0_43 = arith.constant 0 : index
    %64 = vector.load %arg1[%c0_41, %c0_42, %c0_43] : memref<2x1x8xf32, #tpu.memory_space<vmem>>, vector<1x1x8xf32>
    %65 = vector.shape_cast %64 : vector<1x1x8xf32> to vector<1x8xf32>
    %66 = vector.shape_cast %65 : vector<1x8xf32> to vector<1x1x8xf32>
    %67 = vector.broadcast %66 : vector<1x1x8xf32> to vector<4x8x8xf32>
    %68 = arith.addf %63, %67 : vector<4x8x8xf32>
    %cst_44 = arith.constant dense<0xFF800000> : vector<4x8xf32>
    %69 = vector.multi_reduction <maximumf>, %68, %cst_44 [2] : vector<4x8x8xf32> to vector<4x8xf32>
    %70 = vector.shape_cast %69 : vector<4x8xf32> to vector<4x8x1xf32>
    %71 = vector.broadcast %70 : vector<4x8x1xf32> to vector<4x8x8xf32>
    %72 = arith.subf %68, %71 : vector<4x8x8xf32>
    %73 = math.exp %72 : vector<4x8x8xf32>
    %cst_45 = arith.constant dense<0.000000e+00> : vector<4x8xf32>
    %74 = vector.multi_reduction <add>, %73, %cst_45 [2] : vector<4x8x8xf32> to vector<4x8xf32>
    %75 = vector.shape_cast %74 : vector<4x8xf32> to vector<4x8x1xf32>
    %76 = tpu.reciprocal %75 {approx = true} : vector<4x8x1xf32> -> vector<4x8x1xf32>
    %77 = vector.broadcast %76 : vector<4x8x1xf32> to vector<4x8x8xf32>
    %78 = arith.mulf %73, %77 : vector<4x8x8xf32>
    "tpu.trace_start"() <{level = 10 : i32, message = "nqk,nkd->nqd"}> : () -> ()
    %cst_46 = arith.constant dense<0.000000e+00> : vector<4x8x8xf32>
    %79 = tpu.matmul %78, %60, %cst_46 {dimension_numbers = #tpu.dot_dimension_numbers<[2], [1], [1], [2], [0, 0, 0, 1, 1, 2], [0], [0]>} : vector<4x8x8xf32>, vector<4x8x8xf32>, vector<4x8x8xf32> -> vector<4x8x8xf32>
    "tpu.trace_stop"() : () -> ()
    "tpu.trace_start"() <{level = 10 : i32, message = "nqd,ndh->nqh"}> : () -> ()
    %cst_47 = arith.constant dense<0.000000e+00> : vector<4x8x32xf32>
    %80 = tpu.matmul %79, %35, %cst_47 {dimension_numbers = #tpu.dot_dimension_numbers<[2], [1], [1], [2], [0, 0, 0, 1, 1, 2], [0], [0]>} : vector<4x8x8xf32>, vector<4x8x32xf32>, vector<4x8x32xf32> -> vector<4x8x32xf32>
    "tpu.trace_stop"() : () -> ()
    %cst_48 = arith.constant dense<0.000000e+00> : vector<8x32xf32>
    %81 = vector.multi_reduction <add>, %80, %cst_48 [0] : vector<4x8x32xf32> to vector<8x32xf32>
    %82 = vector.extract_strided_slice %25 {offsets = [8, 0], sizes = [8, 32], strides = [1, 1]} : vector<16x32xf32> to vector<8x32xf32>
    %83 = vector.shape_cast %82 : vector<8x32xf32> to vector<1x8x32xf32>
    %84 = vector.shape_cast %83 : vector<1x8x32xf32> to vector<1x8x32xf32>
    %85 = vector.broadcast %84 : vector<1x8x32xf32> to vector<4x8x32xf32>
    %c0_49 = arith.constant 0 : index
    %c0_50 = arith.constant 0 : index
    %c0_51 = arith.constant 0 : index
    %c0_52 = arith.constant 0 : index
    %86 = vector.load %arg3[%c0_49, %c0_50, %c0_51, %c0_52] : memref<6x4x32x8xf32, #tpu.memory_space<vmem>>, vector<1x4x32x8xf32>
    %87 = vector.shape_cast %86 : vector<1x4x32x8xf32> to vector<4x32x8xf32>
    "tpu.trace_start"() <{level = 10 : i32, message = "nsh,nhd->nsd"}> : () -> ()
    %cst_53 = arith.constant dense<0.000000e+00> : vector<4x8x8xf32>
    %88 = tpu.matmul %85, %87, %cst_53 {dimension_numbers = #tpu.dot_dimension_numbers<[2], [1], [1], [2], [0, 0, 0, 1, 1, 2], [0], [0]>} : vector<4x8x32xf32>, vector<4x32x8xf32>, vector<4x8x8xf32> -> vector<4x8x8xf32>
    "tpu.trace_stop"() : () -> ()
    %c0_54 = arith.constant 0 : index
    %c0_55 = arith.constant 0 : index
    %c0_56 = arith.constant 0 : index
    %c0_57 = arith.constant 0 : index
    %89 = vector.load %arg4[%c0_54, %c0_55, %c0_56, %c0_57] : memref<6x4x1x8xf32, #tpu.memory_space<vmem>>, vector<1x4x1x8xf32>
    %90 = vector.shape_cast %89 : vector<1x4x1x8xf32> to vector<4x1x8xf32>
    %91 = vector.broadcast %90 : vector<4x1x8xf32> to vector<4x8x8xf32>
    %92 = arith.addf %88, %91 : vector<4x8x8xf32>
    %c1_58 = arith.constant 1 : index
    %c0_59 = arith.constant 0 : index
    %c0_60 = arith.constant 0 : index
    %c0_61 = arith.constant 0 : index
    %93 = vector.load %arg3[%c1_58, %c0_59, %c0_60, %c0_61] : memref<6x4x32x8xf32, #tpu.memory_space<vmem>>, vector<1x4x32x8xf32>
    %94 = vector.shape_cast %93 : vector<1x4x32x8xf32> to vector<4x32x8xf32>
    "tpu.trace_start"() <{level = 10 : i32, message = "nsh,nhd->nsd"}> : () -> ()
    %cst_62 = arith.constant dense<0.000000e+00> : vector<4x8x8xf32>
    %95 = tpu.matmul %85, %94, %cst_62 {dimension_numbers = #tpu.dot_dimension_numbers<[2], [1], [1], [2], [0, 0, 0, 1, 1, 2], [0], [0]>} : vector<4x8x32xf32>, vector<4x32x8xf32>, vector<4x8x8xf32> -> vector<4x8x8xf32>
    "tpu.trace_stop"() : () -> ()
    %c1_63 = arith.constant 1 : index
    %c0_64 = arith.constant 0 : index
    %c0_65 = arith.constant 0 : index
    %c0_66 = arith.constant 0 : index
    %96 = vector.load %arg4[%c1_63, %c0_64, %c0_65, %c0_66] : memref<6x4x1x8xf32, #tpu.memory_space<vmem>>, vector<1x4x1x8xf32>
    %97 = vector.shape_cast %96 : vector<1x4x1x8xf32> to vector<4x1x8xf32>
    %98 = vector.broadcast %97 : vector<4x1x8xf32> to vector<4x8x8xf32>
    %99 = arith.addf %95, %98 : vector<4x8x8xf32>
    %c2_67 = arith.constant 2 : index
    %c0_68 = arith.constant 0 : index
    %c0_69 = arith.constant 0 : index
    %c0_70 = arith.constant 0 : index
    %100 = vector.load %arg3[%c2_67, %c0_68, %c0_69, %c0_70] : memref<6x4x32x8xf32, #tpu.memory_space<vmem>>, vector<1x4x32x8xf32>
    %101 = vector.shape_cast %100 : vector<1x4x32x8xf32> to vector<4x32x8xf32>
    "tpu.trace_start"() <{level = 10 : i32, message = "nsh,nhd->nsd"}> : () -> ()
    %cst_71 = arith.constant dense<0.000000e+00> : vector<4x8x8xf32>
    %102 = tpu.matmul %85, %101, %cst_71 {dimension_numbers = #tpu.dot_dimension_numbers<[2], [1], [1], [2], [0, 0, 0, 1, 1, 2], [0], [0]>} : vector<4x8x32xf32>, vector<4x32x8xf32>, vector<4x8x8xf32> -> vector<4x8x8xf32>
    "tpu.trace_stop"() : () -> ()
    %c2_72 = arith.constant 2 : index
    %c0_73 = arith.constant 0 : index
    %c0_74 = arith.constant 0 : index
    %c0_75 = arith.constant 0 : index
    %103 = vector.load %arg4[%c2_72, %c0_73, %c0_74, %c0_75] : memref<6x4x1x8xf32, #tpu.memory_space<vmem>>, vector<1x4x1x8xf32>
    %104 = vector.shape_cast %103 : vector<1x4x1x8xf32> to vector<4x1x8xf32>
    %105 = vector.broadcast %104 : vector<4x1x8xf32> to vector<4x8x8xf32>
    %106 = arith.addf %102, %105 : vector<4x8x8xf32>
    "tpu.trace_start"() <{level = 10 : i32, message = "nqd,nkd->nqk"}> : () -> ()
    %cst_76 = arith.constant dense<0.000000e+00> : vector<4x8x8xf32>
    %107 = tpu.matmul %92, %99, %cst_76 {dimension_numbers = #tpu.dot_dimension_numbers<[2], [2], [1], [1], [0, 0, 0, 1, 1, 1], [0], [0]>} : vector<4x8x8xf32>, vector<4x8x8xf32>, vector<4x8x8xf32> -> vector<4x8x8xf32>
    "tpu.trace_stop"() : () -> ()
    %cst_77 = arith.constant 0.353553385 : f32
    %108 = vector.broadcast %cst_77 : f32 to vector<4x8x8xf32>
    %109 = arith.mulf %107, %108 : vector<4x8x8xf32>
    %c1_78 = arith.constant 1 : index
    %c0_79 = arith.constant 0 : index
    %c0_80 = arith.constant 0 : index
    %110 = vector.load %arg1[%c1_78, %c0_79, %c0_80] : memref<2x1x8xf32, #tpu.memory_space<vmem>>, vector<1x1x8xf32>
    %111 = vector.shape_cast %110 : vector<1x1x8xf32> to vector<1x8xf32>
    %112 = vector.shape_cast %111 : vector<1x8xf32> to vector<1x1x8xf32>
    %113 = vector.broadcast %112 : vector<1x1x8xf32> to vector<4x8x8xf32>
    %114 = arith.addf %109, %113 : vector<4x8x8xf32>
    %cst_81 = arith.constant dense<0xFF800000> : vector<4x8xf32>
    %115 = vector.multi_reduction <maximumf>, %114, %cst_81 [2] : vector<4x8x8xf32> to vector<4x8xf32>
    %116 = vector.shape_cast %115 : vector<4x8xf32> to vector<4x8x1xf32>
    %117 = vector.broadcast %116 : vector<4x8x1xf32> to vector<4x8x8xf32>
    %118 = arith.subf %114, %117 : vector<4x8x8xf32>
    %119 = math.exp %118 : vector<4x8x8xf32>
    %cst_82 = arith.constant dense<0.000000e+00> : vector<4x8xf32>
    %120 = vector.multi_reduction <add>, %119, %cst_82 [2] : vector<4x8x8xf32> to vector<4x8xf32>
    %121 = vector.shape_cast %120 : vector<4x8xf32> to vector<4x8x1xf32>
    %122 = tpu.reciprocal %121 {approx = true} : vector<4x8x1xf32> -> vector<4x8x1xf32>
    %123 = vector.broadcast %122 : vector<4x8x1xf32> to vector<4x8x8xf32>
    %124 = arith.mulf %119, %123 : vector<4x8x8xf32>
    "tpu.trace_start"() <{level = 10 : i32, message = "nqk,nkd->nqd"}> : () -> ()
    %cst_83 = arith.constant dense<0.000000e+00> : vector<4x8x8xf32>
    %125 = tpu.matmul %124, %106, %cst_83 {dimension_numbers = #tpu.dot_dimension_numbers<[2], [1], [1], [2], [0, 0, 0, 1, 1, 2], [0], [0]>} : vector<4x8x8xf32>, vector<4x8x8xf32>, vector<4x8x8xf32> -> vector<4x8x8xf32>
    "tpu.trace_stop"() : () -> ()
    "tpu.trace_start"() <{level = 10 : i32, message = "nqd,ndh->nqh"}> : () -> ()
    %cst_84 = arith.constant dense<0.000000e+00> : vector<4x8x32xf32>
    %126 = tpu.matmul %125, %35, %cst_84 {dimension_numbers = #tpu.dot_dimension_numbers<[2], [1], [1], [2], [0, 0, 0, 1, 1, 2], [0], [0]>} : vector<4x8x8xf32>, vector<4x8x32xf32>, vector<4x8x32xf32> -> vector<4x8x32xf32>
    "tpu.trace_stop"() : () -> ()
    %cst_85 = arith.constant dense<0.000000e+00> : vector<8x32xf32>
    %127 = vector.multi_reduction <add>, %126, %cst_85 [0] : vector<4x8x32xf32> to vector<8x32xf32>
    %128 = tpu.concatenate %81, %127 in 0 : vector<8x32xf32>, vector<8x32xf32> -> vector<16x32xf32>
    %129 = arith.addf %25, %128 : vector<16x32xf32>
    %130 = vector.broadcast %28 : vector<1x32xf32> to vector<16x32xf32>
    %131 = arith.addf %129, %130 : vector<16x32xf32>
    %cst_86 = arith.constant dense<0.000000e+00> : vector<16xf32>
    %132 = vector.multi_reduction <add>, %131, %cst_86 [1] : vector<16x32xf32> to vector<16xf32>
    %133 = vector.shape_cast %132 : vector<16xf32> to vector<16x1xf32>
    %cst_87 = arith.constant 3.200000e+01 : f32
    %134 = vector.broadcast %cst_87 : f32 to vector<16x1xf32>
    %135 = arith.divf %133, %134 : vector<16x1xf32>
    %136 = vector.broadcast %135 : vector<16x1xf32> to vector<16x32xf32>
    %137 = arith.subf %131, %136 : vector<16x32xf32>
    %138 = arith.mulf %137, %137 : vector<16x32xf32>
    %cst_88 = arith.constant dense<0.000000e+00> : vector<16xf32>
    %139 = vector.multi_reduction <add>, %138, %cst_88 [1] : vector<16x32xf32> to vector<16xf32>
    %140 = vector.shape_cast %139 : vector<16xf32> to vector<16x1xf32>
    %cst_89 = arith.constant 3.200000e+01 : f32
    %141 = vector.broadcast %cst_89 : f32 to vector<16x1xf32>
    %142 = arith.divf %140, %141 : vector<16x1xf32>
    %143 = vector.broadcast %135 : vector<16x1xf32> to vector<16x32xf32>
    %144 = arith.subf %131, %143 : vector<16x32xf32>
    %cst_90 = arith.constant 9.99999996E-13 : f32
    %145 = vector.broadcast %cst_90 : f32 to vector<16x1xf32>
    %146 = arith.addf %142, %145 : vector<16x1xf32>
    %147 = math.rsqrt %146 : vector<16x1xf32>
    %148 = vector.broadcast %147 : vector<16x1xf32> to vector<16x32xf32>
    %149 = arith.mulf %144, %148 : vector<16x32xf32>
    %150 = vector.broadcast %29 : vector<1x32xf32> to vector<16x32xf32>
    %151 = arith.mulf %149, %150 : vector<16x32xf32>
    %152 = vector.broadcast %30 : vector<1x32xf32> to vector<16x32xf32>
    %153 = arith.addf %151, %152 : vector<16x32xf32>
    %c0_91 = arith.constant 0 : index
    %c0_92 = arith.constant 0 : index
    %c0_93 = arith.constant 0 : index
    %154 = vector.load %arg7[%c0_91, %c0_92, %c0_93] : memref<2x32x64xf32, #tpu.memory_space<vmem>>, vector<1x32x64xf32>
    %155 = vector.shape_cast %154 : vector<1x32x64xf32> to vector<32x64xf32>
    %cst_94 = arith.constant dense<0.000000e+00> : vector<16x64xf32>
    %156 = tpu.matmul %153, %155, %cst_94 {dimension_numbers = #tpu.dot_dimension_numbers<[1], [0], [0], [1], [0, 0, 1, 1], [], []>} : vector<16x32xf32>, vector<32x64xf32>, vector<16x64xf32> -> vector<16x64xf32>
    %c0_95 = arith.constant 0 : index
    %c0_96 = arith.constant 0 : index
    %c0_97 = arith.constant 0 : index
    %157 = vector.load %arg8[%c0_95, %c0_96, %c0_97] : memref<2x1x64xf32, #tpu.memory_space<vmem>>, vector<1x1x64xf32>
    %158 = vector.shape_cast %157 : vector<1x1x64xf32> to vector<1x64xf32>
    %159 = vector.broadcast %158 : vector<1x64xf32> to vector<16x64xf32>
    %160 = arith.addf %156, %159 : vector<16x64xf32>
    %cst_98 = arith.constant 5.000000e-01 : f32
    %161 = vector.broadcast %cst_98 : f32 to vector<16x64xf32>
    %162 = arith.mulf %161, %160 : vector<16x64xf32>
    %cst_99 = arith.constant 4.471500e-02 : f32
    %163 = vector.broadcast %cst_99 : f32 to vector<16x64xf32>
    %164 = arith.mulf %163, %160 : vector<16x64xf32>
    %165 = arith.mulf %164, %160 : vector<16x64xf32>
    %166 = arith.mulf %165, %160 : vector<16x64xf32>
    %167 = arith.addf %160, %166 : vector<16x64xf32>
    %cst_100 = arith.constant 0.797884583 : f32
    %168 = vector.broadcast %cst_100 : f32 to vector<16x64xf32>
    %169 = arith.mulf %168, %167 : vector<16x64xf32>
    %170 = math.tanh %169 : vector<16x64xf32>
    %cst_101 = arith.constant 1.000000e+00 : f32
    %171 = vector.broadcast %cst_101 : f32 to vector<16x64xf32>
    %172 = arith.addf %171, %170 : vector<16x64xf32>
    %173 = arith.mulf %162, %172 : vector<16x64xf32>
    %c0_102 = arith.constant 0 : index
    %c0_103 = arith.constant 0 : index
    %c0_104 = arith.constant 0 : index
    %174 = vector.load %arg9[%c0_102, %c0_103, %c0_104] : memref<2x64x32xf32, #tpu.memory_space<vmem>>, vector<1x64x32xf32>
    %175 = vector.shape_cast %174 : vector<1x64x32xf32> to vector<64x32xf32>
    %cst_105 = arith.constant dense<0.000000e+00> : vector<16x32xf32>
    %176 = tpu.matmul %173, %175, %cst_105 {dimension_numbers = #tpu.dot_dimension_numbers<[1], [0], [0], [1], [0, 0, 1, 1], [], []>} : vector<16x64xf32>, vector<64x32xf32>, vector<16x32xf32> -> vector<16x32xf32>
    %177 = vector.broadcast %31 : vector<1x32xf32> to vector<16x32xf32>
    %178 = arith.addf %176, %177 : vector<16x32xf32>
    %179 = arith.addf %153, %178 : vector<16x32xf32>
    %cst_106 = arith.constant dense<0.000000e+00> : vector<16xf32>
    %180 = vector.multi_reduction <add>, %179, %cst_106 [1] : vector<16x32xf32> to vector<16xf32>
    %181 = vector.shape_cast %180 : vector<16xf32> to vector<16x1xf32>
    %cst_107 = arith.constant 3.200000e+01 : f32
    %182 = vector.broadcast %cst_107 : f32 to vector<16x1xf32>
    %183 = arith.divf %181, %182 : vector<16x1xf32>
    %184 = vector.broadcast %183 : vector<16x1xf32> to vector<16x32xf32>
    %185 = arith.subf %179, %184 : vector<16x32xf32>
    %186 = arith.mulf %185, %185 : vector<16x32xf32>
    %cst_108 = arith.constant dense<0.000000e+00> : vector<16xf32>
    %187 = vector.multi_reduction <add>, %186, %cst_108 [1] : vector<16x32xf32> to vector<16xf32>
    %188 = vector.shape_cast %187 : vector<16xf32> to vector<16x1xf32>
    %cst_109 = arith.constant 3.200000e+01 : f32
    %189 = vector.broadcast %cst_109 : f32 to vector<16x1xf32>
    %190 = arith.divf %188, %189 : vector<16x1xf32>
    %191 = vector.broadcast %183 : vector<16x1xf32> to vector<16x32xf32>
    %192 = arith.subf %179, %191 : vector<16x32xf32>
    %cst_110 = arith.constant 9.99999996E-13 : f32
    %193 = vector.broadcast %cst_110 : f32 to vector<16x1xf32>
    %194 = arith.addf %190, %193 : vector<16x1xf32>
    %195 = math.rsqrt %194 : vector<16x1xf32>
    %196 = vector.broadcast %195 : vector<16x1xf32> to vector<16x32xf32>
    %197 = arith.mulf %192, %196 : vector<16x32xf32>
    %198 = vector.broadcast %32 : vector<1x32xf32> to vector<16x32xf32>
    %199 = arith.mulf %197, %198 : vector<16x32xf32>
    %200 = vector.broadcast %33 : vector<1x32xf32> to vector<16x32xf32>
    %201 = arith.addf %199, %200 : vector<16x32xf32>
    %c1_111 = arith.constant 1 : index
    %c0_112 = arith.constant 0 : index
    %c0_113 = arith.constant 0 : index
    %202 = vector.load %arg6[%c1_111, %c0_112, %c0_113] : memref<2x6x32xf32, #tpu.memory_space<vmem>>, vector<1x6x32xf32>
    %203 = vector.shape_cast %202 : vector<1x6x32xf32> to vector<6x32xf32>
    %204 = vector.extract_strided_slice %203 {offsets = [0, 0], sizes = [1, 32], strides = [1, 1]} : vector<6x32xf32> to vector<1x32xf32>
    %205 = vector.extract_strided_slice %203 {offsets = [1, 0], sizes = [1, 32], strides = [1, 1]} : vector<6x32xf32> to vector<1x32xf32>
    %206 = vector.extract_strided_slice %203 {offsets = [2, 0], sizes = [1, 32], strides = [1, 1]} : vector<6x32xf32> to vector<1x32xf32>
    %207 = vector.extract_strided_slice %203 {offsets = [3, 0], sizes = [1, 32], strides = [1, 1]} : vector<6x32xf32> to vector<1x32xf32>
    %208 = vector.extract_strided_slice %203 {offsets = [4, 0], sizes = [1, 32], strides = [1, 1]} : vector<6x32xf32> to vector<1x32xf32>
    %209 = vector.extract_strided_slice %203 {offsets = [5, 0], sizes = [1, 32], strides = [1, 1]} : vector<6x32xf32> to vector<1x32xf32>
    %c1_114 = arith.constant 1 : index
    %c0_115 = arith.constant 0 : index
    %c0_116 = arith.constant 0 : index
    %c0_117 = arith.constant 0 : index
    %210 = vector.load %arg5[%c1_114, %c0_115, %c0_116, %c0_117] : memref<2x4x8x32xf32, #tpu.memory_space<vmem>>, vector<1x4x8x32xf32>
    %211 = vector.shape_cast %210 : vector<1x4x8x32xf32> to vector<4x8x32xf32>
    %212 = vector.extract_strided_slice %201 {offsets = [0, 0], sizes = [8, 32], strides = [1, 1]} : vector<16x32xf32> to vector<8x32xf32>
    %213 = vector.shape_cast %212 : vector<8x32xf32> to vector<1x8x32xf32>
    %214 = vector.shape_cast %213 : vector<1x8x32xf32> to vector<1x8x32xf32>
    %215 = vector.broadcast %214 : vector<1x8x32xf32> to vector<4x8x32xf32>
    %c3 = arith.constant 3 : index
    %c0_118 = arith.constant 0 : index
    %c0_119 = arith.constant 0 : index
    %c0_120 = arith.constant 0 : index
    %216 = vector.load %arg3[%c3, %c0_118, %c0_119, %c0_120] : memref<6x4x32x8xf32, #tpu.memory_space<vmem>>, vector<1x4x32x8xf32>
    %217 = vector.shape_cast %216 : vector<1x4x32x8xf32> to vector<4x32x8xf32>
    "tpu.trace_start"() <{level = 10 : i32, message = "nsh,nhd->nsd"}> : () -> ()
    %cst_121 = arith.constant dense<0.000000e+00> : vector<4x8x8xf32>
    %218 = tpu.matmul %215, %217, %cst_121 {dimension_numbers = #tpu.dot_dimension_numbers<[2], [1], [1], [2], [0, 0, 0, 1, 1, 2], [0], [0]>} : vector<4x8x32xf32>, vector<4x32x8xf32>, vector<4x8x8xf32> -> vector<4x8x8xf32>
    "tpu.trace_stop"() : () -> ()
    %c3_122 = arith.constant 3 : index
    %c0_123 = arith.constant 0 : index
    %c0_124 = arith.constant 0 : index
    %c0_125 = arith.constant 0 : index
    %219 = vector.load %arg4[%c3_122, %c0_123, %c0_124, %c0_125] : memref<6x4x1x8xf32, #tpu.memory_space<vmem>>, vector<1x4x1x8xf32>
    %220 = vector.shape_cast %219 : vector<1x4x1x8xf32> to vector<4x1x8xf32>
    %221 = vector.broadcast %220 : vector<4x1x8xf32> to vector<4x8x8xf32>
    %222 = arith.addf %218, %221 : vector<4x8x8xf32>
    %c4 = arith.constant 4 : index
    %c0_126 = arith.constant 0 : index
    %c0_127 = arith.constant 0 : index
    %c0_128 = arith.constant 0 : index
    %223 = vector.load %arg3[%c4, %c0_126, %c0_127, %c0_128] : memref<6x4x32x8xf32, #tpu.memory_space<vmem>>, vector<1x4x32x8xf32>
    %224 = vector.shape_cast %223 : vector<1x4x32x8xf32> to vector<4x32x8xf32>
    "tpu.trace_start"() <{level = 10 : i32, message = "nsh,nhd->nsd"}> : () -> ()
    %cst_129 = arith.constant dense<0.000000e+00> : vector<4x8x8xf32>
    %225 = tpu.matmul %215, %224, %cst_129 {dimension_numbers = #tpu.dot_dimension_numbers<[2], [1], [1], [2], [0, 0, 0, 1, 1, 2], [0], [0]>} : vector<4x8x32xf32>, vector<4x32x8xf32>, vector<4x8x8xf32> -> vector<4x8x8xf32>
    "tpu.trace_stop"() : () -> ()
    %c4_130 = arith.constant 4 : index
    %c0_131 = arith.constant 0 : index
    %c0_132 = arith.constant 0 : index
    %c0_133 = arith.constant 0 : index
    %226 = vector.load %arg4[%c4_130, %c0_131, %c0_132, %c0_133] : memref<6x4x1x8xf32, #tpu.memory_space<vmem>>, vector<1x4x1x8xf32>
    %227 = vector.shape_cast %226 : vector<1x4x1x8xf32> to vector<4x1x8xf32>
    %228 = vector.broadcast %227 : vector<4x1x8xf32> to vector<4x8x8xf32>
    %229 = arith.addf %225, %228 : vector<4x8x8xf32>
    %c5 = arith.constant 5 : index
    %c0_134 = arith.constant 0 : index
    %c0_135 = arith.constant 0 : index
    %c0_136 = arith.constant 0 : index
    %230 = vector.load %arg3[%c5, %c0_134, %c0_135, %c0_136] : memref<6x4x32x8xf32, #tpu.memory_space<vmem>>, vector<1x4x32x8xf32>
    %231 = vector.shape_cast %230 : vector<1x4x32x8xf32> to vector<4x32x8xf32>
    "tpu.trace_start"() <{level = 10 : i32, message = "nsh,nhd->nsd"}> : () -> ()
    %cst_137 = arith.constant dense<0.000000e+00> : vector<4x8x8xf32>
    %232 = tpu.matmul %215, %231, %cst_137 {dimension_numbers = #tpu.dot_dimension_numbers<[2], [1], [1], [2], [0, 0, 0, 1, 1, 2], [0], [0]>} : vector<4x8x32xf32>, vector<4x32x8xf32>, vector<4x8x8xf32> -> vector<4x8x8xf32>
    "tpu.trace_stop"() : () -> ()
    %c5_138 = arith.constant 5 : index
    %c0_139 = arith.constant 0 : index
    %c0_140 = arith.constant 0 : index
    %c0_141 = arith.constant 0 : index
    %233 = vector.load %arg4[%c5_138, %c0_139, %c0_140, %c0_141] : memref<6x4x1x8xf32, #tpu.memory_space<vmem>>, vector<1x4x1x8xf32>
    %234 = vector.shape_cast %233 : vector<1x4x1x8xf32> to vector<4x1x8xf32>
    %235 = vector.broadcast %234 : vector<4x1x8xf32> to vector<4x8x8xf32>
    %236 = arith.addf %232, %235 : vector<4x8x8xf32>
    "tpu.trace_start"() <{level = 10 : i32, message = "nqd,nkd->nqk"}> : () -> ()
    %cst_142 = arith.constant dense<0.000000e+00> : vector<4x8x8xf32>
    %237 = tpu.matmul %222, %229, %cst_142 {dimension_numbers = #tpu.dot_dimension_numbers<[2], [2], [1], [1], [0, 0, 0, 1, 1, 1], [0], [0]>} : vector<4x8x8xf32>, vector<4x8x8xf32>, vector<4x8x8xf32> -> vector<4x8x8xf32>
    "tpu.trace_stop"() : () -> ()
    %cst_143 = arith.constant 0.353553385 : f32
    %238 = vector.broadcast %cst_143 : f32 to vector<4x8x8xf32>
    %239 = arith.mulf %237, %238 : vector<4x8x8xf32>
    %c0_144 = arith.constant 0 : index
    %c0_145 = arith.constant 0 : index
    %c0_146 = arith.constant 0 : index
    %240 = vector.load %arg1[%c0_144, %c0_145, %c0_146] : memref<2x1x8xf32, #tpu.memory_space<vmem>>, vector<1x1x8xf32>
    %241 = vector.shape_cast %240 : vector<1x1x8xf32> to vector<1x8xf32>
    %242 = vector.shape_cast %241 : vector<1x8xf32> to vector<1x1x8xf32>
    %243 = vector.broadcast %242 : vector<1x1x8xf32> to vector<4x8x8xf32>
    %244 = arith.addf %239, %243 : vector<4x8x8xf32>
    %cst_147 = arith.constant dense<0xFF800000> : vector<4x8xf32>
    %245 = vector.multi_reduction <maximumf>, %244, %cst_147 [2] : vector<4x8x8xf32> to vector<4x8xf32>
    %246 = vector.shape_cast %245 : vector<4x8xf32> to vector<4x8x1xf32>
    %247 = vector.broadcast %246 : vector<4x8x1xf32> to vector<4x8x8xf32>
    %248 = arith.subf %244, %247 : vector<4x8x8xf32>
    %249 = math.exp %248 : vector<4x8x8xf32>
    %cst_148 = arith.constant dense<0.000000e+00> : vector<4x8xf32>
    %250 = vector.multi_reduction <add>, %249, %cst_148 [2] : vector<4x8x8xf32> to vector<4x8xf32>
    %251 = vector.shape_cast %250 : vector<4x8xf32> to vector<4x8x1xf32>
    %252 = tpu.reciprocal %251 {approx = true} : vector<4x8x1xf32> -> vector<4x8x1xf32>
    %253 = vector.broadcast %252 : vector<4x8x1xf32> to vector<4x8x8xf32>
    %254 = arith.mulf %249, %253 : vector<4x8x8xf32>
    "tpu.trace_start"() <{level = 10 : i32, message = "nqk,nkd->nqd"}> : () -> ()
    %cst_149 = arith.constant dense<0.000000e+00> : vector<4x8x8xf32>
    %255 = tpu.matmul %254, %236, %cst_149 {dimension_numbers = #tpu.dot_dimension_numbers<[2], [1], [1], [2], [0, 0, 0, 1, 1, 2], [0], [0]>} : vector<4x8x8xf32>, vector<4x8x8xf32>, vector<4x8x8xf32> -> vector<4x8x8xf32>
    "tpu.trace_stop"() : () -> ()
    "tpu.trace_start"() <{level = 10 : i32, message = "nqd,ndh->nqh"}> : () -> ()
    %cst_150 = arith.constant dense<0.000000e+00> : vector<4x8x32xf32>
    %256 = tpu.matmul %255, %211, %cst_150 {dimension_numbers = #tpu.dot_dimension_numbers<[2], [1], [1], [2], [0, 0, 0, 1, 1, 2], [0], [0]>} : vector<4x8x8xf32>, vector<4x8x32xf32>, vector<4x8x32xf32> -> vector<4x8x32xf32>
    "tpu.trace_stop"() : () -> ()
    %cst_151 = arith.constant dense<0.000000e+00> : vector<8x32xf32>
    %257 = vector.multi_reduction <add>, %256, %cst_151 [0] : vector<4x8x32xf32> to vector<8x32xf32>
    %258 = vector.extract_strided_slice %201 {offsets = [8, 0], sizes = [8, 32], strides = [1, 1]} : vector<16x32xf32> to vector<8x32xf32>
    %259 = vector.shape_cast %258 : vector<8x32xf32> to vector<1x8x32xf32>
    %260 = vector.shape_cast %259 : vector<1x8x32xf32> to vector<1x8x32xf32>
    %261 = vector.broadcast %260 : vector<1x8x32xf32> to vector<4x8x32xf32>
    %c3_152 = arith.constant 3 : index
    %c0_153 = arith.constant 0 : index
    %c0_154 = arith.constant 0 : index
    %c0_155 = arith.constant 0 : index
    %262 = vector.load %arg3[%c3_152, %c0_153, %c0_154, %c0_155] : memref<6x4x32x8xf32, #tpu.memory_space<vmem>>, vector<1x4x32x8xf32>
    %263 = vector.shape_cast %262 : vector<1x4x32x8xf32> to vector<4x32x8xf32>
    "tpu.trace_start"() <{level = 10 : i32, message = "nsh,nhd->nsd"}> : () -> ()
    %cst_156 = arith.constant dense<0.000000e+00> : vector<4x8x8xf32>
    %264 = tpu.matmul %261, %263, %cst_156 {dimension_numbers = #tpu.dot_dimension_numbers<[2], [1], [1], [2], [0, 0, 0, 1, 1, 2], [0], [0]>} : vector<4x8x32xf32>, vector<4x32x8xf32>, vector<4x8x8xf32> -> vector<4x8x8xf32>
    "tpu.trace_stop"() : () -> ()
    %c3_157 = arith.constant 3 : index
    %c0_158 = arith.constant 0 : index
    %c0_159 = arith.constant 0 : index
    %c0_160 = arith.constant 0 : index
    %265 = vector.load %arg4[%c3_157, %c0_158, %c0_159, %c0_160] : memref<6x4x1x8xf32, #tpu.memory_space<vmem>>, vector<1x4x1x8xf32>
    %266 = vector.shape_cast %265 : vector<1x4x1x8xf32> to vector<4x1x8xf32>
    %267 = vector.broadcast %266 : vector<4x1x8xf32> to vector<4x8x8xf32>
    %268 = arith.addf %264, %267 : vector<4x8x8xf32>
    %c4_161 = arith.constant 4 : index
    %c0_162 = arith.constant 0 : index
    %c0_163 = arith.constant 0 : index
    %c0_164 = arith.constant 0 : index
    %269 = vector.load %arg3[%c4_161, %c0_162, %c0_163, %c0_164] : memref<6x4x32x8xf32, #tpu.memory_space<vmem>>, vector<1x4x32x8xf32>
    %270 = vector.shape_cast %269 : vector<1x4x32x8xf32> to vector<4x32x8xf32>
    "tpu.trace_start"() <{level = 10 : i32, message = "nsh,nhd->nsd"}> : () -> ()
    %cst_165 = arith.constant dense<0.000000e+00> : vector<4x8x8xf32>
    %271 = tpu.matmul %261, %270, %cst_165 {dimension_numbers = #tpu.dot_dimension_numbers<[2], [1], [1], [2], [0, 0, 0, 1, 1, 2], [0], [0]>} : vector<4x8x32xf32>, vector<4x32x8xf32>, vector<4x8x8xf32> -> vector<4x8x8xf32>
    "tpu.trace_stop"() : () -> ()
    %c4_166 = arith.constant 4 : index
    %c0_167 = arith.constant 0 : index
    %c0_168 = arith.constant 0 : index
    %c0_169 = arith.constant 0 : index
    %272 = vector.load %arg4[%c4_166, %c0_167, %c0_168, %c0_169] : memref<6x4x1x8xf32, #tpu.memory_space<vmem>>, vector<1x4x1x8xf32>
    %273 = vector.shape_cast %272 : vector<1x4x1x8xf32> to vector<4x1x8xf32>
    %274 = vector.broadcast %273 : vector<4x1x8xf32> to vector<4x8x8xf32>
    %275 = arith.addf %271, %274 : vector<4x8x8xf32>
    %c5_170 = arith.constant 5 : index
    %c0_171 = arith.constant 0 : index
    %c0_172 = arith.constant 0 : index
    %c0_173 = arith.constant 0 : index
    %276 = vector.load %arg3[%c5_170, %c0_171, %c0_172, %c0_173] : memref<6x4x32x8xf32, #tpu.memory_space<vmem>>, vector<1x4x32x8xf32>
    %277 = vector.shape_cast %276 : vector<1x4x32x8xf32> to vector<4x32x8xf32>
    "tpu.trace_start"() <{level = 10 : i32, message = "nsh,nhd->nsd"}> : () -> ()
    %cst_174 = arith.constant dense<0.000000e+00> : vector<4x8x8xf32>
    %278 = tpu.matmul %261, %277, %cst_174 {dimension_numbers = #tpu.dot_dimension_numbers<[2], [1], [1], [2], [0, 0, 0, 1, 1, 2], [0], [0]>} : vector<4x8x32xf32>, vector<4x32x8xf32>, vector<4x8x8xf32> -> vector<4x8x8xf32>
    "tpu.trace_stop"() : () -> ()
    %c5_175 = arith.constant 5 : index
    %c0_176 = arith.constant 0 : index
    %c0_177 = arith.constant 0 : index
    %c0_178 = arith.constant 0 : index
    %279 = vector.load %arg4[%c5_175, %c0_176, %c0_177, %c0_178] : memref<6x4x1x8xf32, #tpu.memory_space<vmem>>, vector<1x4x1x8xf32>
    %280 = vector.shape_cast %279 : vector<1x4x1x8xf32> to vector<4x1x8xf32>
    %281 = vector.broadcast %280 : vector<4x1x8xf32> to vector<4x8x8xf32>
    %282 = arith.addf %278, %281 : vector<4x8x8xf32>
    "tpu.trace_start"() <{level = 10 : i32, message = "nqd,nkd->nqk"}> : () -> ()
    %cst_179 = arith.constant dense<0.000000e+00> : vector<4x8x8xf32>
    %283 = tpu.matmul %268, %275, %cst_179 {dimension_numbers = #tpu.dot_dimension_numbers<[2], [2], [1], [1], [0, 0, 0, 1, 1, 1], [0], [0]>} : vector<4x8x8xf32>, vector<4x8x8xf32>, vector<4x8x8xf32> -> vector<4x8x8xf32>
    "tpu.trace_stop"() : () -> ()
    %cst_180 = arith.constant 0.353553385 : f32
    %284 = vector.broadcast %cst_180 : f32 to vector<4x8x8xf32>
    %285 = arith.mulf %283, %284 : vector<4x8x8xf32>
    %c1_181 = arith.constant 1 : index
    %c0_182 = arith.constant 0 : index
    %c0_183 = arith.constant 0 : index
    %286 = vector.load %arg1[%c1_181, %c0_182, %c0_183] : memref<2x1x8xf32, #tpu.memory_space<vmem>>, vector<1x1x8xf32>
    %287 = vector.shape_cast %286 : vector<1x1x8xf32> to vector<1x8xf32>
    %288 = vector.shape_cast %287 : vector<1x8xf32> to vector<1x1x8xf32>
    %289 = vector.broadcast %288 : vector<1x1x8xf32> to vector<4x8x8xf32>
    %290 = arith.addf %285, %289 : vector<4x8x8xf32>
    %cst_184 = arith.constant dense<0xFF800000> : vector<4x8xf32>
    %291 = vector.multi_reduction <maximumf>, %290, %cst_184 [2] : vector<4x8x8xf32> to vector<4x8xf32>
    %292 = vector.shape_cast %291 : vector<4x8xf32> to vector<4x8x1xf32>
    %293 = vector.broadcast %292 : vector<4x8x1xf32> to vector<4x8x8xf32>
    %294 = arith.subf %290, %293 : vector<4x8x8xf32>
    %295 = math.exp %294 : vector<4x8x8xf32>
    %cst_185 = arith.constant dense<0.000000e+00> : vector<4x8xf32>
    %296 = vector.multi_reduction <add>, %295, %cst_185 [2] : vector<4x8x8xf32> to vector<4x8xf32>
    %297 = vector.shape_cast %296 : vector<4x8xf32> to vector<4x8x1xf32>
    %298 = tpu.reciprocal %297 {approx = true} : vector<4x8x1xf32> -> vector<4x8x1xf32>
    %299 = vector.broadcast %298 : vector<4x8x1xf32> to vector<4x8x8xf32>
    %300 = arith.mulf %295, %299 : vector<4x8x8xf32>
    "tpu.trace_start"() <{level = 10 : i32, message = "nqk,nkd->nqd"}> : () -> ()
    %cst_186 = arith.constant dense<0.000000e+00> : vector<4x8x8xf32>
    %301 = tpu.matmul %300, %282, %cst_186 {dimension_numbers = #tpu.dot_dimension_numbers<[2], [1], [1], [2], [0, 0, 0, 1, 1, 2], [0], [0]>} : vector<4x8x8xf32>, vector<4x8x8xf32>, vector<4x8x8xf32> -> vector<4x8x8xf32>
    "tpu.trace_stop"() : () -> ()
    "tpu.trace_start"() <{level = 10 : i32, message = "nqd,ndh->nqh"}> : () -> ()
    %cst_187 = arith.constant dense<0.000000e+00> : vector<4x8x32xf32>
    %302 = tpu.matmul %301, %211, %cst_187 {dimension_numbers = #tpu.dot_dimension_numbers<[2], [1], [1], [2], [0, 0, 0, 1, 1, 2], [0], [0]>} : vector<4x8x8xf32>, vector<4x8x32xf32>, vector<4x8x32xf32> -> vector<4x8x32xf32>
    "tpu.trace_stop"() : () -> ()
    %cst_188 = arith.constant dense<0.000000e+00> : vector<8x32xf32>
    %303 = vector.multi_reduction <add>, %302, %cst_188 [0] : vector<4x8x32xf32> to vector<8x32xf32>
    %304 = tpu.concatenate %257, %303 in 0 : vector<8x32xf32>, vector<8x32xf32> -> vector<16x32xf32>
    %305 = arith.addf %201, %304 : vector<16x32xf32>
    %306 = vector.broadcast %204 : vector<1x32xf32> to vector<16x32xf32>
    %307 = arith.addf %305, %306 : vector<16x32xf32>
    %cst_189 = arith.constant dense<0.000000e+00> : vector<16xf32>
    %308 = vector.multi_reduction <add>, %307, %cst_189 [1] : vector<16x32xf32> to vector<16xf32>
    %309 = vector.shape_cast %308 : vector<16xf32> to vector<16x1xf32>
    %cst_190 = arith.constant 3.200000e+01 : f32
    %310 = vector.broadcast %cst_190 : f32 to vector<16x1xf32>
    %311 = arith.divf %309, %310 : vector<16x1xf32>
    %312 = vector.broadcast %311 : vector<16x1xf32> to vector<16x32xf32>
    %313 = arith.subf %307, %312 : vector<16x32xf32>
    %314 = arith.mulf %313, %313 : vector<16x32xf32>
    %cst_191 = arith.constant dense<0.000000e+00> : vector<16xf32>
    %315 = vector.multi_reduction <add>, %314, %cst_191 [1] : vector<16x32xf32> to vector<16xf32>
    %316 = vector.shape_cast %315 : vector<16xf32> to vector<16x1xf32>
    %cst_192 = arith.constant 3.200000e+01 : f32
    %317 = vector.broadcast %cst_192 : f32 to vector<16x1xf32>
    %318 = arith.divf %316, %317 : vector<16x1xf32>
    %319 = vector.broadcast %311 : vector<16x1xf32> to vector<16x32xf32>
    %320 = arith.subf %307, %319 : vector<16x32xf32>
    %cst_193 = arith.constant 9.99999996E-13 : f32
    %321 = vector.broadcast %cst_193 : f32 to vector<16x1xf32>
    %322 = arith.addf %318, %321 : vector<16x1xf32>
    %323 = math.rsqrt %322 : vector<16x1xf32>
    %324 = vector.broadcast %323 : vector<16x1xf32> to vector<16x32xf32>
    %325 = arith.mulf %320, %324 : vector<16x32xf32>
    %326 = vector.broadcast %205 : vector<1x32xf32> to vector<16x32xf32>
    %327 = arith.mulf %325, %326 : vector<16x32xf32>
    %328 = vector.broadcast %206 : vector<1x32xf32> to vector<16x32xf32>
    %329 = arith.addf %327, %328 : vector<16x32xf32>
    %c1_194 = arith.constant 1 : index
    %c0_195 = arith.constant 0 : index
    %c0_196 = arith.constant 0 : index
    %330 = vector.load %arg7[%c1_194, %c0_195, %c0_196] : memref<2x32x64xf32, #tpu.memory_space<vmem>>, vector<1x32x64xf32>
    %331 = vector.shape_cast %330 : vector<1x32x64xf32> to vector<32x64xf32>
    %cst_197 = arith.constant dense<0.000000e+00> : vector<16x64xf32>
    %332 = tpu.matmul %329, %331, %cst_197 {dimension_numbers = #tpu.dot_dimension_numbers<[1], [0], [0], [1], [0, 0, 1, 1], [], []>} : vector<16x32xf32>, vector<32x64xf32>, vector<16x64xf32> -> vector<16x64xf32>
    %c1_198 = arith.constant 1 : index
    %c0_199 = arith.constant 0 : index
    %c0_200 = arith.constant 0 : index
    %333 = vector.load %arg8[%c1_198, %c0_199, %c0_200] : memref<2x1x64xf32, #tpu.memory_space<vmem>>, vector<1x1x64xf32>
    %334 = vector.shape_cast %333 : vector<1x1x64xf32> to vector<1x64xf32>
    %335 = vector.broadcast %334 : vector<1x64xf32> to vector<16x64xf32>
    %336 = arith.addf %332, %335 : vector<16x64xf32>
    %cst_201 = arith.constant 5.000000e-01 : f32
    %337 = vector.broadcast %cst_201 : f32 to vector<16x64xf32>
    %338 = arith.mulf %337, %336 : vector<16x64xf32>
    %cst_202 = arith.constant 4.471500e-02 : f32
    %339 = vector.broadcast %cst_202 : f32 to vector<16x64xf32>
    %340 = arith.mulf %339, %336 : vector<16x64xf32>
    %341 = arith.mulf %340, %336 : vector<16x64xf32>
    %342 = arith.mulf %341, %336 : vector<16x64xf32>
    %343 = arith.addf %336, %342 : vector<16x64xf32>
    %cst_203 = arith.constant 0.797884583 : f32
    %344 = vector.broadcast %cst_203 : f32 to vector<16x64xf32>
    %345 = arith.mulf %344, %343 : vector<16x64xf32>
    %346 = math.tanh %345 : vector<16x64xf32>
    %cst_204 = arith.constant 1.000000e+00 : f32
    %347 = vector.broadcast %cst_204 : f32 to vector<16x64xf32>
    %348 = arith.addf %347, %346 : vector<16x64xf32>
    %349 = arith.mulf %338, %348 : vector<16x64xf32>
    %c1_205 = arith.constant 1 : index
    %c0_206 = arith.constant 0 : index
    %c0_207 = arith.constant 0 : index
    %350 = vector.load %arg9[%c1_205, %c0_206, %c0_207] : memref<2x64x32xf32, #tpu.memory_space<vmem>>, vector<1x64x32xf32>
    %351 = vector.shape_cast %350 : vector<1x64x32xf32> to vector<64x32xf32>
    %cst_208 = arith.constant dense<0.000000e+00> : vector<16x32xf32>
    %352 = tpu.matmul %349, %351, %cst_208 {dimension_numbers = #tpu.dot_dimension_numbers<[1], [0], [0], [1], [0, 0, 1, 1], [], []>} : vector<16x64xf32>, vector<64x32xf32>, vector<16x32xf32> -> vector<16x32xf32>
    %353 = vector.broadcast %207 : vector<1x32xf32> to vector<16x32xf32>
    %354 = arith.addf %352, %353 : vector<16x32xf32>
    %355 = arith.addf %329, %354 : vector<16x32xf32>
    %cst_209 = arith.constant dense<0.000000e+00> : vector<16xf32>
    %356 = vector.multi_reduction <add>, %355, %cst_209 [1] : vector<16x32xf32> to vector<16xf32>
    %357 = vector.shape_cast %356 : vector<16xf32> to vector<16x1xf32>
    %cst_210 = arith.constant 3.200000e+01 : f32
    %358 = vector.broadcast %cst_210 : f32 to vector<16x1xf32>
    %359 = arith.divf %357, %358 : vector<16x1xf32>
    %360 = vector.broadcast %359 : vector<16x1xf32> to vector<16x32xf32>
    %361 = arith.subf %355, %360 : vector<16x32xf32>
    %362 = arith.mulf %361, %361 : vector<16x32xf32>
    %cst_211 = arith.constant dense<0.000000e+00> : vector<16xf32>
    %363 = vector.multi_reduction <add>, %362, %cst_211 [1] : vector<16x32xf32> to vector<16xf32>
    %364 = vector.shape_cast %363 : vector<16xf32> to vector<16x1xf32>
    %cst_212 = arith.constant 3.200000e+01 : f32
    %365 = vector.broadcast %cst_212 : f32 to vector<16x1xf32>
    %366 = arith.divf %364, %365 : vector<16x1xf32>
    %367 = vector.broadcast %359 : vector<16x1xf32> to vector<16x32xf32>
    %368 = arith.subf %355, %367 : vector<16x32xf32>
    %cst_213 = arith.constant 9.99999996E-13 : f32
    %369 = vector.broadcast %cst_213 : f32 to vector<16x1xf32>
    %370 = arith.addf %366, %369 : vector<16x1xf32>
    %371 = math.rsqrt %370 : vector<16x1xf32>
    %372 = vector.broadcast %371 : vector<16x1xf32> to vector<16x32xf32>
    %373 = arith.mulf %368, %372 : vector<16x32xf32>
    %374 = vector.broadcast %208 : vector<1x32xf32> to vector<16x32xf32>
    %375 = arith.mulf %373, %374 : vector<16x32xf32>
    %376 = vector.broadcast %209 : vector<1x32xf32> to vector<16x32xf32>
    %377 = arith.addf %375, %376 : vector<16x32xf32>
    %378 = vector.extract_strided_slice %377 {offsets = [0, 0], sizes = [1, 32], strides = [1, 1]} : vector<16x32xf32> to vector<1x32xf32>
    %379 = vector.extract_strided_slice %377 {offsets = [8, 0], sizes = [1, 32], strides = [1, 1]} : vector<16x32xf32> to vector<1x32xf32>
    %380 = tpu.concatenate %378, %379 in 0 : vector<1x32xf32>, vector<1x32xf32> -> vector<2x32xf32>
    %c0_214 = arith.constant 0 : index
    %c0_215 = arith.constant 0 : index
    %381 = vector.load %arg10[%c0_214, %c0_215] : memref<2x32xf32, #tpu.memory_space<vmem>>, vector<2x32xf32>
    tpu.vector_store %arg10[%c0_214, %c0_215], %380 {strides = array<i32>} : memref<2x32xf32, #tpu.memory_space<vmem>>, vector<2x32xf32>,
    return
  }
}

</mosaic_0001>

<bundles_post_ra>
// kernel: encoder_only_forward.1
= control target key start
LH: loop header
LB: loop body
LE: loop exit
PB: predicated region body
PF: predicated region fallthrough
CT: control target
= control target key end

     0   :  { %vm39_vm0 = vcmask 261120   ;;  %s12055_s0 = inlined_call_operand.vmem [shape: f32[16,32], index: 0, kind: input, shape index: {}]   ;;  %s12056_s1 = inlined_call_operand.vmem [shape: f32[2,1,8], index: 1, kind: input, shape index: {}]   ;;  %s12057_s2 = inlined_call_operand.vmem [shape: f32[2,32], index: 2, kind: input, shape index: {}]   ;;  %s12058_s3 = inlined_call_operand.vmem [shape: f32[6,4,32,8], index: 3, kind: input, shape index: {}]   ;;  %s12059_s4 = inlined_call_operand.vmem [shape: f32[6,4,1,8], index: 4, kind: input, shape index: {}]   ;;  %s12060_s5 = inlined_call_operand.vmem [shape: f32[2,4,8,32], index: 5, kind: input, shape index: {}]   ;;  %s12061_s6 = inlined_call_operand.vmem [shape: f32[2,6,32], index: 6, kind: input, shape index: {}]   ;;  %s12062_s7 = inlined_call_operand.vmem [shape: f32[2,32,64], index: 7, kind: input, shape index: {}]   ;;  %s12063_s8 = inlined_call_operand.vmem [shape: f32[2,1,64], index: 8, kind: input, shape index: {}]   ;;  %s12064_s9 = inlined_call_operand.vmem [shape: f32[2,64,32], index: 9, kind: input, shape index: {}]   ;;  %s12065_s10 = inlined_call_operand.hbm [shape: f32[2,32], index: 10, kind: output, shape index: {}]  }
   0x1   :  { %v37_v0 = vld [vmem:[%s12055_s0] sm:$0xff] }
   0x2   :  { %15 = vsyncpa [#allocation3], 0  ;;  %v40_v1 = vsel %vm39_vm0, %v37_v0, 0.0  ;;  %v84_v7 = vld [vmem:[%s12058_s3] sm:$0xff]  ;;  %v85_v8 = vld [vmem:[%s12058_s3 + $0x8] sm:$0xff]  ;;  %v12070_v12 = vmov 0.0|0.0   ;;  %v67_v23 = vlaneseq }
   0x3   :  { %41 = vadd.xlane.f32.xlu0 %v40_v1  ;;  %v88_v9 = vld [vmem:[%s12058_s3 + $0x20] sm:$0xff]  ;;  %v10541_v10 = vpack.c.bf16 %v85_v8, %v84_v7  ;;  %v89_v11 = vld [vmem:[%s12058_s3 + $0x28] sm:$0xff]  ;;  %10012 = vmatprep.subr.bf16.mxu0 %v12070_v12  ;;  %v86_v14 = vld [vmem:[%s12058_s3 + $0x10] sm:$0xff]  ;;  %vm10469_vm1 = vmmov 0   ;;  %v10470_v20 = vmov 0.0   ;;  %vm1063_vm2 = vcmask 64512  }
   0x4   :  { %10018 = vmatprep.subr.bf16.mxu1 %v12070_v12  ;;  %v10548_v13 = vpack.c.bf16 %v89_v11, %v88_v9  ;;  %v87_v15 = vld [vmem:[%s12058_s3 + $0x18] sm:$0xff]  ;;  %v90_v16 = vld [vmem:[%s12058_s3 + $0x30] sm:$0xff]  ;;  %9192 = vmatprep.mubr.msk.f32.mxu0 %vm10469_vm1, %v10470_v20  ;;  %v10578_v25 = vshrl.u32 %v67_v23, 7  ;;  %v36_v27 = vld [vmem:[%s12057_s2] sm:$0x3]  ;;  %vm4116_vm3 = vcmask 523264  }
   0x5   :  { %10014 = vmatpush3.bf16.msra.mxu0 %v10541_v10  ;;  %v10563_v17 = vpack.c.bf16 %v87_v15, %v86_v14  ;;  %v91_v18 = vld [vmem:[%s12058_s3 + $0x38] sm:$0xff]  ;;  %9203 = vmatprep.mubr.msk.f32.mxu1 %vm10469_vm1, %v10470_v20  ;;  %v92_v31 = vld [vmem:[%s12058_s3 + $0x40] sm:$0xff]  ;;  %v93_v34 = vld [vmem:[%s12058_s3 + $0x48] sm:$0xff]  ;;  %vm8404_vm4 = vcmask 1040384   ;;  %vm8406_vm5 = vcmask 254976  }
   0x6   :  { %10020 = vmatpush3.bf16.msra.mxu1 %v10548_v13  ;;  %10015 = vmatprep.subr.bf16.mxu0 %v12070_v12  ;;  %v10568_v19 = vpack.c.bf16 %v91_v18, %v90_v16  ;;  %v10581_v26 = vsub.s32 0, %v10578_v25  ;;  %v10587_v28 = vsub.s32 1, %v10578_v25  ;;  %v96_v35 = vld [vmem:[%s12058_s3 + $0x60] sm:$0xff]  ;;  %v97_v36 = vld [vmem:[%s12058_s3 + $0x68] sm:$0xff]  ;;  %v10608_v38 = vpack.c.bf16 %v93_v34, %v92_v31  ;;  %v94_v40 = vld [vmem:[%s12058_s3 + $0x50] sm:$0xff] }
   0x7   :  { %10021 = vmatprep.subr.bf16.mxu1 %v12070_v12  ;;  %v10610_v39 = vpack.c.bf16 %v97_v36, %v96_v35  ;;  %v95_v42 = vld [vmem:[%s12058_s3 + $0x58] sm:$0xff]  ;;  %v98_v43 = vld [vmem:[%s12058_s3 + $0x70] sm:$0xff]  ;;  %v8430_v47 = vld [vmem:[%s12058_s3 + $0x80] sm:$0xff] }
   0x8   :  { %v10590_v29 = vrot.slane %v36_v27, %v10581_v26  ;;  %v10596_v33 = vrot.slane %v36_v27, %v10587_v28  ;;  %v99_v44 = vld [vmem:[%s12058_s3 + $0x78] sm:$0xff]  ;;  %v10633_v45 = vpack.c.bf16 %v95_v42, %v94_v40  ;;  %v8431_v48 = vld [vmem:[%s12058_s3 + $0x88] sm:$0xff]  ;;  %v8434_v49 = vld [vmem:[%s12058_s3 + $0xa0] sm:$0xff] }
   0x9   :  { %10017 = vmatpush3.bf16.msra.mxu0 %v10563_v17  ;;  %v10635_v46 = vpack.c.bf16 %v99_v44, %v98_v43  ;;  %v8435_v50 = vld [vmem:[%s12058_s3 + $0xa8] sm:$0xff]  ;;  %v10657_v51 = vpack.c.bf16 %v8431_v48, %v8430_v47  ;;  %v8432_v53 = vld [vmem:[%s12058_s3 + $0x90] sm:$0xff]  ;;  %v8433_v54 = vld [vmem:[%s12058_s3 + $0x98] sm:$0xff] }
   0xa   :  { %10023 = vmatpush3.bf16.msra.mxu1 %v10568_v19  ;;  %10024 = vmatprep.subr.bf16.mxu0 %v12070_v12  ;;  %v10659_v52 = vpack.c.bf16 %v8435_v50, %v8434_v49  ;;  %v8436_v55 = vld [vmem:[%s12058_s3 + $0xb0] sm:$0xff]  ;;  %v8437_v56 = vld [vmem:[%s12058_s3 + $0xb8] sm:$0xff]  ;;  %v10681_v57 = vpack.c.bf16 %v8433_v54, %v8432_v53  ;;  %v8438_v59 = vld [vmem:[%s12058_s3 + $0xc0] sm:$0xff] }
   0xb   :  { %10030 = vmatprep.subr.bf16.mxu1 %v12070_v12  ;;  %v10683_v58 = vpack.c.bf16 %v8437_v56, %v8436_v55  ;;  %v8439_v60 = vld [vmem:[%s12058_s3 + $0xc8] sm:$0xff]  ;;  %v8442_v61 = vld [vmem:[%s12058_s3 + $0xe0] sm:$0xff]  ;;  %v8440_v1 = vld [vmem:[%s12058_s3 + $0xd0] sm:$0xff] }
   0xc   :  { %v8443_v62 = vld [vmem:[%s12058_s3 + $0xe8] sm:$0xff]  ;;  %v10705_v63 = vpack.c.bf16 %v8439_v60, %v8438_v59  ;;  %v8458_v7 = vld [vmem:[%s12058_s3 + $0x100] sm:$0xff]  ;;  %v8460_v16 = vld [vmem:[%s12058_s3 + $0x110] sm:$0xff] }
   0xd   :  { %v8459_v8 = vld [vmem:[%s12058_s3 + $0x108] sm:$0xff]  ;;  %v8462_v9 = vld [vmem:[%s12058_s3 + $0x120] sm:$0xff]  ;;  %v8461_v18 = vld [vmem:[%s12058_s3 + $0x118] sm:$0xff] }
   0xe   :  { %v8463_v11 = vld [vmem:[%s12058_s3 + $0x128] sm:$0xff]  ;;  %v10753_v14 = vpack.c.bf16 %v8459_v8, %v8458_v7  ;;  %v10777_v23 = vpack.c.bf16 %v8461_v18, %v8460_v16  ;;  %v8466_v27 = vld [vmem:[%s12058_s3 + $0x140] sm:$0xff]  ;;  %v8468_v36 = vld [vmem:[%s12058_s3 + $0x150] sm:$0xff] }
   0xf   :  { %v10755_v15 = vpack.c.bf16 %v8463_v11, %v8462_v9  ;;  %v8470_v31 = vld [vmem:[%s12058_s3 + $0x160] sm:$0xff]  ;;  %v8472_v40 = vld [vmem:[%s12058_s3 + $0x170] sm:$0xff]  ;;  %v8473_v42 = vld [vmem:[%s12058_s3 + $0x178] sm:$0xff] }
  0x10   :  { %v10827_v44 = vpack.c.bf16 %v8473_v42, %v8472_v40  ;;  %v10850_v59 = vld [vmem:[%s12059_s4 + $0x4] ss:$0 sm:$0xff]  ;;  %v10869_v8 = vld [vmem:[%s12059_s4 + $0x1] ss:$0 sm:$0xff]  ;;  %v10876_v11 = vld [vmem:[%s12059_s4 + $0x6] ss:$0 sm:$0xff] }
  0x11   :  { %v10881_v16 = vld [vmem:[%s12059_s4 + $0x7] ss:$0 sm:$0xff] }
  0x90   :  { %v42_v2 = vpop.xlane.xlu0 %41 }
  0x91   :  { %v47_v3 = vmul.f32 0.03125, %v42_v2  ;;  %v8441_v2 = vld [vmem:[%s12058_s3 + $0xd8] sm:$0xff] }
  0x93   :  { %v49_v4 = vsub.f32 %v37_v0, %v47_v3  ;;  %v10707_v0 = vpack.c.bf16 %v8443_v62, %v8442_v61  ;;  %v8444_v3 = vld [vmem:[%s12058_s3 + $0xf0] sm:$0xff]  ;;  %v10855_v62 = vld [vmem:[%s12059_s4] ss:$0 sm:$0xff] }
  0x95   :  { %v51_v5 = vmul.f32 %v49_v4, %v49_v4 }
  0x97   :  { %v53_v6 = vsel %vm39_vm0, %v51_v5, 0.0  ;;  %v10729_v5 = vpack.c.bf16 %v8441_v2, %v8440_v1 }
  0x98   :  { %54 = vadd.xlane.f32.xlu0 %v53_v6 }
 0x125   :  { %v55_v21 = vpop.xlane.xlu0 %54 }
 0x126   :  { %v59_v22 = vmul.f32 0.03125, %v55_v21  ;;  %v8464_v21 = vld [vmem:[%s12058_s3 + $0x130] sm:$0xff] }
 0x128   :  { %v61_v24 = vadd.f32 1e-12, %v59_v22  ;;  %v8465_v22 = vld [vmem:[%s12058_s3 + $0x138] sm:$0xff] }
 0x12a   :  { %10352 = vrsqrt.f32 %v61_v24  ;;  %v10779_v24 = vpack.c.bf16 %v8465_v22, %v8464_v21 }
 0x134   :  { %v10353_v30 = vpop.eup %10352 }
 0x135   :  { %v65_v32 = vmul.f32 %v10353_v30, %v49_v4  ;;  %v8445_v4 = vld [vmem:[%s12058_s3 + $0xf8] sm:$0xff]  ;;  %v8467_v30 = vld [vmem:[%s12058_s3 + $0x148] sm:$0xff] }
 0x136   :  { %v10731_v6 = vpack.c.bf16 %v8445_v4, %v8444_v3  ;;  %v10801_v34 = vpack.c.bf16 %v8467_v30, %v8466_v27  ;;  %v10861_v4 = vld [vmem:[%s12059_s4 + $0x5] ss:$0 sm:$0xff]  ;;  %v10891_v27 = vld [vmem:[%s12059_s4 + $0x2] ss:$0 sm:$0xff]  ;;  %v10896_v30 = vld [vmem:[%s12059_s4 + $0x3] ss:$0 sm:$0xff] }
 0x137   :  { %v71_v37 = vmul.f32 %v10590_v29, %v65_v32  ;;  %v8471_v32 = vld [vmem:[%s12058_s3 + $0x168] sm:$0xff] }
 0x138   :  { %v10803_v35 = vpack.c.bf16 %v8471_v32, %v8470_v31 }
 0x139   :  { %v10616_v41 = vadd.f32 %v10596_v33, %v71_v37  ;;  %v8469_v37 = vld [vmem:[%s12058_s3 + $0x158] sm:$0xff] }
 0x13a   :  { %v10825_v43 = vpack.c.bf16 %v8469_v37, %v8468_v36 }
 0x13b   :  { %9193 = vmatmul.mubr.msk.f32.vlgmr.msra.gmra.mrb[0].mxu0 %vm39_vm0, %v10616_v41  ;;  %9204 = vmatmul.mubr.msk.f32.vlgmr.msra.gmra.mrb[0].mxu1 %vm39_vm0, %v10616_v41 }
 0x13c   :  { %10026 = vmatpush3.bf16.msra.mxu0 %v10608_v38  ;;  %10032 = vmatpush3.bf16.msra.mxu1 %v10610_v39 }
 0x13d   :  { %10027 = vmatprep.subr.bf16.mxu0 %v12070_v12  ;;  %10033 = vmatprep.subr.bf16.mxu1 %v12070_v12 }
 0x13e   :  { %9214 = vmatprep.mubr.msk.f32.mxu0 %vm10469_vm1, %v10470_v20  ;;  %9225 = vmatprep.mubr.msk.f32.mxu1 %vm10469_vm1, %v10470_v20 }
 0x140   :  { %10029 = vmatpush3.bf16.msra.mxu0 %v10633_v45  ;;  %10035 = vmatpush3.bf16.msra.mxu1 %v10635_v46 }
 0x141   :  { %10036 = vmatprep.subr.bf16.mxu0 %v12070_v12  ;;  %10042 = vmatprep.subr.bf16.mxu1 %v12070_v12 }
 0x143   :  { %9215 = vmatmul.mubr.msk.f32.vlgmr.msra.gmra.mrb[2].mxu0 %vm39_vm0, %v10616_v41  ;;  %9226 = vmatmul.mubr.msk.f32.vlgmr.msra.gmra.mrb[2].mxu1 %vm39_vm0, %v10616_v41 }
 0x144   :  { %10038 = vmatpush3.bf16.msra.mxu0 %v10657_v51  ;;  %10044 = vmatpush3.bf16.msra.mxu1 %v10659_v52 }
 0x145   :  { %10039 = vmatprep.subr.bf16.mxu0 %v12070_v12  ;;  %10045 = vmatprep.subr.bf16.mxu1 %v12070_v12 }
 0x146   :  { %9236 = vmatprep.mubr.msk.f32.mxu0 %vm10469_vm1, %v10470_v20  ;;  %9247 = vmatprep.mubr.msk.f32.mxu1 %vm10469_vm1, %v10470_v20 }
 0x148   :  { %10041 = vmatpush3.bf16.msra.mxu0 %v10681_v57  ;;  %10047 = vmatpush3.bf16.msra.mxu1 %v10683_v58 }
 0x149   :  { %10048 = vmatprep.subr.bf16.mxu0 %v12070_v12  ;;  %10054 = vmatprep.subr.bf16.mxu1 %v12070_v12 }
 0x14b   :  { %9237 = vmatmul.mubr.msk.f32.vlgmr.msra.gmra.mrb[4].mxu0 %vm39_vm0, %v10616_v41  ;;  %9248 = vmatmul.mubr.msk.f32.vlgmr.msra.gmra.mrb[4].mxu1 %vm39_vm0, %v10616_v41 }
 0x14c   :  { %10050 = vmatpush3.bf16.msra.mxu0 %v10705_v63  ;;  %10056 = vmatpush3.bf16.msra.mxu1 %v10707_v0 }
 0x14d   :  { %10051 = vmatprep.subr.bf16.mxu0 %v12070_v12  ;;  %10057 = vmatprep.subr.bf16.mxu1 %v12070_v12 }
 0x14e   :  { %9258 = vmatprep.mubr.msk.f32.mxu0 %vm10469_vm1, %v10470_v20  ;;  %9269 = vmatprep.mubr.msk.f32.mxu1 %vm10469_vm1, %v10470_v20 }
 0x150   :  { %10053 = vmatpush3.bf16.msra.mxu0 %v10729_v5  ;;  %10059 = vmatpush3.bf16.msra.mxu1 %v10731_v6 }
 0x151   :  { %10060 = vmatprep.subr.bf16.mxu0 %v12070_v12  ;;  %10066 = vmatprep.subr.bf16.mxu1 %v12070_v12 }
 0x153   :  { %9259 = vmatmul.mubr.msk.f32.vlgmr.msra.gmra.mrb[6].mxu0 %vm39_vm0, %v10616_v41  ;;  %9270 = vmatmul.mubr.msk.f32.vlgmr.msra.gmra.mrb[6].mxu1 %vm39_vm0, %v10616_v41 }
 0x154   :  { %10062 = vmatpush3.bf16.msra.mxu0 %v10753_v14  ;;  %10068 = vmatpush3.bf16.msra.mxu1 %v10755_v15 }
 0x155   :  { %10063 = vmatprep.subr.bf16.mxu0 %v12070_v12  ;;  %10069 = vmatprep.subr.bf16.mxu1 %v12070_v12 }
 0x156   :  { %9280 = vmatprep.mubr.msk.f32.mxu0 %vm10469_vm1, %v10470_v20  ;;  %9291 = vmatprep.mubr.msk.f32.mxu1 %vm10469_vm1, %v10470_v20 }
 0x158   :  { %10065 = vmatpush3.bf16.msra.mxu0 %v10777_v23  ;;  %10071 = vmatpush3.bf16.msra.mxu1 %v10779_v24 }
 0x159   :  { %10072 = vmatprep.subr.bf16.mxu0 %v12070_v12  ;;  %10078 = vmatprep.subr.bf16.mxu1 %v12070_v12 }
 0x15b   :  { %9281 = vmatmul.mubr.msk.f32.vlgmr.msra.gmra.mrb[8].mxu0 %vm39_vm0, %v10616_v41  ;;  %9292 = vmatmul.mubr.msk.f32.vlgmr.msra.gmra.mrb[8].mxu1 %vm39_vm0, %v10616_v41 }
 0x15c   :  { %10074 = vmatpush3.bf16.msra.mxu0 %v10801_v34  ;;  %10080 = vmatpush3.bf16.msra.mxu1 %v10803_v35 }
 0x15d   :  { %10075 = vmatprep.subr.bf16.mxu0 %v12070_v12  ;;  %10081 = vmatprep.subr.bf16.mxu1 %v12070_v12 }
 0x15e   :  { %9302 = vmatprep.mubr.msk.f32.mxu0 %vm10469_vm1, %v10470_v20  ;;  %9313 = vmatprep.mubr.msk.f32.mxu1 %vm10469_vm1, %v10470_v20 }
 0x160   :  { %10077 = vmatpush3.bf16.msra.mxu0 %v10825_v43  ;;  %10083 = vmatpush3.bf16.msra.mxu1 %v10827_v44 }
 0x161   :  { %9316 = vmatprep.subr.mxu0 %v10470_v20  ;;  %9331 = vmatprep.subr.mxu1 %v10470_v20 }
 0x163   :  { %9303 = vmatmul.mubr.msk.f32.vlgmr.msra.gmra.mrb[10].mxu0 %vm39_vm0, %v10616_v41  ;;  %9314 = vmatmul.mubr.msk.f32.vlgmr.msra.gmra.mrb[10].mxu1 %vm39_vm0, %v10616_v41 }
 0x164   :  { %9318 = vmatprep.mubr.msk.f32.mxu0 %vm10469_vm1, %v10470_v20  ;;  %9333 = vmatprep.mubr.msk.f32.mxu1 %vm10469_vm1, %v10470_v20 }
 0x20e   :  { %v197_v47 = vpop.f32.mrb[0].mxu0  ;;  %v267_v48 = vpop.f32.mrb[0].mxu1 }
 0x20f   :  { %v9194_v49 = vpop.f32.mrb[1].mxu0  ;;  %v9205_v50 = vpop.f32.mrb[1].mxu1  ;;  %v198_v7 = vadd.f32 %v10855_v62, %v197_v47  ;;  %v268_v18 = vadd.f32 %v10869_v8, %v267_v48  ;;  %v10914_v47 = vld [vmem:[%s12059_s4 + $0x8] ss:$0 sm:$0xff]  ;;  %v10919_v48 = vld [vmem:[%s12059_s4 + $0x9] ss:$0 sm:$0xff] }
 0x216   :  { %v337_v53 = vpop.f32.mrb[2].mxu0  ;;  %v407_v54 = vpop.f32.mrb[2].mxu1 }
 0x217   :  { %v9216_v55 = vpop.f32.mrb[3].mxu0  ;;  %v9227_v56 = vpop.f32.mrb[3].mxu1  ;;  %v338_v40 = vadd.f32 %v10891_v27, %v337_v53  ;;  %v408_v42 = vadd.f32 %v10896_v30, %v407_v54 }
 0x21e   :  { %v523_v60 = vpop.f32.mrb[4].mxu0  ;;  %v593_v61 = vpop.f32.mrb[4].mxu1 }
 0x21f   :  { %v524_v1 = vadd.f32 %v10850_v59, %v523_v60  ;;  %v9238_v2 = vpop.f32.mrb[5].mxu0  ;;  %v9249_v3 = vpop.f32.mrb[5].mxu1  ;;  %v594_v9 = vadd.f32 %v10861_v4, %v593_v61 }
 0x221   :  { %9317 = vmatpush3.xpose.msk.msra.mxu0 %vm1063_vm2, %v524_v1 }
 0x222   :  { %9321 = vmatprep.subr.mxu0 %v10470_v20 }
 0x224   :  { %9319 = vmatmul.mubr.msk.f32.vlgmr.msra.gmra.mrb[12].mxu0 %vm1063_vm2, %v198_v7  ;;  %v8494_v7 = vld [vmem:[%s12056_s1] ss:$0 sm:$0xff] }
 0x225   :  { %9322 = vmatpush3.xpose.msk.msra.mxu0 %vm1063_vm2, %v594_v9  ;;  %9323 = vmatprep.mubr.msk.f32.mxu0 %vm10469_vm1, %v10470_v20 }
 0x226   :  { %v663_v21 = vpop.f32.mrb[6].mxu0  ;;  %v733_v22 = vpop.f32.mrb[6].mxu1  ;;  %9326 = vmatprep.subr.mxu0 %v10470_v20 }
 0x227   :  { %v664_v31 = vadd.f32 %v10876_v11, %v663_v21  ;;  %v734_v32 = vadd.f32 %v10881_v16, %v733_v22  ;;  %v9260_v36 = vpop.f32.mrb[7].mxu0  ;;  %v9271_v37 = vpop.f32.mrb[7].mxu1 }
 0x228   :  { %9324 = vmatmul.mubr.msk.f32.vlgmr.msra.gmra.mrb[14].mxu0 %vm1063_vm2, %v268_v18 }
 0x229   :  { %9327 = vmatpush3.xpose.msk.msra.mxu0 %vm1063_vm2, %v664_v31  ;;  %9332 = vmatpush3.xpose.msk.msra.mxu1 %vm1063_vm2, %v734_v32 }
 0x22a   :  { %9328 = vmatprep.mubr.msk.f32.mxu0 %vm10469_vm1, %v10470_v20  ;;  %9336 = vmatprep.subr.mxu0 %v10470_v20 }
 0x22b   :  { %9341 = vmatprep.subr.mxu1 %v10470_v20 }
 0x22c   :  { %9329 = vmatmul.mubr.msk.f32.vlgmr.msra.gmra.mrb[16].mxu0 %vm1063_vm2, %v338_v40  ;;  %9334 = vmatmul.mubr.msk.f32.vlgmr.msra.gmra.mrb[12].mxu1 %vm1063_vm2, %v408_v42 }
 0x22d   :  { %9338 = vmatprep.mubr.msk.f32.mxu0 %vm10469_vm1, %v10470_v20  ;;  %9343 = vmatprep.mubr.msk.f32.mxu1 %vm10469_vm1, %v10470_v20 }
 0x22e   :  { %v849_v49 = vpop.f32.mrb[8].mxu0  ;;  %v919_v50 = vpop.f32.mrb[8].mxu1 }
 0x22f   :  { %v850_v53 = vadd.f32 %v10914_v47, %v849_v49  ;;  %v920_v54 = vadd.f32 %v10919_v48, %v919_v50  ;;  %v9282_v55 = vpop.f32.mrb[9].mxu0  ;;  %v9293_v56 = vpop.f32.mrb[9].mxu1 }
 0x231   :  { %9337 = vmatpush3.msra.mxu0 %v850_v53  ;;  %9342 = vmatpush3.msra.mxu1 %v920_v54 }
 0x232   :  { %9346 = vmatprep.subr.mxu0 %v10470_v20  ;;  %9351 = vmatprep.subr.mxu1 %v10470_v20 }
 0x236   :  { %v10929_v60 = vpop.f32.mrb[10].mxu0  ;;  %v10931_v61 = vpop.f32.mrb[10].mxu1 }
 0x237   :  { %v9304_v1 = vpop.f32.mrb[11].mxu0  ;;  %v9315_v2 = vpop.f32.mrb[11].mxu1 }
 0x2f7   :  { %v1136_v3 = vpop.f32.mrb[12].mxu0 }
 0x2f8   :  { %v1368_v9 = vmul.f32 0.35355338, %v1136_v3  ;;  %v9320_v18 = vpop.f32.mrb[13].mxu0 }
 0x2fa   :  { %v1379_v21 = vadd.f32 %v8494_v7, %v1368_v9 }
 0x2fb   :  { %v1212_v22 = vpop.f32.mrb[14].mxu0 }
 0x2fc   :  { %v1369_v31 = vmul.f32 0.35355338, %v1212_v22  ;;  %v9325_v32 = vpop.f32.mrb[15].mxu0  ;;  %v1383_v36 = vsel %vm1063_vm2, %v1379_v21, -inf }
 0x2fd   :  { %1384 = vmax.xlane.f32.xlu1 %v1383_v36 }
 0x2fe   :  { %v1380_v37 = vadd.f32 %v8494_v7, %v1369_v31 }
 0x2ff   :  { %v1288_v40 = vpop.f32.mrb[16].mxu0  ;;  %v1364_v42 = vpop.f32.mrb[12].mxu1 }
 0x300   :  { %v1370_v49 = vmul.f32 0.35355338, %v1288_v40  ;;  %v1371_v50 = vmul.f32 0.35355338, %v1364_v42  ;;  %v9330_v53 = vpop.f32.mrb[17].mxu0  ;;  %v9335_v54 = vpop.f32.mrb[13].mxu1 }
 0x301   :  { %v1386_v55 = vsel %vm1063_vm2, %v1380_v37, -inf }
 0x302   :  { %1387 = vmax.xlane.f32.xlu1 %v1386_v55  ;;  %v1382_v56 = vadd.f32 %v8494_v7, %v1371_v50  ;;  %v1381_v1 = vadd.f32 %v8494_v7, %v1370_v49 }
 0x304   :  { %v1392_v2 = vsel %vm1063_vm2, %v1382_v56, -inf  ;;  %v1389_v3 = vsel %vm1063_vm2, %v1381_v1, -inf }
 0x305   :  { %1390 = vmax.xlane.f32.xlu0 %v1389_v3 }
 0x306   :  { %1393 = vmax.xlane.f32.xlu1 %v1392_v2 }
 0x38a   :  { %v1385_v9 = vpop.xlane.xlu1 %1384 }
 0x38b   :  { %v1395_v18 = vsub.f32 %v1379_v21, %v1385_v9 }
 0x38d   :  { %v1399_v22 = vmul.f32 1.442695, %v1395_v18 }
 0x38f   :  { %10354 = vpow2.f32 %v1399_v22  ;;  %v1388_v31 = vpop.xlane.xlu1 %1387 }
 0x390   :  { %v1396_v32 = vsub.f32 %v1380_v37, %v1388_v31  ;;  %v38_v37 = vld [vmem:[%s12055_s0 + $0x8] sm:$0xff] }
 0x391   :  { %v43_v18 = vsel %vm39_vm0, %v38_v37, 0.0 }
 0x392   :  { %v1401_v36 = vmul.f32 1.442695, %v1396_v32  ;;  %v1391_v40 = vpop.xlane.xlu0 %1390 }
 0x393   :  { %v1394_v42 = vpop.xlane.xlu1 %1393  ;;  %v1397_v53 = vsub.f32 %v1381_v1, %v1391_v40  ;;  %v10951_v40 = vld [vmem:[%s12059_s4 + $0xa] ss:$0 sm:$0xff] }
 0x394   :  { %10356 = vpow2.f32 %v1401_v36  ;;  %v1398_v54 = vsub.f32 %v1382_v56, %v1394_v42 }
 0x395   :  { %v1403_v50 = vmul.f32 1.442695, %v1397_v53 }
 0x396   :  { %v1405_v7 = vmul.f32 1.442695, %v1398_v54 }
 0x397   :  { %10358 = vpow2.f32 %v1403_v50  ;;  %v990_v50 = vadd.f32 %v10951_v40, %v10929_v60 }
 0x398   :  { %10360 = vpow2.f32 %v1405_v7 }
 0x399   :  { %v10355_v49 = vpop.eup %10354 }
 0x39a   :  { %v1407_v55 = vsel %vm1063_vm2, %v10355_v49, 0.0 }
 0x39b   :  { %1408 = vadd.xlane.f32.xlu0 %v1407_v55  ;;  %v10959_v55 = vld [vmem:[%s12059_s4 + $0xb] ss:$0 sm:$0xff] }
 0x39c   :  { %v1060_v60 = vadd.f32 %v10959_v55, %v10931_v61  ;;  %v10980_v61 = vld [vmem:[%s12060_s5] sm:$0xff] }
 0x39e   :  { %v10357_v2 = vpop.eup %10356 }
 0x39f   :  { %v1410_v21 = vsel %vm1063_vm2, %v10357_v2, 0.0 }
 0x3a0   :  { %1411 = vadd.xlane.f32.xlu1 %v1410_v21 }
 0x3a1   :  { %v10359_v3 = vpop.eup %10358 }
 0x3a2   :  { %v10361_v1 = vpop.eup %10360  ;;  %v1413_v56 = vsel %vm1063_vm2, %v10359_v3, 0.0 }
 0x3a3   :  { %v1416_v9 = vsel %vm1063_vm2, %v10361_v1, 0.0  ;;  %1414 = vadd.xlane.f32.xlu0 %v1413_v56 }
 0x3a4   :  { %1417 = vadd.xlane.f32.xlu1 %v1416_v9 }
 0x3a7   :  { %44 = vadd.xlane.f32.xlu0 %v43_v18 }
 0x428   :  { %v1409_v22 = vpop.xlane.xlu0 %1408 }
 0x429   :  { %10362 = vrcp.f32 %v1409_v22 }
 0x42d   :  { %v1412_v31 = vpop.xlane.xlu1 %1411 }
 0x42e   :  { %10364 = vrcp.f32 %v1412_v31 }
 0x430   :  { %v1415_v32 = vpop.xlane.xlu0 %1414 }
 0x431   :  { %v1418_v36 = vpop.xlane.xlu1 %1417  ;;  %10366 = vrcp.f32 %v1415_v32 }
 0x432   :  { %10368 = vrcp.f32 %v1418_v36 }
 0x433   :  { %v10363_v42 = vpop.eup %10362 }
 0x434   :  { %v1423_v53 = vmul.f32 %v10363_v42, %v10355_v49  ;;  %v45_v54 = vpop.xlane.xlu0 %44  ;;  %v10994_v42 = vld [vmem:[%s12060_s5 + $0x10] sm:$0xff] }
 0x435   :  { %v48_v7 = vmul.f32 0.03125, %v45_v54 }
 0x436   :  { %9339 = vmatmul.mubr.msk.f32.vlgmr.msra.gmra.mrb[18].mxu0 %vm1063_vm2, %v1423_v53 }
 0x437   :  { %v50_v21 = vsub.f32 %v38_v37, %v48_v7  ;;  %9347 = vmatpush3.msra.mxu0 %v990_v50  ;;  %9348 = vmatprep.mubr.msk.f32.mxu0 %vm10469_vm1, %v10470_v20  ;;  %v11004_v7 = vld [vmem:[%s12060_s5 + $0x18] sm:$0xff] }
 0x438   :  { %v10365_v56 = vpop.eup %10364  ;;  %9356 = vmatprep.subr.mxu0 %v10470_v20 }
 0x439   :  { %v1424_v49 = vmul.f32 %v10365_v56, %v10357_v2  ;;  %v52_v9 = vmul.f32 %v50_v21, %v50_v21  ;;  %v10987_v2 = vld [vmem:[%s12060_s5 + $0x8] sm:$0xff] }
 0x43b   :  { %v10367_v18 = vpop.eup %10366  ;;  %9344 = vmatmul.mubr.msk.f32.vlgmr.msra.gmra.mrb[14].mxu1 %vm1063_vm2, %v1424_v49  ;;  %v56_v22 = vsel %vm39_vm0, %v52_v9, 0.0 }
 0x43c   :  { %v10369_v31 = vpop.eup %10368  ;;  %v1425_v32 = vmul.f32 %v10367_v18, %v10359_v3  ;;  %9352 = vmatpush3.msra.mxu1 %v1060_v60  ;;  %57 = vadd.xlane.f32.xlu1 %v56_v22 }
 0x43d   :  { %v1426_v37 = vmul.f32 %v10369_v31, %v10361_v1  ;;  %9353 = vmatprep.mubr.msk.f32.mxu1 %vm10469_vm1, %v10470_v20  ;;  %9361 = vmatprep.subr.mxu1 %v10470_v20 }
 0x43e   :  { %9349 = vmatmul.mubr.msk.f32.vlgmr.msra.gmra.mrb[20].mxu0 %vm1063_vm2, %v1425_v32 }
 0x43f   :  { %9354 = vmatmul.mubr.msk.f32.vlgmr.msra.gmra.mrb[16].mxu1 %vm1063_vm2, %v1426_v37  ;;  %9358 = vmatprep.mubr.msk.f32.mxu0 %vm10469_vm1, %v10470_v20 }
 0x440   :  { %9363 = vmatprep.mubr.msk.f32.mxu1 %vm10469_vm1, %v10470_v20  ;;  %9357 = vmatpush3.msra.mxu0 %v10980_v61 }
 0x441   :  { %9366 = vmatprep.subr.mxu0 %v10470_v20  ;;  %9362 = vmatpush3.msra.mxu1 %v10987_v2 }
 0x442   :  { %9371 = vmatprep.subr.mxu1 %v10470_v20 }
 0x4c9   :  { %v58_v3 = vpop.xlane.xlu1 %57 }
 0x4ca   :  { %v60_v1 = vmul.f32 0.03125, %v58_v3 }
 0x4cc   :  { %v62_v36 = vadd.f32 1e-12, %v60_v1 }
 0x4ce   :  { %10370 = vrsqrt.f32 %v62_v36 }
 0x4d8   :  { %v10371_v50 = vpop.eup %10370 }
 0x4d9   :  { %v66_v9 = vmul.f32 %v10371_v50, %v50_v21 }
 0x4db   :  { %v72_v32 = vmul.f32 %v10590_v29, %v66_v9 }
 0x4dd   :  { %v11024_v21 = vadd.f32 %v10596_v33, %v72_v32 }
 0x509   :  { %v1496_v53 = vpop.f32.mrb[18].mxu0 }
 0x50a   :  { %v9340_v54 = vpop.f32.mrb[19].mxu0  ;;  %9359 = vmatmul.mubr.msk.f32.vlgmr.msra.gmra.mrb[22].mxu0 %vm1063_vm2, %v1496_v53 }
 0x50b   :  { %9367 = vmatpush3.msra.mxu0 %v10994_v42  ;;  %9368 = vmatprep.mubr.msk.f32.mxu0 %vm10469_vm1, %v10470_v20 }
 0x50c   :  { %10084 = vmatprep.subr.bf16.mxu0 %v12070_v12 }
 0x50e   :  { %v1569_v56 = vpop.f32.mrb[14].mxu1 }
 0x50f   :  { %v9345_v49 = vpop.f32.mrb[15].mxu1  ;;  %9364 = vmatmul.mubr.msk.f32.vlgmr.msra.gmra.mrb[18].mxu1 %vm1063_vm2, %v1569_v56 }
 0x510   :  { %9372 = vmatpush3.msra.mxu1 %v11004_v7  ;;  %9373 = vmatprep.mubr.msk.f32.mxu1 %vm10469_vm1, %v10470_v20 }
 0x511   :  { %v1642_v60 = vpop.f32.mrb[20].mxu0  ;;  %10090 = vmatprep.subr.bf16.mxu1 %v12070_v12 }
 0x512   :  { %v1715_v18 = vpop.f32.mrb[16].mxu1  ;;  %v9350_v22 = vpop.f32.mrb[21].mxu0  ;;  %9369 = vmatmul.mubr.msk.f32.vlgmr.msra.gmra.mrb[24].mxu0 %vm1063_vm2, %v1642_v60 }
 0x513   :  { %v9355_v31 = vpop.f32.mrb[17].mxu1  ;;  %9374 = vmatmul.mubr.msk.f32.vlgmr.msra.gmra.mrb[20].mxu1 %vm1063_vm2, %v1715_v18  ;;  %10086 = vmatpush3.bf16.msra.mxu0 %v10541_v10 }
 0x514   :  { %10092 = vmatpush3.bf16.msra.mxu1 %v10548_v13  ;;  %10087 = vmatprep.subr.bf16.mxu0 %v12070_v12 }
 0x515   :  { %10093 = vmatprep.subr.bf16.mxu1 %v12070_v12  ;;  %9384 = vmatprep.mubr.msk.f32.mxu0 %vm10469_vm1, %v10470_v20 }
 0x516   :  { %9395 = vmatprep.mubr.msk.f32.mxu1 %vm10469_vm1, %v10470_v20 }
 0x517   :  { %10089 = vmatpush3.bf16.msra.mxu0 %v10563_v17 }
 0x518   :  { %10095 = vmatpush3.bf16.msra.mxu1 %v10568_v19  ;;  %10096 = vmatprep.subr.bf16.mxu0 %v12070_v12 }
 0x519   :  { %10102 = vmatprep.subr.bf16.mxu1 %v12070_v12 }
 0x51a   :  { %9385 = vmatmul.mubr.msk.f32.vlgmr.msra.gmra.mrb[26].mxu0 %vm39_vm0, %v11024_v21 }
 0x51b   :  { %9396 = vmatmul.mubr.msk.f32.vlgmr.msra.gmra.mrb[22].mxu1 %vm39_vm0, %v11024_v21  ;;  %10098 = vmatpush3.bf16.msra.mxu0 %v10608_v38 }
 0x51c   :  { %10104 = vmatpush3.bf16.msra.mxu1 %v10610_v39  ;;  %10099 = vmatprep.subr.bf16.mxu0 %v12070_v12 }
 0x51d   :  { %10105 = vmatprep.subr.bf16.mxu1 %v12070_v12  ;;  %9406 = vmatprep.mubr.msk.f32.mxu0 %vm10469_vm1, %v10470_v20 }
 0x51e   :  { %9417 = vmatprep.mubr.msk.f32.mxu1 %vm10469_vm1, %v10470_v20 }
 0x51f   :  { %10101 = vmatpush3.bf16.msra.mxu0 %v10633_v45 }
 0x520   :  { %10107 = vmatpush3.bf16.msra.mxu1 %v10635_v46  ;;  %10108 = vmatprep.subr.bf16.mxu0 %v12070_v12 }
 0x521   :  { %10114 = vmatprep.subr.bf16.mxu1 %v12070_v12 }
 0x522   :  { %9407 = vmatmul.mubr.msk.f32.vlgmr.msra.gmra.mrb[28].mxu0 %vm39_vm0, %v11024_v21 }
 0x523   :  { %9418 = vmatmul.mubr.msk.f32.vlgmr.msra.gmra.mrb[24].mxu1 %vm39_vm0, %v11024_v21  ;;  %10110 = vmatpush3.bf16.msra.mxu0 %v10657_v51 }
 0x524   :  { %10116 = vmatpush3.bf16.msra.mxu1 %v10659_v52  ;;  %10111 = vmatprep.subr.bf16.mxu0 %v12070_v12 }
 0x525   :  { %10117 = vmatprep.subr.bf16.mxu1 %v12070_v12  ;;  %9428 = vmatprep.mubr.msk.f32.mxu0 %vm10469_vm1, %v10470_v20 }
 0x526   :  { %9439 = vmatprep.mubr.msk.f32.mxu1 %vm10469_vm1, %v10470_v20 }
 0x527   :  { %10113 = vmatpush3.bf16.msra.mxu0 %v10681_v57 }
 0x528   :  { %10119 = vmatpush3.bf16.msra.mxu1 %v10683_v58  ;;  %10120 = vmatprep.subr.bf16.mxu0 %v12070_v12 }
 0x529   :  { %10126 = vmatprep.subr.bf16.mxu1 %v12070_v12 }
 0x52a   :  { %9429 = vmatmul.mubr.msk.f32.vlgmr.msra.gmra.mrb[30].mxu0 %vm39_vm0, %v11024_v21 }
 0x52b   :  { %9440 = vmatmul.mubr.msk.f32.vlgmr.msra.gmra.mrb[26].mxu1 %vm39_vm0, %v11024_v21  ;;  %10122 = vmatpush3.bf16.msra.mxu0 %v10705_v63 }
 0x52c   :  { %10128 = vmatpush3.bf16.msra.mxu1 %v10707_v0  ;;  %10123 = vmatprep.subr.bf16.mxu0 %v12070_v12 }
 0x52d   :  { %10129 = vmatprep.subr.bf16.mxu1 %v12070_v12  ;;  %9450 = vmatprep.mubr.msk.f32.mxu0 %vm10469_vm1, %v10470_v20 }
 0x52e   :  { %9461 = vmatprep.mubr.msk.f32.mxu1 %vm10469_vm1, %v10470_v20 }
 0x52f   :  { %10125 = vmatpush3.bf16.msra.mxu0 %v10729_v5 }
 0x530   :  { %10131 = vmatpush3.bf16.msra.mxu1 %v10731_v6  ;;  %10132 = vmatprep.subr.bf16.mxu0 %v12070_v12 }
 0x531   :  { %10138 = vmatprep.subr.bf16.mxu1 %v12070_v12 }
 0x532   :  { %9451 = vmatmul.mubr.msk.f32.vlgmr.msra.gmra.mrb[32].mxu0 %vm39_vm0, %v11024_v21 }
 0x533   :  { %9462 = vmatmul.mubr.msk.f32.vlgmr.msra.gmra.mrb[28].mxu1 %vm39_vm0, %v11024_v21  ;;  %10134 = vmatpush3.bf16.msra.mxu0 %v10753_v14 }
 0x534   :  { %10140 = vmatpush3.bf16.msra.mxu1 %v10755_v15  ;;  %10135 = vmatprep.subr.bf16.mxu0 %v12070_v12 }
 0x535   :  { %10141 = vmatprep.subr.bf16.mxu1 %v12070_v12  ;;  %9472 = vmatprep.mubr.msk.f32.mxu0 %vm10469_vm1, %v10470_v20 }
 0x536   :  { %9483 = vmatprep.mubr.msk.f32.mxu1 %vm10469_vm1, %v10470_v20 }
 0x537   :  { %10137 = vmatpush3.bf16.msra.mxu0 %v10777_v23 }
 0x538   :  { %10143 = vmatpush3.bf16.msra.mxu1 %v10779_v24  ;;  %10144 = vmatprep.subr.bf16.mxu0 %v12070_v12 }
 0x539   :  { %10150 = vmatprep.subr.bf16.mxu1 %v12070_v12 }
 0x53a   :  { %9473 = vmatmul.mubr.msk.f32.vlgmr.msra.gmra.mrb[34].mxu0 %vm39_vm0, %v11024_v21 }
 0x53b   :  { %9484 = vmatmul.mubr.msk.f32.vlgmr.msra.gmra.mrb[30].mxu1 %vm39_vm0, %v11024_v21  ;;  %10146 = vmatpush3.bf16.msra.mxu0 %v10801_v34 }
 0x53c   :  { %10152 = vmatpush3.bf16.msra.mxu1 %v10803_v35  ;;  %10147 = vmatprep.subr.bf16.mxu0 %v12070_v12 }
 0x53d   :  { %10153 = vmatprep.subr.bf16.mxu1 %v12070_v12  ;;  %9494 = vmatprep.mubr.msk.f32.mxu0 %vm10469_vm1, %v10470_v20 }
 0x53e   :  { %9505 = vmatprep.mubr.msk.f32.mxu1 %vm10469_vm1, %v10470_v20 }
 0x53f   :  { %10149 = vmatpush3.bf16.msra.mxu0 %v10825_v43 }
 0x540   :  { %10155 = vmatpush3.bf16.msra.mxu1 %v10827_v44  ;;  %9508 = vmatprep.subr.mxu0 %v10470_v20 }
 0x541   :  { %9513 = vmatprep.subr.mxu1 %v10470_v20 }
 0x542   :  { %9495 = vmatmul.mubr.msk.f32.vlgmr.msra.gmra.mrb[36].mxu0 %vm39_vm0, %v11024_v21 }
 0x543   :  { %9506 = vmatmul.mubr.msk.f32.vlgmr.msra.gmra.mrb[32].mxu1 %vm39_vm0, %v11024_v21  ;;  %9510 = vmatprep.mubr.msk.f32.mxu0 %vm10469_vm1, %v10470_v20 }
 0x544   :  { %9515 = vmatprep.mubr.msk.f32.mxu1 %vm10469_vm1, %v10470_v20 }
 0x5dd   :  { %v1788_v10 = vpop.f32.mrb[22].mxu0 }
 0x5de   :  { %v9360_v13 = vpop.f32.mrb[23].mxu0  ;;  %v2011_v19 = vsel %vm39_vm0, %v1788_v10, 0.0 }
 0x5e2   :  { %v1861_v17 = vpop.f32.mrb[18].mxu1 }
 0x5e3   :  { %v2012_v29 = vsel %vm39_vm0, %v1861_v17, 0.0  ;;  %v9365_v33 = vpop.f32.mrb[19].mxu1 }
 0x5e4   :  { %v2013_v38 = vadd.f32 %v2012_v29, %v2011_v19 }
 0x5e5   :  { %v1934_v39 = vpop.f32.mrb[24].mxu0 }
 0x5e6   :  { %v2014_v45 = vsel %vm39_vm0, %v1934_v39, 0.0  ;;  %v2007_v46 = vpop.f32.mrb[20].mxu1  ;;  %v9370_v51 = vpop.f32.mrb[25].mxu0 }
 0x5e7   :  { %v2015_v52 = vadd.f32 %v2014_v45, %v2013_v38  ;;  %v9375_v57 = vpop.f32.mrb[21].mxu1  ;;  %v2016_v58 = vsel %vm39_vm0, %v2007_v46, 0.0 }
 0x5e9   :  { %v11121_v63 = vadd.f32 %v2016_v58, %v2015_v52 }
 0x5ed   :  { %v2131_v0 = vpop.f32.mrb[26].mxu0 }
 0x5ee   :  { %v2201_v5 = vpop.f32.mrb[22].mxu1  ;;  %v9386_v6 = vpop.f32.mrb[27].mxu0  ;;  %v2132_v36 = vadd.f32 %v10855_v62, %v2131_v0 }
 0x5ef   :  { %v9397_v14 = vpop.f32.mrb[23].mxu1  ;;  %v2202_v53 = vadd.f32 %v10869_v8, %v2201_v5 }
 0x5f5   :  { %v2271_v15 = vpop.f32.mrb[28].mxu0 }
 0x5f6   :  { %v2341_v23 = vpop.f32.mrb[24].mxu1  ;;  %v9408_v24 = vpop.f32.mrb[29].mxu0  ;;  %v2272_v56 = vadd.f32 %v10891_v27, %v2271_v15 }
 0x5f7   :  { %v9419_v34 = vpop.f32.mrb[25].mxu1  ;;  %v2342_v49 = vadd.f32 %v10896_v30, %v2341_v23 }
 0x5fd   :  { %v2455_v35 = vpop.f32.mrb[30].mxu0 }
 0x5fe   :  { %v2456_v43 = vadd.f32 %v10850_v59, %v2455_v35  ;;  %v2525_v44 = vpop.f32.mrb[26].mxu1  ;;  %v9430_v37 = vpop.f32.mrb[31].mxu0 }
 0x5ff   :  { %v2526_v3 = vadd.f32 %v10861_v4, %v2525_v44  ;;  %v9441_v1 = vpop.f32.mrb[27].mxu1 }
 0x600   :  { %9509 = vmatpush3.xpose.msk.msra.mxu0 %vm1063_vm2, %v2456_v43 }
 0x601   :  { %9514 = vmatpush3.xpose.msk.msra.mxu1 %vm1063_vm2, %v2526_v3  ;;  %9518 = vmatprep.subr.mxu0 %v10470_v20 }
 0x602   :  { %9523 = vmatprep.subr.mxu1 %v10470_v20 }
 0x603   :  { %9511 = vmatmul.mubr.msk.f32.vlgmr.msra.gmra.mrb[38].mxu0 %vm1063_vm2, %v2132_v36 }
 0x604   :  { %9516 = vmatmul.mubr.msk.f32.vlgmr.msra.gmra.mrb[34].mxu1 %vm1063_vm2, %v2202_v53  ;;  %9520 = vmatprep.mubr.msk.f32.mxu0 %vm10469_vm1, %v10470_v20 }
 0x605   :  { %v2595_v59 = vpop.f32.mrb[32].mxu0  ;;  %9525 = vmatprep.mubr.msk.f32.mxu1 %vm10469_vm1, %v10470_v20 }
 0x606   :  { %v2596_v62 = vadd.f32 %v10876_v11, %v2595_v59  ;;  %v2665_v4 = vpop.f32.mrb[28].mxu1  ;;  %v9452_v54 = vpop.f32.mrb[33].mxu0 }
 0x607   :  { %v2666_v50 = vadd.f32 %v10881_v16, %v2665_v4  ;;  %v9463_v8 = vpop.f32.mrb[29].mxu1 }
 0x608   :  { %9519 = vmatpush3.xpose.msk.msra.mxu0 %vm1063_vm2, %v2596_v62  ;;  %v11171_v8 = vld [vmem:[%s12061_s6] sm:$0x3f] }
 0x609   :  { %9524 = vmatpush3.xpose.msk.msra.mxu1 %vm1063_vm2, %v2666_v50  ;;  %9528 = vmatprep.subr.mxu0 %v10470_v20 }
 0x60a   :  { %9533 = vmatprep.subr.mxu1 %v10470_v20 }
 0x60b   :  { %9521 = vmatmul.mubr.msk.f32.vlgmr.msra.gmra.mrb[40].mxu0 %vm1063_vm2, %v2272_v56  ;;  %v3948_v56 = vadd.f32 %v11121_v63, %v10616_v41 }
 0x60c   :  { %9526 = vmatmul.mubr.msk.f32.vlgmr.msra.gmra.mrb[36].mxu1 %vm1063_vm2, %v2342_v49  ;;  %9530 = vmatprep.mubr.msk.f32.mxu0 %vm10469_vm1, %v10470_v20  ;;  %v11177_v49 = vrot.slane %v11171_v8, %v10581_v26 }
 0x60d   :  { %v2779_v11 = vpop.f32.mrb[34].mxu0  ;;  %9535 = vmatprep.mubr.msk.f32.mxu1 %vm10469_vm1, %v10470_v20 }
 0x60e   :  { %v2780_v16 = vadd.f32 %v10914_v47, %v2779_v11  ;;  %v2849_v27 = vpop.f32.mrb[30].mxu1  ;;  %v9474_v9 = vpop.f32.mrb[35].mxu0  ;;  %v8576_v47 = vld [vmem:[%s12056_s1 + $0x1] ss:$0 sm:$0xff] }
 0x60f   :  { %v2850_v60 = vadd.f32 %v10919_v48, %v2849_v27  ;;  %v9485_v30 = vpop.f32.mrb[31].mxu1  ;;  %v3954_v9 = vadd.f32 %v11177_v49, %v3948_v56 }
 0x610   :  { %9529 = vmatpush3.msra.mxu0 %v2780_v16 }
 0x611   :  { %9534 = vmatpush3.msra.mxu1 %v2850_v60  ;;  %9538 = vmatprep.subr.mxu0 %v10470_v20  ;;  %v3956_v30 = vsel %vm39_vm0, %v3954_v9, 0.0 }
 0x612   :  { %9543 = vmatprep.subr.mxu1 %v10470_v20 }
 0x615   :  { %v11155_v18 = vpop.f32.mrb[36].mxu0 }
 0x616   :  { %v11157_v22 = vpop.f32.mrb[32].mxu1  ;;  %v9496_v31 = vpop.f32.mrb[37].mxu0 }
 0x617   :  { %v9507_v32 = vpop.f32.mrb[33].mxu1 }
 0x6d6   :  { %v3065_v10 = vpop.f32.mrb[38].mxu0 }
 0x6d7   :  { %v3297_v13 = vmul.f32 0.35355338, %v3065_v10  ;;  %v3141_v48 = vpop.f32.mrb[34].mxu1  ;;  %v9512_v17 = vpop.f32.mrb[39].mxu0 }
 0x6d8   :  { %v3298_v19 = vmul.f32 0.35355338, %v3141_v48  ;;  %v9517_v29 = vpop.f32.mrb[35].mxu1  ;;  %v2920_v17 = vadd.f32 %v10951_v40, %v11155_v18 }
 0x6d9   :  { %v3309_v33 = vadd.f32 %v8576_v47, %v3297_v13 }
 0x6da   :  { %v3310_v38 = vadd.f32 %v8576_v47, %v3298_v19 }
 0x6db   :  { %v3313_v39 = vsel %vm1063_vm2, %v3309_v33, -inf }
 0x6dc   :  { %v3316_v45 = vsel %vm1063_vm2, %v3310_v38, -inf  ;;  %3314 = vmax.xlane.f32.xlu0 %v3313_v39 }
 0x6dd   :  { %3317 = vmax.xlane.f32.xlu1 %v3316_v45 }
 0x6de   :  { %v3217_v46 = vpop.f32.mrb[40].mxu0 }
 0x6df   :  { %v3299_v51 = vmul.f32 0.35355338, %v3217_v46  ;;  %v3293_v52 = vpop.f32.mrb[36].mxu1  ;;  %v9522_v57 = vpop.f32.mrb[41].mxu0 }
 0x6e0   :  { %v3300_v58 = vmul.f32 0.35355338, %v3293_v52  ;;  %v9527_v0 = vpop.f32.mrb[37].mxu1 }
 0x6e1   :  { %v3311_v5 = vadd.f32 %v8576_v47, %v3299_v51 }
 0x6e2   :  { %v3312_v6 = vadd.f32 %v8576_v47, %v3300_v58 }
 0x6e3   :  { %v3319_v14 = vsel %vm1063_vm2, %v3311_v5, -inf }
 0x6e4   :  { %v3322_v15 = vsel %vm1063_vm2, %v3312_v6, -inf  ;;  %3320 = vmax.xlane.f32.xlu0 %v3319_v14 }
 0x6e5   :  { %3323 = vmax.xlane.f32.xlu1 %v3322_v15 }
 0x769   :  { %v3315_v23 = vpop.xlane.xlu0 %3314 }
 0x76a   :  { %v3318_v24 = vpop.xlane.xlu1 %3317  ;;  %v3325_v34 = vsub.f32 %v3309_v33, %v3315_v23  ;;  %v2990_v33 = vadd.f32 %v10959_v55, %v11157_v22 }
 0x76b   :  { %v3326_v35 = vsub.f32 %v3310_v38, %v3318_v24 }
 0x76c   :  { %v3329_v43 = vmul.f32 1.442695, %v3325_v34 }
 0x76d   :  { %v3331_v44 = vmul.f32 1.442695, %v3326_v35 }
 0x76e   :  { %10372 = vpow2.f32 %v3329_v43 }
 0x76f   :  { %10374 = vpow2.f32 %v3331_v44 }
 0x771   :  { %v3321_v37 = vpop.xlane.xlu0 %3320 }
 0x772   :  { %v3324_v3 = vpop.xlane.xlu1 %3323  ;;  %v3327_v1 = vsub.f32 %v3311_v5, %v3321_v37 }
 0x773   :  { %v3328_v36 = vsub.f32 %v3312_v6, %v3324_v3 }
 0x774   :  { %v3333_v53 = vmul.f32 1.442695, %v3327_v1 }
 0x775   :  { %v3335_v59 = vmul.f32 1.442695, %v3328_v36 }
 0x776   :  { %10376 = vpow2.f32 %v3333_v53 }
 0x777   :  { %10378 = vpow2.f32 %v3335_v59 }
 0x778   :  { %v10373_v62 = vpop.eup %10372 }
 0x779   :  { %v10375_v4 = vpop.eup %10374  ;;  %v3337_v54 = vsel %vm1063_vm2, %v10373_v62, 0.0 }
 0x77a   :  { %v3340_v50 = vsel %vm1063_vm2, %v10375_v4, 0.0  ;;  %3338 = vadd.xlane.f32.xlu0 %v3337_v54 }
 0x77b   :  { %3341 = vadd.xlane.f32.xlu1 %v3340_v50 }
 0x780   :  { %v10377_v11 = vpop.eup %10376 }
 0x781   :  { %v10379_v16 = vpop.eup %10378  ;;  %v3343_v27 = vsel %vm1063_vm2, %v10377_v11, 0.0 }
 0x782   :  { %v3346_v60 = vsel %vm1063_vm2, %v10379_v16, 0.0  ;;  %3344 = vadd.xlane.f32.xlu0 %v3343_v27 }
 0x783   :  { %3347 = vadd.xlane.f32.xlu1 %v3346_v60 }
 0x786   :  { %3957 = vadd.xlane.f32.xlu0 %v3956_v30 }
 0x807   :  { %v3339_v31 = vpop.xlane.xlu0 %3338 }
 0x808   :  { %v3342_v32 = vpop.xlane.xlu1 %3341  ;;  %10380 = vrcp.f32 %v3339_v31 }
 0x809   :  { %10382 = vrcp.f32 %v3342_v32 }
 0x80f   :  { %v3345_v41 = vpop.xlane.xlu0 %3344 }
 0x810   :  { %v3348_v63 = vpop.xlane.xlu1 %3347  ;;  %10384 = vrcp.f32 %v3345_v41 }
 0x811   :  { %10386 = vrcp.f32 %v3348_v63 }
 0x812   :  { %v10381_v10 = vpop.eup %10380 }
 0x813   :  { %v10383_v47 = vpop.eup %10382  ;;  %v3353_v13 = vmul.f32 %v10381_v10, %v10373_v62  ;;  %v3958_v48 = vpop.xlane.xlu0 %3957  ;;  %v3994_v10 = vld [vmem:[%s12062_s7] sm:$0xff] }
 0x814   :  { %v3354_v19 = vmul.f32 %v10383_v47, %v10375_v4  ;;  %v3962_v29 = vmul.f32 0.03125, %v3958_v48 }
 0x815   :  { %9531 = vmatmul.mubr.msk.f32.vlgmr.msra.gmra.mrb[42].mxu0 %vm1063_vm2, %v3353_v13  ;;  %v3997_v13 = vld [vmem:[%s12062_s7 + $0x18] sm:$0xff] }
 0x816   :  { %v3964_v38 = vsub.f32 %v3954_v9, %v3962_v29  ;;  %9536 = vmatmul.mubr.msk.f32.vlgmr.msra.gmra.mrb[38].mxu1 %vm1063_vm2, %v3354_v19  ;;  %9539 = vmatpush3.msra.mxu0 %v2920_v17 }
 0x817   :  { %9544 = vmatpush3.msra.mxu1 %v2990_v33  ;;  %9540 = vmatprep.mubr.msk.f32.mxu0 %vm10469_vm1, %v10470_v20 }
 0x818   :  { %v3966_v39 = vmul.f32 %v3964_v38, %v3964_v38  ;;  %9545 = vmatprep.mubr.msk.f32.mxu1 %vm10469_vm1, %v10470_v20  ;;  %9548 = vmatprep.subr.mxu0 %v10470_v20 }
 0x819   :  { %9553 = vmatprep.subr.mxu1 %v10470_v20 }
 0x81a   :  { %v10385_v40 = vpop.eup %10384  ;;  %v3968_v55 = vsel %vm39_vm0, %v3966_v39, 0.0 }
 0x81b   :  { %v10387_v18 = vpop.eup %10386  ;;  %v3355_v22 = vmul.f32 %v10385_v40, %v10377_v11  ;;  %3969 = vadd.xlane.f32.xlu0 %v3968_v55  ;;  %v4104_v55 = vld [vmem:[%s12064_s9] sm:$0xff] }
 0x81c   :  { %v3356_v45 = vmul.f32 %v10387_v18, %v10379_v16  ;;  %v4105_v18 = vld [vmem:[%s12064_s9 + $0x8] sm:$0xff] }
 0x81d   :  { %9541 = vmatmul.mubr.msk.f32.vlgmr.msra.gmra.mrb[44].mxu0 %vm1063_vm2, %v3355_v22  ;;  %v4106_v22 = vld [vmem:[%s12064_s9 + $0x10] sm:$0xff] }
 0x81e   :  { %9546 = vmatmul.mubr.msk.f32.vlgmr.msra.gmra.mrb[40].mxu1 %vm1063_vm2, %v3356_v45  ;;  %9549 = vmatpush3.msra.mxu0 %v10980_v61  ;;  %v11208_v61 = vrot.slane %v11171_v8, %v10587_v28  ;;  %v10164_v45 = vpack.c.bf16 %v4105_v18, %v4104_v55  ;;  %v8605_v55 = vld [vmem:[%s12058_s3 + $0x1d0] sm:$0xff] }
 0x81f   :  { %9550 = vmatprep.mubr.msk.f32.mxu0 %vm10469_vm1, %v10470_v20  ;;  %9554 = vmatpush3.msra.mxu1 %v10987_v2  ;;  %v12069_v2 = vsub.s32 2, %v10578_v25 }
 0x820   :  { %9555 = vmatprep.mubr.msk.f32.mxu1 %vm10469_vm1, %v10470_v20  ;;  %9558 = vmatprep.subr.mxu0 %v10470_v20 }
 0x821   :  { %9563 = vmatprep.subr.mxu1 %v10470_v20  ;;  %v3991_v23 = vrot.slane %v11171_v8, %v12069_v2 }
 0x8a8   :  { %v3970_v46 = vpop.xlane.xlu0 %3969 }
 0x8a9   :  { %v3974_v51 = vmul.f32 0.03125, %v3970_v46  ;;  %v4107_v46 = vld [vmem:[%s12064_s9 + $0x18] sm:$0xff] }
 0x8ab   :  { %v3976_v52 = vadd.f32 1e-12, %v3974_v51  ;;  %v10168_v51 = vpack.c.bf16 %v4107_v46, %v4106_v22  ;;  %v8606_v22 = vld [vmem:[%s12058_s3 + $0x1d8] sm:$0xff] }
 0x8ad   :  { %10388 = vrsqrt.f32 %v3976_v52  ;;  %v4108_v52 = vld [vmem:[%s12064_s9 + $0x20] sm:$0xff] }
 0x8b7   :  { %v10389_v57 = vpop.eup %10388 }
 0x8b8   :  { %v3980_v0 = vmul.f32 %v10389_v57, %v3964_v38  ;;  %v4109_v57 = vld [vmem:[%s12064_s9 + $0x28] sm:$0xff] }
 0x8ba   :  { %v3986_v15 = vmul.f32 %v11208_v61, %v3980_v0  ;;  %v4110_v0 = vld [vmem:[%s12064_s9 + $0x30] sm:$0xff] }
 0x8bc   :  { %v11223_v34 = vadd.f32 %v3991_v23, %v3986_v15 }
 0x8e8   :  { %v3426_v58 = vpop.f32.mrb[42].mxu0 }
 0x8e9   :  { %v3499_v5 = vpop.f32.mrb[38].mxu1  ;;  %v9532_v6 = vpop.f32.mrb[43].mxu0  ;;  %9551 = vmatmul.mubr.msk.f32.vlgmr.msra.gmra.mrb[46].mxu0 %vm1063_vm2, %v3426_v58  ;;  %v10172_v58 = vpack.c.bf16 %v4109_v57, %v4108_v52  ;;  %v12067_v57 = vsub.s32 4, %v10578_v25 }
 0x8ea   :  { %v9537_v14 = vpop.f32.mrb[39].mxu1  ;;  %9556 = vmatmul.mubr.msk.f32.vlgmr.msra.gmra.mrb[42].mxu1 %vm1063_vm2, %v3499_v5  ;;  %9559 = vmatpush3.msra.mxu0 %v10994_v42  ;;  %v8585_v6 = vld [vmem:[%s12063_s8] ss:$0 sm:$0xff] }
 0x8eb   :  { %9560 = vmatprep.mubr.msk.f32.mxu0 %vm10469_vm1, %v10470_v20  ;;  %9564 = vmatpush3.msra.mxu1 %v11004_v7 }
 0x8ec   :  { %9565 = vmatprep.mubr.msk.f32.mxu1 %vm10469_vm1, %v10470_v20  ;;  %10165 = vmatprep.subr.bf16.mxu1 %v10164_v45 }
 0x8f0   :  { %v3572_v24 = vpop.f32.mrb[44].mxu0 }
 0x8f1   :  { %v3645_v35 = vpop.f32.mrb[40].mxu1  ;;  %v9542_v43 = vpop.f32.mrb[45].mxu0  ;;  %9561 = vmatmul.mubr.msk.f32.vlgmr.msra.gmra.mrb[48].mxu0 %vm1063_vm2, %v3572_v24 }
 0x8f2   :  { %v9547_v42 = vpop.f32.mrb[41].mxu1  ;;  %9566 = vmatmul.mubr.msk.f32.vlgmr.msra.gmra.mrb[44].mxu1 %vm1063_vm2, %v3645_v35  ;;  %9576 = vmatprep.mubr.msk.f32.mxu0 %vm39_vm0, %v11223_v34 }
 0x8f3   :  { %10167 = vmatpush3.bf16.msra.mxu1 %v10164_v45  ;;  %v11332_v45 = vpack.c.bf16 %v8606_v22, %v8605_v55  ;;  %v8659_v55 = vld [vmem:[%s12058_s3 + $0x2c0] sm:$0xff]  ;;  %v8660_v22 = vld [vmem:[%s12058_s3 + $0x2c8] sm:$0xff] }
 0x8f4   :  { %10169 = vmatprep.subr.bf16.mxu1 %v10168_v51 }
 0x8f7   :  { %10171 = vmatpush3.bf16.msra.mxu1 %v10168_v51 }
 0x8f8   :  { %10173 = vmatprep.subr.bf16.mxu1 %v10172_v58 }
 0x8fb   :  { %10175 = vmatpush3.bf16.msra.mxu1 %v10172_v58  ;;  %v12066_v58 = vsub.s32 5, %v10578_v25 }
 0x9bc   :  { %v3718_v7 = vpop.f32.mrb[46].mxu0 }
 0x9bd   :  { %v3941_v44 = vsel %vm39_vm0, %v3718_v7, 0.0  ;;  %v3791_v37 = vpop.f32.mrb[42].mxu1  ;;  %v9552_v3 = vpop.f32.mrb[47].mxu0 }
 0x9be   :  { %v3942_v1 = vsel %vm39_vm0, %v3791_v37, 0.0  ;;  %v9557_v36 = vpop.f32.mrb[43].mxu1 }
 0x9bf   :  { %v3943_v53 = vadd.f32 %v3942_v1, %v3941_v44 }
 0x9c4   :  { %v3864_v59 = vpop.f32.mrb[48].mxu0 }
 0x9c5   :  { %v3944_v62 = vsel %vm39_vm0, %v3864_v59, 0.0  ;;  %v3937_v4 = vpop.f32.mrb[44].mxu1  ;;  %v9562_v54 = vpop.f32.mrb[49].mxu0 }
 0x9c6   :  { %v3945_v50 = vadd.f32 %v3944_v62, %v3943_v53  ;;  %v9567_v56 = vpop.f32.mrb[45].mxu1  ;;  %v3946_v11 = vsel %vm39_vm0, %v3937_v4, 0.0 }
 0x9c8   :  { %v3947_v16 = vadd.f32 %v3946_v11, %v3945_v50 }
 0x9ca   :  { %v3949_v27 = vadd.f32 %v3947_v16, %v11024_v21  ;;  %v3995_v21 = vld [vmem:[%s12062_s7 + $0x8] sm:$0xff] }
 0x9cb   :  { %v10156_v47 = vpack.c.bf16 %v3995_v21, %v3994_v10 }
 0x9cc   :  { %v3955_v9 = vadd.f32 %v11177_v49, %v3949_v27  ;;  %v3996_v49 = vld [vmem:[%s12062_s7 + $0x10] sm:$0xff]  ;;  %v12068_v27 = vsub.s32 3, %v10578_v25 }
 0x9cd   :  { %10157 = vmatprep.subr.bf16.mxu0 %v10156_v47  ;;  %v10160_v48 = vpack.c.bf16 %v3997_v13, %v3996_v49 }
 0x9ce   :  { %v3959_v60 = vsel %vm39_vm0, %v3955_v9, 0.0  ;;  %10159 = vmatpush3.bf16.msra.mxu0 %v10156_v47 }
 0x9cf   :  { %3960 = vadd.xlane.f32.xlu1 %v3959_v60  ;;  %10161 = vmatprep.subr.bf16.mxu0 %v10160_v48 }
 0x9d2   :  { %10163 = vmatpush3.bf16.msra.mxu0 %v10160_v48  ;;  %v8595_v48 = vld [vmem:[%s12058_s3 + $0x180] sm:$0xff] }
 0x9d3   :  { %10180 = vmatprep.subr.bf16.mxu0 %v12070_v12 }
 0xa5c   :  { %v3961_v30 = vpop.xlane.xlu1 %3960 }
 0xa5d   :  { %v3963_v31 = vmul.f32 0.03125, %v3961_v30 }
 0xa5f   :  { %v3965_v32 = vsub.f32 %v3955_v9, %v3963_v31  ;;  %v4115_v9 = vrot.slane %v11171_v8, %v12068_v27 }
 0xa61   :  { %v3967_v41 = vmul.f32 %v3965_v32, %v3965_v32 }
 0xa63   :  { %v3971_v63 = vsel %vm39_vm0, %v3967_v41, 0.0 }
 0xa64   :  { %3972 = vadd.xlane.f32.xlu1 %v3971_v63 }
 0xaf1   :  { %v3973_v17 = vpop.xlane.xlu1 %3972 }
 0xaf2   :  { %v3975_v19 = vmul.f32 0.03125, %v3973_v17  ;;  %v8596_v17 = vld [vmem:[%s12058_s3 + $0x188] sm:$0xff] }
 0xaf4   :  { %v3977_v29 = vadd.f32 1e-12, %v3975_v19  ;;  %v11307_v19 = vpack.c.bf16 %v8596_v17, %v8595_v48  ;;  %v8653_v48 = vld [vmem:[%s12058_s3 + $0x290] sm:$0xff]  ;;  %v8654_v17 = vld [vmem:[%s12058_s3 + $0x298] sm:$0xff] }
 0xaf6   :  { %10390 = vrsqrt.f32 %v3977_v29  ;;  %v8604_v29 = vld [vmem:[%s12058_s3 + $0x1c8] sm:$0xff] }
 0xb00   :  { %v10391_v33 = vpop.eup %10390 }
 0xb01   :  { %v3981_v38 = vmul.f32 %v10391_v33, %v3965_v32 }
 0xb03   :  { %v3987_v39 = vmul.f32 %v11208_v61, %v3981_v38  ;;  %v4111_v61 = vld [vmem:[%s12064_s9 + $0x38] sm:$0xff]  ;;  %v8597_v38 = vld [vmem:[%s12058_s3 + $0x190] sm:$0xff] }
 0xb04   :  { %v10176_v5 = vpack.c.bf16 %v4111_v61, %v4110_v0  ;;  %v11343_v0 = vrot.slane %v11171_v8, %v12067_v57 }
 0xb05   :  { %v11251_v40 = vadd.f32 %v3991_v23, %v3987_v39  ;;  %v8598_v39 = vld [vmem:[%s12058_s3 + $0x198] sm:$0xff] }
 0xb06   :  { %10177 = vmatprep.subr.bf16.mxu1 %v10176_v5  ;;  %v11327_v18 = vpack.c.bf16 %v8598_v39, %v8597_v38  ;;  %v8635_v38 = vld [vmem:[%s12058_s3 + $0x260] sm:$0xff]  ;;  %v8636_v39 = vld [vmem:[%s12058_s3 + $0x268] sm:$0xff] }
 0xb07   :  { %9577 = vmatmul.mubr.msk.f32.vlgmr.msra.gmra.mrb[50].mxu0 %vm39_vm0, %v11251_v40  ;;  %10179 = vmatpush3.bf16.msra.mxu1 %v10176_v5  ;;  %v8599_v5 = vld [vmem:[%s12058_s3 + $0x1a0] sm:$0xff] }
 0xb08   :  { %9606 = vmatprep.mubr.msk.f32.mxu0 %vm10469_vm1, %v10470_v20  ;;  %10192 = vmatprep.subr.bf16.mxu1 %v12070_v12 }
 0xb09   :  { %10182 = vmatpush3.bf16.msra.mxu0 %v11307_v19 }
 0xb0a   :  { %10183 = vmatprep.subr.bf16.mxu0 %v12070_v12 }
 0xb0d   :  { %10185 = vmatpush3.bf16.msra.mxu0 %v11327_v18 }
 0xb0e   :  { %10186 = vmatprep.subr.bf16.mxu0 %v12070_v12 }
 0xbda   :  { %v9578_v14 = vpop.f32.mrb[50].mxu0 }
 0xbdb   :  { %v4083_v15 = vadd.f32 %v9578_v14, %v8585_v6  ;;  %v4077_v23 = vpop.f32.mrb[51].mxu0 }
 0xbdc   :  { %v4078_v24 = vadd.f32 %v8585_v6, %v4077_v23  ;;  %v11351_v6 = vrot.slane %v11171_v8, %v12066_v58  ;;  %v8623_v23 = vld [vmem:[%s12058_s3 + $0x200] sm:$0xff]  ;;  %v8601_v8 = vld [vmem:[%s12058_s3 + $0x1b0] sm:$0xff] }
 0xbdd   :  { %v4089_v35 = vmul.f32 0.044715, %v4083_v15  ;;  %v4087_v56 = vmul.f32 0.5, %v4083_v15 }
 0xbde   :  { %v4088_v43 = vmul.f32 0.044715, %v4078_v24  ;;  %v4086_v54 = vmul.f32 0.5, %v4078_v24 }
 0xbdf   :  { %v4091_v42 = vmul.f32 %v4089_v35, %v4083_v15 }
 0xbe0   :  { %v4090_v7 = vmul.f32 %v4088_v43, %v4078_v24 }
 0xbe1   :  { %v4093_v44 = vmul.f32 %v4091_v42, %v4083_v15 }
 0xbe2   :  { %v4092_v37 = vmul.f32 %v4090_v7, %v4078_v24 }
 0xbe3   :  { %v4095_v3 = vadd.f32 %v4093_v44, %v4083_v15  ;;  %v8600_v15 = vld [vmem:[%s12058_s3 + $0x1a8] sm:$0xff]  ;;  %v8602_v44 = vld [vmem:[%s12058_s3 + $0x1b8] sm:$0xff] }
 0xbe4   :  { %v4094_v1 = vadd.f32 %v4092_v37, %v4078_v24  ;;  %v8624_v24 = vld [vmem:[%s12058_s3 + $0x208] sm:$0xff]  ;;  %v11363_v43 = vpack.c.bf16 %v8600_v15, %v8599_v5  ;;  %v8625_v37 = vld [vmem:[%s12058_s3 + $0x210] sm:$0xff] }
 0xbe5   :  { %v4097_v36 = vmul.f32 0.7978846, %v4095_v3  ;;  %v11365_v42 = vpack.c.bf16 %v8624_v24, %v8623_v23  ;;  %v8626_v3 = vld [vmem:[%s12058_s3 + $0x218] sm:$0xff]  ;;  %v8661_v5 = vld [vmem:[%s12058_s3 + $0x2d0] sm:$0xff]  ;;  %v8655_v24 = vld [vmem:[%s12058_s3 + $0x2a0] sm:$0xff] }
 0xbe6   :  { %v4096_v53 = vmul.f32 0.7978846, %v4094_v1  ;;  %v11388_v1 = vpack.c.bf16 %v8602_v44, %v8601_v8  ;;  %v8657_v44 = vld [vmem:[%s12058_s3 + $0x2b0] sm:$0xff] }
 0xbe7   :  { %10392 = vtanh.f32 %v4097_v36  ;;  %v11390_v36 = vpack.c.bf16 %v8626_v3, %v8625_v37  ;;  %v8658_v37 = vld [vmem:[%s12058_s3 + $0x2b8] sm:$0xff] }
 0xbe8   :  { %10394 = vtanh.f32 %v4096_v53  ;;  %v8607_v53 = vld [vmem:[%s12058_s3 + $0x1e0] sm:$0xff]  ;;  %v11565_v3 = vpack.c.bf16 %v8658_v37, %v8657_v44  ;;  %v11637_v44 = vld [vmem:[%s12059_s4 + $0x11] ss:$0 sm:$0xff]  ;;  %v11642_v37 = vld [vmem:[%s12059_s4 + $0x14] ss:$0 sm:$0xff] }
 0xbf1   :  { %v10393_v59 = vpop.eup %10392 }
 0xbf2   :  { %v10395_v62 = vpop.eup %10394  ;;  %v4101_v4 = vadd.f32 1.0, %v10393_v59  ;;  %v8608_v59 = vld [vmem:[%s12058_s3 + $0x1e8] sm:$0xff] }
 0xbf3   :  { %v4100_v50 = vadd.f32 1.0, %v10395_v62  ;;  %v8631_v62 = vld [vmem:[%s12058_s3 + $0x240] sm:$0xff] }
 0xbf4   :  { %v4103_v16 = vmul.f32 %v4101_v4, %v4087_v56  ;;  %v8632_v4 = vld [vmem:[%s12058_s3 + $0x248] sm:$0xff]  ;;  %v8609_v56 = vld [vmem:[%s12058_s3 + $0x1f0] sm:$0xff] }
 0xbf5   :  { %v4102_v11 = vmul.f32 %v4100_v50, %v4086_v54  ;;  %v11412_v54 = vpack.c.bf16 %v8608_v59, %v8607_v53  ;;  %v11414_v50 = vpack.c.bf16 %v8632_v4, %v8631_v62  ;;  %v8663_v53 = vld [vmem:[%s12058_s3 + $0x2e0] sm:$0xff]  ;;  %v8664_v59 = vld [vmem:[%s12058_s3 + $0x2e8] sm:$0xff]  ;;  %v8665_v4 = vld [vmem:[%s12058_s3 + $0x2f0] sm:$0xff] }
 0xbf6   :  { %v11579_v62 = vpack.c.bf16 %v8664_v59, %v8663_v53 }
 0xbf7   :  { %9595 = vmatprep.mubr.msk.f32.mxu1 %vm4116_vm3, %v4102_v11  ;;  %v8610_v11 = vld [vmem:[%s12058_s3 + $0x1f8] sm:$0xff] }
 0xbf8   :  { %9596 = vmatmul.mubr.msk.f32.vlgmr.msra.gmra.mrb[46].mxu1 %vm4116_vm3, %v4103_v16  ;;  %v8633_v16 = vld [vmem:[%s12058_s3 + $0x250] sm:$0xff] }
 0xbf9   :  { %9628 = vmatprep.mubr.msk.f32.mxu1 %vm10469_vm1, %v10470_v20 }
 0xccb   :  { %v9597_v60 = vpop.f32.mrb[46].mxu1 }
 0xccc   :  { %v11293_v30 = vadd.f32 %v9597_v60, %v4115_v9  ;;  %v4189_v31 = vpop.f32.mrb[47].mxu1  ;;  %v11436_v60 = vpack.c.bf16 %v8610_v11, %v8609_v56  ;;  %v8666_v56 = vld [vmem:[%s12058_s3 + $0x2f8] sm:$0xff] }
 0xccd   :  { %v4190_v32 = vadd.f32 %v4189_v31, %v4115_v9  ;;  %v8634_v9 = vld [vmem:[%s12058_s3 + $0x258] sm:$0xff]  ;;  %v11591_v11 = vpack.c.bf16 %v8666_v56, %v8665_v4  ;;  %v11649_v4 = vld [vmem:[%s12059_s4 + $0xd] ss:$0 sm:$0xff] }
 0xcce   :  { %v11438_v31 = vpack.c.bf16 %v8634_v9, %v8633_v16 }
 0xccf   :  { %v4198_v41 = vadd.f32 %v4190_v32, %v11223_v34  ;;  %v8603_v34 = vld [vmem:[%s12058_s3 + $0x1c0] sm:$0xff] }
 0xcd0   :  { %v11312_v33 = vpack.c.bf16 %v8604_v29, %v8603_v34  ;;  %v8627_v32 = vld [vmem:[%s12058_s3 + $0x220] sm:$0xff]  ;;  %v11486_v29 = vpack.c.bf16 %v8654_v17, %v8653_v48 }
 0xcd1   :  { %v4200_v63 = vsel %vm39_vm0, %v4198_v41, 0.0 }
 0xcd2   :  { %4201 = vadd.xlane.f32.xlu0 %v4200_v63  ;;  %10194 = vmatpush3.bf16.msra.mxu1 %v11312_v33  ;;  %v8651_v63 = vld [vmem:[%s12058_s3 + $0x280] sm:$0xff] }
 0xcd3   :  { %10195 = vmatprep.subr.bf16.mxu1 %v12070_v12 }
 0xcd6   :  { %10197 = vmatpush3.bf16.msra.mxu1 %v11332_v45 }
 0xcd7   :  { %10204 = vmatprep.subr.bf16.mxu1 %v12070_v12 }
 0xd5f   :  { %v4202_v10 = vpop.xlane.xlu0 %4201 }
 0xd60   :  { %v4206_v21 = vmul.f32 0.03125, %v4202_v10  ;;  %v8652_v10 = vld [vmem:[%s12058_s3 + $0x288] sm:$0xff] }
 0xd62   :  { %v4208_v47 = vsub.f32 %v4198_v41, %v4206_v21  ;;  %v8628_v41 = vld [vmem:[%s12058_s3 + $0x228] sm:$0xff] }
 0xd63   :  { %v11460_v21 = vpack.c.bf16 %v8628_v41, %v8627_v32 }
 0xd64   :  { %v4210_v49 = vmul.f32 %v4208_v47, %v4208_v47 }
 0xd66   :  { %v4212_v13 = vsel %vm39_vm0, %v4210_v49, 0.0  ;;  %v8629_v49 = vld [vmem:[%s12058_s3 + $0x230] sm:$0xff] }
 0xd67   :  { %4213 = vadd.xlane.f32.xlu1 %v4212_v13  ;;  %v8630_v13 = vld [vmem:[%s12058_s3 + $0x238] sm:$0xff] }
 0xd68   :  { %v11484_v34 = vpack.c.bf16 %v8630_v13, %v8629_v49  ;;  %v11610_v13 = vld [vmem:[%s12059_s4 + $0xc] ss:$0 sm:$0xff] }
 0xdf4   :  { %v4214_v46 = vpop.xlane.xlu1 %4213 }
 0xdf5   :  { %v4218_v51 = vmul.f32 0.03125, %v4214_v46  ;;  %v11508_v46 = vpack.c.bf16 %v8636_v39, %v8635_v38 }
 0xdf7   :  { %v4220_v52 = vadd.f32 1e-12, %v4218_v51  ;;  %v11510_v51 = vpack.c.bf16 %v8660_v22, %v8659_v55  ;;  %v11620_v55 = vld [vmem:[%s12059_s4 + $0x12] ss:$0 sm:$0xff] }
 0xdf9   :  { %10396 = vrsqrt.f32 %v4220_v52  ;;  %v8637_v52 = vld [vmem:[%s12058_s3 + $0x270] sm:$0xff] }
 0xe03   :  { %v10397_v61 = vpop.eup %10396 }
 0xe04   :  { %v4224_v14 = vmul.f32 %v10397_v61, %v4208_v47  ;;  %v11462_v47 = vpack.c.bf16 %v8652_v10, %v8651_v63  ;;  %v8638_v61 = vld [vmem:[%s12058_s3 + $0x278] sm:$0xff]  ;;  %v11605_v63 = vld [vmem:[%s12059_s4 + $0x10] ss:$0 sm:$0xff] }
 0xe05   :  { %v11532_v15 = vpack.c.bf16 %v8638_v61, %v8637_v52  ;;  %v11627_v61 = vld [vmem:[%s12059_s4 + $0xe] ss:$0 sm:$0xff] }
 0xe06   :  { %v4230_v35 = vmul.f32 %v11343_v0, %v4224_v14  ;;  %v8662_v14 = vld [vmem:[%s12058_s3 + $0x2d8] sm:$0xff] }
 0xe07   :  { %v11534_v23 = vpack.c.bf16 %v8662_v14, %v8661_v5 }
 0xe08   :  { %v11371_v7 = vadd.f32 %v11351_v6, %v4230_v35  ;;  %v8656_v35 = vld [vmem:[%s12058_s3 + $0x2a8] sm:$0xff] }
 0xe09   :  { %v11550_v8 = vpack.c.bf16 %v8656_v35, %v8655_v24 }
 0xe0a   :  { %9607 = vmatmul.mubr.msk.f32.vlgmr.msra.gmra.mrb[52].mxu0 %vm39_vm0, %v11371_v7  ;;  %9629 = vmatmul.mubr.msk.f32.vlgmr.msra.gmra.mrb[48].mxu1 %vm39_vm0, %v11371_v7 }
 0xe0b   :  { %10188 = vmatpush3.bf16.msra.mxu0 %v11363_v43  ;;  %10206 = vmatpush3.bf16.msra.mxu1 %v11365_v42 }
 0xe0c   :  { %10189 = vmatprep.subr.bf16.mxu0 %v12070_v12  ;;  %10207 = vmatprep.subr.bf16.mxu1 %v12070_v12 }
 0xe0d   :  { %9617 = vmatprep.mubr.msk.f32.mxu0 %vm10469_vm1, %v10470_v20  ;;  %9650 = vmatprep.mubr.msk.f32.mxu1 %vm10469_vm1, %v10470_v20 }
 0xe0f   :  { %10191 = vmatpush3.bf16.msra.mxu0 %v11388_v1  ;;  %10209 = vmatpush3.bf16.msra.mxu1 %v11390_v36 }
 0xe10   :  { %10198 = vmatprep.subr.bf16.mxu0 %v12070_v12  ;;  %10216 = vmatprep.subr.bf16.mxu1 %v12070_v12 }
 0xe12   :  { %9618 = vmatmul.mubr.msk.f32.vlgmr.msra.gmra.mrb[54].mxu0 %vm39_vm0, %v11371_v7  ;;  %9651 = vmatmul.mubr.msk.f32.vlgmr.msra.gmra.mrb[50].mxu1 %vm39_vm0, %v11371_v7 }
 0xe13   :  { %10200 = vmatpush3.bf16.msra.mxu0 %v11412_v54  ;;  %10218 = vmatpush3.bf16.msra.mxu1 %v11414_v50 }
 0xe14   :  { %10201 = vmatprep.subr.bf16.mxu0 %v12070_v12  ;;  %10219 = vmatprep.subr.bf16.mxu1 %v12070_v12 }
 0xe15   :  { %9639 = vmatprep.mubr.msk.f32.mxu0 %vm10469_vm1, %v10470_v20  ;;  %9672 = vmatprep.mubr.msk.f32.mxu1 %vm10469_vm1, %v10470_v20 }
 0xe17   :  { %10203 = vmatpush3.bf16.msra.mxu0 %v11436_v60  ;;  %10221 = vmatpush3.bf16.msra.mxu1 %v11438_v31 }
 0xe18   :  { %10210 = vmatprep.subr.bf16.mxu0 %v12070_v12  ;;  %10228 = vmatprep.subr.bf16.mxu1 %v12070_v12 }
 0xe1a   :  { %9640 = vmatmul.mubr.msk.f32.vlgmr.msra.gmra.mrb[56].mxu0 %vm39_vm0, %v11371_v7  ;;  %9673 = vmatmul.mubr.msk.f32.vlgmr.msra.gmra.mrb[52].mxu1 %vm39_vm0, %v11371_v7 }
 0xe1b   :  { %10212 = vmatpush3.bf16.msra.mxu0 %v11460_v21  ;;  %10230 = vmatpush3.bf16.msra.mxu1 %v11462_v47 }
 0xe1c   :  { %10213 = vmatprep.subr.bf16.mxu0 %v12070_v12  ;;  %10231 = vmatprep.subr.bf16.mxu1 %v12070_v12 }
 0xe1d   :  { %9661 = vmatprep.mubr.msk.f32.mxu0 %vm10469_vm1, %v10470_v20  ;;  %9694 = vmatprep.mubr.msk.f32.mxu1 %vm10469_vm1, %v10470_v20 }
 0xe1f   :  { %10215 = vmatpush3.bf16.msra.mxu0 %v11484_v34  ;;  %10233 = vmatpush3.bf16.msra.mxu1 %v11486_v29 }
 0xe20   :  { %10222 = vmatprep.subr.bf16.mxu0 %v12070_v12  ;;  %10240 = vmatprep.subr.bf16.mxu1 %v12070_v12 }
 0xe22   :  { %9662 = vmatmul.mubr.msk.f32.vlgmr.msra.gmra.mrb[58].mxu0 %vm39_vm0, %v11371_v7  ;;  %9695 = vmatmul.mubr.msk.f32.vlgmr.msra.gmra.mrb[54].mxu1 %vm39_vm0, %v11371_v7 }
 0xe23   :  { %10224 = vmatpush3.bf16.msra.mxu0 %v11508_v46  ;;  %10242 = vmatpush3.bf16.msra.mxu1 %v11510_v51 }
 0xe24   :  { %10225 = vmatprep.subr.bf16.mxu0 %v12070_v12  ;;  %10243 = vmatprep.subr.bf16.mxu1 %v12070_v12 }
 0xe25   :  { %9683 = vmatprep.mubr.msk.f32.mxu0 %vm10469_vm1, %v10470_v20  ;;  %9716 = vmatprep.mubr.msk.f32.mxu1 %vm10469_vm1, %v10470_v20 }
 0xe27   :  { %10227 = vmatpush3.bf16.msra.mxu0 %v11532_v15  ;;  %10245 = vmatpush3.bf16.msra.mxu1 %v11534_v23 }
 0xe28   :  { %10234 = vmatprep.subr.bf16.mxu0 %v12070_v12  ;;  %9730 = vmatprep.subr.mxu1 %v10470_v20 }
 0xe2a   :  { %9684 = vmatmul.mubr.msk.f32.vlgmr.msra.gmra.mrb[60].mxu0 %vm39_vm0, %v11371_v7  ;;  %9717 = vmatmul.mubr.msk.f32.vlgmr.msra.gmra.mrb[56].mxu1 %vm39_vm0, %v11371_v7 }
 0xe2b   :  { %10236 = vmatpush3.bf16.msra.mxu0 %v11550_v8  ;;  %9705 = vmatprep.mubr.msk.f32.mxu0 %vm10469_vm1, %v10470_v20 }
 0xe2c   :  { %10237 = vmatprep.subr.bf16.mxu0 %v12070_v12  ;;  %9732 = vmatprep.mubr.msk.f32.mxu1 %vm10469_vm1, %v10470_v20 }
 0xe2f   :  { %10239 = vmatpush3.bf16.msra.mxu0 %v11565_v3 }
 0xe30   :  { %10246 = vmatprep.subr.bf16.mxu0 %v12070_v12 }
 0xe32   :  { %9706 = vmatmul.mubr.msk.f32.vlgmr.msra.gmra.mrb[62].mxu0 %vm39_vm0, %v11371_v7 }
 0xe33   :  { %10248 = vmatpush3.bf16.msra.mxu0 %v11579_v62  ;;  %9727 = vmatprep.mubr.msk.f32.mxu0 %vm10469_vm1, %v10470_v20 }
 0xe34   :  { %10249 = vmatprep.subr.bf16.mxu0 %v12070_v12 }
 0xe37   :  { %10251 = vmatpush3.bf16.msra.mxu0 %v11591_v11 }
 0xe38   :  { %9740 = vmatprep.subr.mxu0 %v10470_v20 }
 0xe3a   :  { %9728 = vmatmul.mubr.msk.f32.vlgmr.msra.gmra.mrb[64].mxu0 %vm39_vm0, %v11371_v7 }
 0xe3b   :  { %9742 = vmatprep.mubr.msk.f32.mxu0 %vm10469_vm1, %v10470_v20 }
 0xedd   :  { %v4360_v16 = vpop.f32.mrb[52].mxu0  ;;  %v4500_v9 = vpop.f32.mrb[48].mxu1 }
 0xede   :  { %v9608_v32 = vpop.f32.mrb[53].mxu0  ;;  %v9630_v41 = vpop.f32.mrb[49].mxu1  ;;  %v4361_v39 = vadd.f32 %v11610_v13, %v4360_v16  ;;  %v4501_v35 = vadd.f32 %v11627_v61, %v4500_v9 }
 0xee5   :  { %v4430_v10 = vpop.f32.mrb[54].mxu0  ;;  %v4686_v49 = vpop.f32.mrb[50].mxu1 }
 0xee6   :  { %v4687_v48 = vadd.f32 %v11605_v63, %v4686_v49  ;;  %v9619_v17 = vpop.f32.mrb[55].mxu0  ;;  %v9652_v38 = vpop.f32.mrb[51].mxu1  ;;  %v4431_v41 = vadd.f32 %v11649_v4, %v4430_v10  ;;  %v11661_v49 = vld [vmem:[%s12059_s4 + $0x13] ss:$0 sm:$0xff]  ;;  %v11670_v10 = vld [vmem:[%s12059_s4 + $0xf] ss:$0 sm:$0xff] }
 0xee8   :  { %9731 = vmatpush3.xpose.msk.msra.mxu1 %vm1063_vm2, %v4687_v48 }
 0xee9   :  { %9735 = vmatprep.subr.mxu1 %v10470_v20 }
 0xeeb   :  { %9733 = vmatmul.mubr.msk.f32.vlgmr.msra.gmra.mrb[58].mxu1 %vm1063_vm2, %v4361_v39 }
 0xeec   :  { %9737 = vmatprep.mubr.msk.f32.mxu1 %vm10469_vm1, %v10470_v20 }
 0xeed   :  { %v4570_v22 = vpop.f32.mrb[56].mxu0  ;;  %v4826_v52 = vpop.f32.mrb[52].mxu1 }
 0xeee   :  { %v4827_v5 = vadd.f32 %v11620_v55, %v4826_v52  ;;  %v9641_v14 = vpop.f32.mrb[57].mxu0  ;;  %v9674_v24 = vpop.f32.mrb[53].mxu1 }
 0xeef   :  { %v11680_v14 = vld [vmem:[%s12059_s4 + $0x15] ss:$0 sm:$0xff] }
 0xef0   :  { %9741 = vmatpush3.xpose.msk.msra.mxu0 %vm1063_vm2, %v4827_v5  ;;  %v4571_v5 = vadd.f32 %v11670_v10, %v4570_v22 }
 0xef1   :  { %9750 = vmatprep.subr.mxu0 %v10470_v20 }
 0xef3   :  { %9743 = vmatmul.mubr.msk.f32.vlgmr.msra.gmra.mrb[66].mxu0 %vm1063_vm2, %v4501_v35 }
 0xef4   :  { %9752 = vmatprep.mubr.msk.f32.mxu0 %vm10469_vm1, %v10470_v20 }
 0xef5   :  { %v4756_v53 = vpop.f32.mrb[58].mxu0  ;;  %v5012_v59 = vpop.f32.mrb[54].mxu1 }
 0xef6   :  { %v4757_v56 = vadd.f32 %v11637_v44, %v4756_v53  ;;  %v5013_v16 = vadd.f32 %v11642_v37, %v5012_v59  ;;  %v9663_v9 = vpop.f32.mrb[59].mxu0  ;;  %v9696_v32 = vpop.f32.mrb[55].mxu1 }
 0xef8   :  { %9736 = vmatpush3.xpose.msk.msra.mxu1 %vm1063_vm2, %v4757_v56  ;;  %9751 = vmatpush3.msra.mxu0 %v5013_v16  ;;  %v8687_v16 = vld [vmem:[%s12056_s1] ss:$0 sm:$0xff] }
 0xef9   :  { %9745 = vmatprep.subr.mxu1 %v10470_v20  ;;  %9760 = vmatprep.subr.mxu0 %v10470_v20 }
 0xefb   :  { %9738 = vmatmul.mubr.msk.f32.vlgmr.msra.gmra.mrb[60].mxu1 %vm1063_vm2, %v4431_v41 }
 0xefc   :  { %9747 = vmatprep.mubr.msk.f32.mxu1 %vm10469_vm1, %v10470_v20 }
 0xefd   :  { %v4896_v48 = vpop.f32.mrb[60].mxu0  ;;  %v11665_v17 = vpop.f32.mrb[56].mxu1 }
 0xefe   :  { %v4897_v38 = vadd.f32 %v11661_v49, %v4896_v48  ;;  %v9685_v39 = vpop.f32.mrb[61].mxu0  ;;  %v9718_v52 = vpop.f32.mrb[57].mxu1 }
 0xf00   :  { %9746 = vmatpush3.xpose.msk.msra.mxu1 %vm1063_vm2, %v4897_v38 }
 0xf01   :  { %9755 = vmatprep.subr.mxu1 %v10470_v20 }
 0xf03   :  { %9748 = vmatmul.mubr.msk.f32.vlgmr.msra.gmra.mrb[62].mxu1 %vm1063_vm2, %v4571_v5 }
 0xf04   :  { %9757 = vmatprep.mubr.msk.f32.mxu1 %vm10469_vm1, %v10470_v20 }
 0xf05   :  { %v5082_v24 = vpop.f32.mrb[62].mxu0 }
 0xf06   :  { %v5083_v35 = vadd.f32 %v11680_v14, %v5082_v24  ;;  %v9707_v53 = vpop.f32.mrb[63].mxu0 }
 0xf08   :  { %9756 = vmatpush3.msra.mxu1 %v5083_v35 }
 0xf09   :  { %9765 = vmatprep.subr.mxu1 %v10470_v20 }
 0xf0d   :  { %v11686_v22 = vpop.f32.mrb[64].mxu0 }
 0xf0e   :  { %v9729_v59 = vpop.f32.mrb[65].mxu0 }
 0xfbe   :  { %v5298_v56 = vpop.f32.mrb[58].mxu1 }
 0xfbf   :  { %v5530_v9 = vmul.f32 0.35355338, %v5298_v56  ;;  %v9734_v32 = vpop.f32.mrb[59].mxu1 }
 0xfc1   :  { %v5541_v41 = vadd.f32 %v8687_v16, %v5530_v9 }
 0xfc3   :  { %v5545_v48 = vsel %vm1063_vm2, %v5541_v41, -inf }
 0xfc4   :  { %5546 = vmax.xlane.f32.xlu0 %v5545_v48 }
 0xfc6   :  { %v5450_v38 = vpop.f32.mrb[66].mxu0 }
 0xfc7   :  { %v5532_v39 = vmul.f32 0.35355338, %v5450_v38  ;;  %v9744_v52 = vpop.f32.mrb[67].mxu0 }
 0xfc9   :  { %v5543_v5 = vadd.f32 %v8687_v16, %v5532_v39 }
 0xfcb   :  { %v5551_v24 = vsel %vm1063_vm2, %v5543_v5, -inf }
 0xfcc   :  { %5552 = vmax.xlane.f32.xlu0 %v5551_v24 }
 0xfce   :  { %v5374_v35 = vpop.f32.mrb[60].mxu1 }
 0xfcf   :  { %v5531_v53 = vmul.f32 0.35355338, %v5374_v35  ;;  %v9739_v59 = vpop.f32.mrb[61].mxu1 }
 0xfd1   :  { %v5542_v58 = vadd.f32 %v8687_v16, %v5531_v53 }
 0xfd3   :  { %v5548_v57 = vsel %vm1063_vm2, %v5542_v58, -inf }
 0xfd4   :  { %5549 = vmax.xlane.f32.xlu1 %v5548_v57 }
 0xfd6   :  { %v5526_v56 = vpop.f32.mrb[62].mxu1 }
 0xfd7   :  { %v5533_v32 = vmul.f32 0.35355338, %v5526_v56  ;;  %v9749_v9 = vpop.f32.mrb[63].mxu1 }
 0xfd9   :  { %v5544_v27 = vadd.f32 %v8687_v16, %v5533_v32 }
 0xfdb   :  { %v5554_v48 = vsel %vm1063_vm2, %v5544_v27, -inf }
 0xfdc   :  { %5555 = vmax.xlane.f32.xlu1 %v5554_v48 }
0x1051   :  { %v5547_v38 = vpop.xlane.xlu0 %5546 }
0x1052   :  { %v5557_v52 = vsub.f32 %v5541_v41, %v5547_v38  ;;  %v4199_v41 = vadd.f32 %v11293_v30, %v11251_v40  ;;  %v11705_v40 = vld [vmem:[%s12059_s4 + $0x16] ss:$0 sm:$0xff] }
0x1054   :  { %v5561_v39 = vmul.f32 1.442695, %v5557_v52 }
0x1056   :  { %10398 = vpow2.f32 %v5561_v39 }
0x1059   :  { %v5553_v2 = vpop.xlane.xlu0 %5552 }
0x105a   :  { %v5559_v24 = vsub.f32 %v5543_v5, %v5553_v2 }
0x105c   :  { %v5565_v12 = vmul.f32 1.442695, %v5559_v24 }
0x105e   :  { %10400 = vpow2.f32 %v5565_v12  ;;  %v4203_v12 = vsel %vm39_vm0, %v4199_v41, 0.0 }
0x1060   :  { %v10399_v35 = vpop.eup %10398 }
0x1061   :  { %v5550_v53 = vpop.xlane.xlu1 %5549  ;;  %v5569_v59 = vsel %vm1063_vm2, %v10399_v35, 0.0 }
0x1062   :  { %v5558_v57 = vsub.f32 %v5542_v58, %v5550_v53  ;;  %5570 = vadd.xlane.f32.xlu0 %v5569_v59  ;;  %v5153_v59 = vadd.f32 %v11705_v40, %v11665_v17 }
0x1064   :  { %v5563_v56 = vmul.f32 1.442695, %v5558_v57 }
0x1066   :  { %10402 = vpow2.f32 %v5563_v56 }
0x1068   :  { %v10401_v16 = vpop.eup %10400 }
0x1069   :  { %v5556_v32 = vpop.xlane.xlu1 %5555  ;;  %v5575_v9 = vsel %vm1063_vm2, %v10401_v16, 0.0 }
0x106a   :  { %v5560_v48 = vsub.f32 %v5544_v27, %v5556_v32  ;;  %5576 = vadd.xlane.f32.xlu0 %v5575_v9 }
0x106c   :  { %v5567_v2 = vmul.f32 1.442695, %v5560_v48 }
0x106e   :  { %10404 = vpow2.f32 %v5567_v2  ;;  %4204 = vadd.xlane.f32.xlu0 %v4203_v12 }
0x1070   :  { %v10403_v5 = vpop.eup %10402 }
0x1071   :  { %v5572_v58 = vsel %vm1063_vm2, %v10403_v5, 0.0 }
0x1072   :  { %5573 = vadd.xlane.f32.xlu1 %v5572_v58 }
0x1078   :  { %v10405_v38 = vpop.eup %10404 }
0x1079   :  { %v5578_v52 = vsel %vm1063_vm2, %v10405_v38, 0.0 }
0x107a   :  { %5579 = vadd.xlane.f32.xlu1 %v5578_v52 }
0x10ef   :  { %v5571_v39 = vpop.xlane.xlu0 %5570 }
0x10f0   :  { %10406 = vrcp.f32 %v5571_v39 }
0x10f7   :  { %v5577_v24 = vpop.xlane.xlu0 %5576 }
0x10f8   :  { %10408 = vrcp.f32 %v5577_v24 }
0x10fa   :  { %v10407_v27 = vpop.eup %10406 }
0x10fb   :  { %v5585_v30 = vmul.f32 %v10407_v27, %v10399_v35  ;;  %v4205_v53 = vpop.xlane.xlu0 %4204 }
0x10fc   :  { %v4207_v57 = vmul.f32 0.03125, %v4205_v53 }
0x10fd   :  { %9753 = vmatmul.mubr.msk.f32.vlgmr.msra.gmra.mrb[68].mxu0 %vm1063_vm2, %v5585_v30  ;;  %v11748_v30 = vld [vmem:[%s12060_s5 + $0x30] sm:$0xff] }
0x10fe   :  { %v4209_v56 = vsub.f32 %v4199_v41, %v4207_v57  ;;  %9761 = vmatpush3.msra.mxu0 %v5153_v59  ;;  %9762 = vmatprep.mubr.msk.f32.mxu0 %vm10469_vm1, %v10470_v20  ;;  %v11720_v41 = vld [vmem:[%s12059_s4 + $0x17] ss:$0 sm:$0xff]  ;;  %v12072_v57 = vmov 0.0|0.0  }
0x10ff   :  { %v5574_v32 = vpop.xlane.xlu1 %5573  ;;  %9770 = vmatprep.subr.mxu0 %v10470_v20  ;;  %v5223_v52 = vadd.f32 %v11720_v41, %v11686_v22  ;;  %v11741_v22 = vld [vmem:[%s12060_s5 + $0x28] sm:$0xff] }
0x1100   :  { %10410 = vrcp.f32 %v5574_v32  ;;  %v4211_v9 = vmul.f32 %v4209_v56, %v4209_v56 }
0x1102   :  { %v10409_v48 = vpop.eup %10408  ;;  %v4215_v35 = vsel %vm39_vm0, %v4211_v9, 0.0 }
0x1103   :  { %v5587_v2 = vmul.f32 %v10409_v48, %v10401_v16  ;;  %4216 = vadd.xlane.f32.xlu1 %v4215_v35 }
0x1105   :  { %9763 = vmatmul.mubr.msk.f32.vlgmr.msra.gmra.mrb[70].mxu0 %vm1063_vm2, %v5587_v2 }
0x1106   :  { %9772 = vmatprep.mubr.msk.f32.mxu0 %vm10469_vm1, %v10470_v20 }
0x1107   :  { %v5580_v17 = vpop.xlane.xlu1 %5579 }
0x1108   :  { %10412 = vrcp.f32 %v5580_v17 }
0x110a   :  { %v10411_v12 = vpop.eup %10410 }
0x110b   :  { %v5586_v58 = vmul.f32 %v10411_v12, %v10403_v5  ;;  %v11734_v5 = vld [vmem:[%s12060_s5 + $0x20] sm:$0xff] }
0x110c   :  { %9771 = vmatpush3.msra.mxu0 %v11734_v5 }
0x110d   :  { %9758 = vmatmul.mubr.msk.f32.vlgmr.msra.gmra.mrb[64].mxu1 %vm1063_vm2, %v5586_v58  ;;  %9780 = vmatprep.subr.mxu0 %v10470_v20 }
0x110e   :  { %9766 = vmatpush3.msra.mxu1 %v5223_v52  ;;  %9767 = vmatprep.mubr.msk.f32.mxu1 %vm10469_vm1, %v10470_v20 }
0x110f   :  { %9775 = vmatprep.subr.mxu1 %v10470_v20 }
0x1112   :  { %v10413_v16 = vpop.eup %10412 }
0x1113   :  { %v5588_v39 = vmul.f32 %v10413_v16, %v10405_v38 }
0x1115   :  { %9768 = vmatmul.mubr.msk.f32.vlgmr.msra.gmra.mrb[66].mxu1 %vm1063_vm2, %v5588_v39 }
0x1116   :  { %9777 = vmatprep.mubr.msk.f32.mxu1 %vm10469_vm1, %v10470_v20  ;;  %9776 = vmatpush3.msra.mxu1 %v11741_v22 }
0x1117   :  { %9785 = vmatprep.subr.mxu1 %v10470_v20 }
0x1190   :  { %v4217_v38 = vpop.xlane.xlu1 %4216 }
0x1191   :  { %v4219_v24 = vmul.f32 0.03125, %v4217_v38 }
0x1193   :  { %v4221_v27 = vadd.f32 1e-12, %v4219_v24 }
0x1195   :  { %10414 = vrsqrt.f32 %v4221_v27 }
0x119f   :  { %v10415_v32 = vpop.eup %10414 }
0x11a0   :  { %v4225_v9 = vmul.f32 %v10415_v32, %v4209_v56  ;;  %v11769_v56 = vld [vmem:[%s12060_s5 + $0x38] sm:$0xff] }
0x11a2   :  { %v4231_v2 = vmul.f32 %v11343_v0, %v4225_v9 }
0x11a4   :  { %v11763_v17 = vadd.f32 %v11351_v6, %v4231_v2 }
0x11d0   :  { %v5658_v53 = vpop.f32.mrb[68].mxu0 }
0x11d1   :  { %v9754_v59 = vpop.f32.mrb[69].mxu0  ;;  %9773 = vmatmul.mubr.msk.f32.vlgmr.msra.gmra.mrb[72].mxu0 %vm1063_vm2, %v5658_v53 }
0x11d2   :  { %9781 = vmatpush3.msra.mxu0 %v11748_v30  ;;  %9782 = vmatprep.mubr.msk.f32.mxu0 %vm10469_vm1, %v10470_v20 }
0x11d3   :  { %10252 = vmatprep.subr.bf16.mxu0 %v12072_v57 }
0x11d8   :  { %v5804_v48 = vpop.f32.mrb[70].mxu0 }
0x11d9   :  { %v9764_v35 = vpop.f32.mrb[71].mxu0  ;;  %9783 = vmatmul.mubr.msk.f32.vlgmr.msra.gmra.mrb[74].mxu0 %vm1063_vm2, %v5804_v48 }
0x11da   :  { %10254 = vmatpush3.bf16.msra.mxu0 %v11307_v19  ;;  %9798 = vmatprep.mubr.msk.f32.mxu0 %vm10469_vm1, %v10470_v20 }
0x11db   :  { %10255 = vmatprep.subr.bf16.mxu0 %v12072_v57 }
0x11de   :  { %10257 = vmatpush3.bf16.msra.mxu0 %v11327_v18 }
0x11df   :  { %10264 = vmatprep.subr.bf16.mxu0 %v12072_v57 }
0x11e0   :  { %v5731_v19 = vpop.f32.mrb[64].mxu1 }
0x11e1   :  { %9799 = vmatmul.mubr.msk.f32.vlgmr.msra.gmra.mrb[76].mxu0 %vm39_vm0, %v11763_v17  ;;  %v9759_v12 = vpop.f32.mrb[65].mxu1  ;;  %9778 = vmatmul.mubr.msk.f32.vlgmr.msra.gmra.mrb[68].mxu1 %vm1063_vm2, %v5731_v19 }
0x11e2   :  { %10266 = vmatpush3.bf16.msra.mxu0 %v11312_v33  ;;  %9786 = vmatpush3.msra.mxu1 %v11769_v56 }
0x11e3   :  { %10267 = vmatprep.subr.bf16.mxu0 %v12072_v57  ;;  %9820 = vmatprep.mubr.msk.f32.mxu0 %vm10469_vm1, %v10470_v20 }
0x11e4   :  { %9787 = vmatprep.mubr.msk.f32.mxu1 %vm10469_vm1, %v10470_v20  ;;  %10258 = vmatprep.subr.bf16.mxu1 %v12072_v57 }
0x11e6   :  { %10269 = vmatpush3.bf16.msra.mxu0 %v11332_v45 }
0x11e7   :  { %10276 = vmatprep.subr.bf16.mxu0 %v12072_v57 }
0x11e8   :  { %v5877_v18 = vpop.f32.mrb[66].mxu1 }
0x11e9   :  { %9821 = vmatmul.mubr.msk.f32.vlgmr.msra.gmra.mrb[78].mxu0 %vm39_vm0, %v11763_v17  ;;  %v9769_v33 = vpop.f32.mrb[67].mxu1  ;;  %9788 = vmatmul.mubr.msk.f32.vlgmr.msra.gmra.mrb[70].mxu1 %vm1063_vm2, %v5877_v18 }
0x11ea   :  { %10260 = vmatpush3.bf16.msra.mxu1 %v11363_v43  ;;  %10278 = vmatpush3.bf16.msra.mxu0 %v11365_v42 }
0x11eb   :  { %10261 = vmatprep.subr.bf16.mxu1 %v12072_v57  ;;  %10279 = vmatprep.subr.bf16.mxu0 %v12072_v57 }
0x11ec   :  { %9809 = vmatprep.mubr.msk.f32.mxu1 %vm10469_vm1, %v10470_v20  ;;  %9842 = vmatprep.mubr.msk.f32.mxu0 %vm10469_vm1, %v10470_v20 }
0x11ee   :  { %10263 = vmatpush3.bf16.msra.mxu1 %v11388_v1  ;;  %10281 = vmatpush3.bf16.msra.mxu0 %v11390_v36 }
0x11ef   :  { %10270 = vmatprep.subr.bf16.mxu1 %v12072_v57  ;;  %10288 = vmatprep.subr.bf16.mxu0 %v12072_v57 }
0x11f1   :  { %9810 = vmatmul.mubr.msk.f32.vlgmr.msra.gmra.mrb[72].mxu1 %vm39_vm0, %v11763_v17  ;;  %9843 = vmatmul.mubr.msk.f32.vlgmr.msra.gmra.mrb[80].mxu0 %vm39_vm0, %v11763_v17 }
0x11f2   :  { %10272 = vmatpush3.bf16.msra.mxu1 %v11412_v54  ;;  %10290 = vmatpush3.bf16.msra.mxu0 %v11414_v50 }
0x11f3   :  { %10273 = vmatprep.subr.bf16.mxu1 %v12072_v57  ;;  %10291 = vmatprep.subr.bf16.mxu0 %v12072_v57 }
0x11f4   :  { %9831 = vmatprep.mubr.msk.f32.mxu1 %vm10469_vm1, %v10470_v20  ;;  %9864 = vmatprep.mubr.msk.f32.mxu0 %vm10469_vm1, %v10470_v20 }
0x11f6   :  { %10275 = vmatpush3.bf16.msra.mxu1 %v11436_v60  ;;  %10293 = vmatpush3.bf16.msra.mxu0 %v11438_v31 }
0x11f7   :  { %10282 = vmatprep.subr.bf16.mxu1 %v12072_v57  ;;  %10300 = vmatprep.subr.bf16.mxu0 %v12072_v57 }
0x11f9   :  { %9832 = vmatmul.mubr.msk.f32.vlgmr.msra.gmra.mrb[74].mxu1 %vm39_vm0, %v11763_v17  ;;  %9865 = vmatmul.mubr.msk.f32.vlgmr.msra.gmra.mrb[82].mxu0 %vm39_vm0, %v11763_v17 }
0x11fa   :  { %10284 = vmatpush3.bf16.msra.mxu1 %v11460_v21  ;;  %10302 = vmatpush3.bf16.msra.mxu0 %v11462_v47 }
0x11fb   :  { %10285 = vmatprep.subr.bf16.mxu1 %v12072_v57  ;;  %10303 = vmatprep.subr.bf16.mxu0 %v12072_v57 }
0x11fc   :  { %9853 = vmatprep.mubr.msk.f32.mxu1 %vm10469_vm1, %v10470_v20  ;;  %9886 = vmatprep.mubr.msk.f32.mxu0 %vm10469_vm1, %v10470_v20 }
0x11fe   :  { %10287 = vmatpush3.bf16.msra.mxu1 %v11484_v34  ;;  %10305 = vmatpush3.bf16.msra.mxu0 %v11486_v29 }
0x11ff   :  { %10294 = vmatprep.subr.bf16.mxu1 %v12072_v57  ;;  %10312 = vmatprep.subr.bf16.mxu0 %v12072_v57 }
0x1201   :  { %9854 = vmatmul.mubr.msk.f32.vlgmr.msra.gmra.mrb[76].mxu1 %vm39_vm0, %v11763_v17  ;;  %9887 = vmatmul.mubr.msk.f32.vlgmr.msra.gmra.mrb[84].mxu0 %vm39_vm0, %v11763_v17 }
0x1202   :  { %10296 = vmatpush3.bf16.msra.mxu1 %v11508_v46  ;;  %10314 = vmatpush3.bf16.msra.mxu0 %v11510_v51 }
0x1203   :  { %10297 = vmatprep.subr.bf16.mxu1 %v12072_v57  ;;  %10315 = vmatprep.subr.bf16.mxu0 %v12072_v57 }
0x1204   :  { %9875 = vmatprep.mubr.msk.f32.mxu1 %vm10469_vm1, %v10470_v20  ;;  %9908 = vmatprep.mubr.msk.f32.mxu0 %vm10469_vm1, %v10470_v20 }
0x1206   :  { %10299 = vmatpush3.bf16.msra.mxu1 %v11532_v15  ;;  %10317 = vmatpush3.bf16.msra.mxu0 %v11534_v23 }
0x1207   :  { %10306 = vmatprep.subr.bf16.mxu1 %v12072_v57  ;;  %9922 = vmatprep.subr.mxu0 %v10470_v20 }
0x1209   :  { %9876 = vmatmul.mubr.msk.f32.vlgmr.msra.gmra.mrb[78].mxu1 %vm39_vm0, %v11763_v17  ;;  %9909 = vmatmul.mubr.msk.f32.vlgmr.msra.gmra.mrb[86].mxu0 %vm39_vm0, %v11763_v17 }
0x120a   :  { %10308 = vmatpush3.bf16.msra.mxu1 %v11550_v8  ;;  %9897 = vmatprep.mubr.msk.f32.mxu1 %vm10469_vm1, %v10470_v20 }
0x120b   :  { %10309 = vmatprep.subr.bf16.mxu1 %v12072_v57  ;;  %9924 = vmatprep.mubr.msk.f32.mxu0 %vm10469_vm1, %v10470_v20 }
0x120e   :  { %10311 = vmatpush3.bf16.msra.mxu1 %v11565_v3 }
0x120f   :  { %10318 = vmatprep.subr.bf16.mxu1 %v12072_v57 }
0x1211   :  { %9898 = vmatmul.mubr.msk.f32.vlgmr.msra.gmra.mrb[80].mxu1 %vm39_vm0, %v11763_v17 }
0x1212   :  { %10320 = vmatpush3.bf16.msra.mxu1 %v11579_v62  ;;  %9919 = vmatprep.mubr.msk.f32.mxu1 %vm10469_vm1, %v10470_v20 }
0x1213   :  { %10321 = vmatprep.subr.bf16.mxu1 %v12072_v57 }
0x1216   :  { %10323 = vmatpush3.bf16.msra.mxu1 %v11591_v11 }
0x1217   :  { %9927 = vmatprep.subr.mxu1 %v10470_v20 }
0x1219   :  { %9920 = vmatmul.mubr.msk.f32.vlgmr.msra.gmra.mrb[82].mxu1 %vm39_vm0, %v11763_v17 }
0x121a   :  { %9929 = vmatprep.mubr.msk.f32.mxu1 %vm10469_vm1, %v10470_v20 }
0x12a4   :  { %v5950_v45 = vpop.f32.mrb[72].mxu0 }
0x12a5   :  { %v9774_v0 = vpop.f32.mrb[73].mxu0  ;;  %v6173_v36 = vsel %vm39_vm0, %v5950_v45, 0.0 }
0x12ac   :  { %v6096_v6 = vpop.f32.mrb[74].mxu0 }
0x12ad   :  { %v9784_v43 = vpop.f32.mrb[75].mxu0  ;;  %v6176_v21 = vsel %vm39_vm0, %v6096_v6, 0.0 }
0x12b4   :  { %v6293_v42 = vpop.f32.mrb[76].mxu0  ;;  %v6023_v1 = vpop.f32.mrb[68].mxu1 }
0x12b5   :  { %v6174_v54 = vsel %vm39_vm0, %v6023_v1, 0.0  ;;  %v9800_v50 = vpop.f32.mrb[77].mxu0  ;;  %v9779_v60 = vpop.f32.mrb[69].mxu1  ;;  %v6294_v52 = vadd.f32 %v11610_v13, %v6293_v42 }
0x12b6   :  { %v6175_v31 = vadd.f32 %v6174_v54, %v6173_v36 }
0x12b8   :  { %v6177_v47 = vadd.f32 %v6176_v21, %v6175_v31 }
0x12bc   :  { %v6433_v34 = vpop.f32.mrb[78].mxu0  ;;  %v6169_v29 = vpop.f32.mrb[70].mxu1 }
0x12bd   :  { %v6178_v46 = vsel %vm39_vm0, %v6169_v29, 0.0  ;;  %v9822_v51 = vpop.f32.mrb[79].mxu0  ;;  %v9789_v15 = vpop.f32.mrb[71].mxu1 }
0x12be   :  { %v11875_v23 = vadd.f32 %v6178_v46, %v6177_v47 }
0x12c4   :  { %v6363_v8 = vpop.f32.mrb[72].mxu1  ;;  %v6617_v3 = vpop.f32.mrb[80].mxu0 }
0x12c5   :  { %v6618_v62 = vadd.f32 %v11605_v63, %v6617_v3  ;;  %v9811_v11 = vpop.f32.mrb[73].mxu1  ;;  %v9844_v58 = vpop.f32.mrb[81].mxu0  ;;  %v6434_v63 = vadd.f32 %v11627_v61, %v6433_v34  ;;  %v6364_v61 = vadd.f32 %v11649_v4, %v6363_v8 }
0x12c7   :  { %9923 = vmatpush3.xpose.msk.msra.mxu0 %vm1063_vm2, %v6618_v62 }
0x12c8   :  { %9932 = vmatprep.subr.mxu0 %v10470_v20 }
0x12ca   :  { %9925 = vmatmul.mubr.msk.f32.vlgmr.msra.gmra.mrb[88].mxu0 %vm1063_vm2, %v6294_v52 }
0x12cb   :  { %9934 = vmatprep.mubr.msk.f32.mxu0 %vm10469_vm1, %v10470_v20 }
0x12cc   :  { %v6503_v16 = vpop.f32.mrb[74].mxu1  ;;  %v6757_v39 = vpop.f32.mrb[82].mxu0 }
0x12cd   :  { %v6758_v38 = vadd.f32 %v11620_v55, %v6757_v39  ;;  %v9833_v24 = vpop.f32.mrb[75].mxu1  ;;  %v9866_v27 = vpop.f32.mrb[83].mxu0  ;;  %v6504_v4 = vadd.f32 %v11670_v10, %v6503_v16  ;;  %v8789_v10 = vld [vmem:[%s12056_s1 + $0x1] ss:$0 sm:$0xff] }
0x12ce   :  { %v11924_v27 = vld [vmem:[%s12061_s6 + $0x8] sm:$0x3f] }
0x12cf   :  { %9933 = vmatpush3.xpose.msk.msra.mxu0 %vm1063_vm2, %v6758_v38 }
0x12d0   :  { %9942 = vmatprep.subr.mxu0 %v10470_v20 }
0x12d2   :  { %9935 = vmatmul.mubr.msk.f32.vlgmr.msra.gmra.mrb[90].mxu0 %vm1063_vm2, %v6434_v63 }
0x12d3   :  { %9944 = vmatprep.mubr.msk.f32.mxu0 %vm10469_vm1, %v10470_v20 }
0x12d4   :  { %v6687_v13 = vpop.f32.mrb[76].mxu1  ;;  %v6941_v53 = vpop.f32.mrb[84].mxu0 }
0x12d5   :  { %v6688_v59 = vadd.f32 %v11637_v44, %v6687_v13  ;;  %v6942_v57 = vadd.f32 %v11642_v37, %v6941_v53  ;;  %v9855_v55 = vpop.f32.mrb[77].mxu1  ;;  %v9888_v32 = vpop.f32.mrb[85].mxu0  ;;  %v8109_v13 = vadd.f32 %v11875_v23, %v11371_v7  ;;  %v11930_v53 = vrot.slane %v11924_v27, %v10581_v26 }
0x12d7   :  { %9928 = vmatpush3.xpose.msk.msra.mxu1 %vm1063_vm2, %v6688_v59  ;;  %9943 = vmatpush3.msra.mxu0 %v6942_v57  ;;  %v8115_v32 = vadd.f32 %v11930_v53, %v8109_v13 }
0x12d8   :  { %9937 = vmatprep.subr.mxu1 %v10470_v20  ;;  %9952 = vmatprep.subr.mxu0 %v10470_v20 }
0x12da   :  { %9930 = vmatmul.mubr.msk.f32.vlgmr.msra.gmra.mrb[84].mxu1 %vm1063_vm2, %v6364_v61 }
0x12db   :  { %9939 = vmatprep.mubr.msk.f32.mxu1 %vm10469_vm1, %v10470_v20 }
0x12dc   :  { %v6827_v9 = vpop.f32.mrb[78].mxu1  ;;  %v11900_v44 = vpop.f32.mrb[86].mxu0 }
0x12dd   :  { %v6828_v37 = vadd.f32 %v11661_v49, %v6827_v9  ;;  %v9877_v48 = vpop.f32.mrb[79].mxu1  ;;  %v9910_v35 = vpop.f32.mrb[87].mxu0 }
0x12df   :  { %9938 = vmatpush3.xpose.msk.msra.mxu1 %vm1063_vm2, %v6828_v37  ;;  %v8117_v37 = vsel %vm39_vm0, %v8115_v32, 0.0 }
0x12e0   :  { %9947 = vmatprep.subr.mxu1 %v10470_v20 }
0x12e2   :  { %9940 = vmatmul.mubr.msk.f32.vlgmr.msra.gmra.mrb[86].mxu1 %vm1063_vm2, %v6504_v4 }
0x12e3   :  { %9949 = vmatprep.mubr.msk.f32.mxu1 %vm10469_vm1, %v10470_v20 }
0x12e4   :  { %v7011_v2 = vpop.f32.mrb[80].mxu1 }
0x12e5   :  { %v7012_v19 = vadd.f32 %v11680_v14, %v7011_v2  ;;  %v9899_v12 = vpop.f32.mrb[81].mxu1 }
0x12e7   :  { %9948 = vmatpush3.msra.mxu1 %v7012_v19 }
0x12e8   :  { %9957 = vmatprep.subr.mxu1 %v10470_v20 }
0x12ec   :  { %v11911_v49 = vpop.f32.mrb[82].mxu1 }
0x12ed   :  { %v9921_v18 = vpop.f32.mrb[83].mxu1 }
0x12ee   :  { %v7082_v18 = vadd.f32 %v11705_v40, %v11900_v44 }
0x139d   :  { %v7227_v33 = vpop.f32.mrb[88].mxu0 }
0x139e   :  { %v7459_v45 = vmul.f32 0.35355338, %v7227_v33  ;;  %v9926_v0 = vpop.f32.mrb[89].mxu0 }
0x13a0   :  { %v7470_v6 = vadd.f32 %v8789_v10, %v7459_v45 }
0x13a2   :  { %v7474_v43 = vsel %vm1063_vm2, %v7470_v6, -inf }
0x13a3   :  { %7475 = vmax.xlane.f32.xlu0 %v7474_v43 }
0x13a5   :  { %v7379_v42 = vpop.f32.mrb[90].mxu0 }
0x13a6   :  { %v7461_v14 = vmul.f32 0.35355338, %v7379_v42  ;;  %v9936_v1 = vpop.f32.mrb[91].mxu0 }
0x13a7   :  { %v7152_v1 = vadd.f32 %v11720_v41, %v11911_v49 }
0x13a8   :  { %v7472_v36 = vadd.f32 %v8789_v10, %v7461_v14 }
0x13aa   :  { %v7480_v54 = vsel %vm1063_vm2, %v7472_v36, -inf }
0x13ab   :  { %7481 = vmax.xlane.f32.xlu0 %v7480_v54 }
0x13ad   :  { %v7303_v50 = vpop.f32.mrb[84].mxu1 }
0x13ae   :  { %v7460_v60 = vmul.f32 0.35355338, %v7303_v50  ;;  %v9931_v31 = vpop.f32.mrb[85].mxu1 }
0x13b0   :  { %v7471_v21 = vadd.f32 %v8789_v10, %v7460_v60 }
0x13b2   :  { %v7477_v47 = vsel %vm1063_vm2, %v7471_v21, -inf }
0x13b3   :  { %7478 = vmax.xlane.f32.xlu1 %v7477_v47 }
0x13b5   :  { %v7455_v34 = vpop.f32.mrb[86].mxu1 }
0x13b6   :  { %v7462_v29 = vmul.f32 0.35355338, %v7455_v34  ;;  %v9941_v46 = vpop.f32.mrb[87].mxu1  ;;  %v12073_v34 = vsub.s32 2, %v10578_v25 }
0x13b8   :  { %v7473_v51 = vadd.f32 %v8789_v10, %v7462_v29  ;;  %v8152_v29 = vrot.slane %v11924_v27, %v12073_v34 }
0x13ba   :  { %v7483_v15 = vsel %vm1063_vm2, %v7473_v51, -inf }
0x13bb   :  { %7484 = vmax.xlane.f32.xlu1 %v7483_v15 }
0x1430   :  { %v7476_v8 = vpop.xlane.xlu0 %7475 }
0x1431   :  { %v7486_v3 = vsub.f32 %v7470_v6, %v7476_v8 }
0x1433   :  { %v7490_v62 = vmul.f32 1.442695, %v7486_v3 }
0x1435   :  { %10416 = vpow2.f32 %v7490_v62 }
0x1438   :  { %v7482_v11 = vpop.xlane.xlu0 %7481 }
0x1439   :  { %v7488_v58 = vsub.f32 %v7472_v36, %v7482_v11 }
0x143b   :  { %v7494_v52 = vmul.f32 1.442695, %v7488_v58 }
0x143d   :  { %10418 = vpow2.f32 %v7494_v52 }
0x143f   :  { %v10417_v16 = vpop.eup %10416 }
0x1440   :  { %v7479_v39 = vpop.xlane.xlu1 %7478  ;;  %v7498_v38 = vsel %vm1063_vm2, %v10417_v16, 0.0 }
0x1441   :  { %v7487_v24 = vsub.f32 %v7471_v21, %v7479_v39  ;;  %7499 = vadd.xlane.f32.xlu0 %v7498_v38  ;;  %v8146_v21 = vrot.slane %v11924_v27, %v10587_v28 }
0x1443   :  { %v7492_v63 = vmul.f32 1.442695, %v7487_v24 }
0x1445   :  { %10420 = vpow2.f32 %v7492_v63 }
0x1447   :  { %v10419_v59 = vpop.eup %10418 }
0x1448   :  { %v7485_v57 = vpop.xlane.xlu1 %7484  ;;  %v7504_v55 = vsel %vm1063_vm2, %v10419_v59, 0.0 }
0x1449   :  { %v7489_v61 = vsub.f32 %v7473_v51, %v7485_v57  ;;  %7505 = vadd.xlane.f32.xlu0 %v7504_v55 }
0x144b   :  { %v7496_v9 = vmul.f32 1.442695, %v7489_v61 }
0x144d   :  { %10422 = vpow2.f32 %v7496_v9  ;;  %8118 = vadd.xlane.f32.xlu0 %v8117_v37 }
0x144f   :  { %v10421_v48 = vpop.eup %10420 }
0x1450   :  { %v7501_v7 = vsel %vm1063_vm2, %v10421_v48, 0.0 }
0x1451   :  { %7502 = vadd.xlane.f32.xlu1 %v7501_v7 }
0x1457   :  { %v10423_v26 = vpop.eup %10422 }
0x1458   :  { %v7507_v23 = vsel %vm1063_vm2, %v10423_v26, 0.0 }
0x1459   :  { %7508 = vadd.xlane.f32.xlu1 %v7507_v23 }
0x14ce   :  { %v7500_v35 = vpop.xlane.xlu0 %7499 }
0x14cf   :  { %10424 = vrcp.f32 %v7500_v35  ;;  %v8798_v35 = vld [vmem:[%s12062_s7 + $0x20] sm:$0xff] }
0x14d6   :  { %v7506_v4 = vpop.xlane.xlu0 %7505 }
0x14d7   :  { %10426 = vrcp.f32 %v7506_v4 }
0x14d9   :  { %v10425_v2 = vpop.eup %10424 }
0x14da   :  { %v7514_v19 = vmul.f32 %v10425_v2, %v10417_v16  ;;  %v8119_v12 = vpop.xlane.xlu0 %8118  ;;  %v8801_v2 = vld [vmem:[%s12062_s7 + $0x38] sm:$0xff] }
0x14db   :  { %v8123_v33 = vmul.f32 0.03125, %v8119_v12 }
0x14dc   :  { %9945 = vmatmul.mubr.msk.f32.vlgmr.msra.gmra.mrb[92].mxu0 %vm1063_vm2, %v7514_v19 }
0x14dd   :  { %v8125_v10 = vsub.f32 %v8115_v32, %v8123_v33  ;;  %9953 = vmatpush3.msra.mxu0 %v7082_v18  ;;  %9954 = vmatprep.mubr.msk.f32.mxu0 %vm10469_vm1, %v10470_v20 }
0x14de   :  { %v7503_v45 = vpop.xlane.xlu1 %7502  ;;  %9962 = vmatprep.subr.mxu0 %v10470_v20 }
0x14df   :  { %10428 = vrcp.f32 %v7503_v45  ;;  %v8127_v0 = vmul.f32 %v8125_v10, %v8125_v10 }
0x14e1   :  { %v10427_v6 = vpop.eup %10426  ;;  %v8129_v43 = vsel %vm39_vm0, %v8127_v0, 0.0 }
0x14e2   :  { %v7516_v42 = vmul.f32 %v10427_v6, %v10419_v59  ;;  %8130 = vadd.xlane.f32.xlu0 %v8129_v43  ;;  %v8806_v43 = vld [vmem:[%s12064_s9 + $0x40] sm:$0xff] }
0x14e4   :  { %9955 = vmatmul.mubr.msk.f32.vlgmr.msra.gmra.mrb[94].mxu0 %vm1063_vm2, %v7516_v42  ;;  %v8807_v42 = vld [vmem:[%s12064_s9 + $0x48] sm:$0xff] }
0x14e5   :  { %9963 = vmatpush3.msra.mxu0 %v11734_v5  ;;  %9964 = vmatprep.mubr.msk.f32.mxu0 %vm10469_vm1, %v10470_v20 }
0x14e6   :  { %v7509_v40 = vpop.xlane.xlu1 %7508  ;;  %9972 = vmatprep.subr.mxu0 %v10470_v20 }
0x14e7   :  { %10430 = vrcp.f32 %v7509_v40  ;;  %v10332_v40 = vpack.c.bf16 %v8807_v42, %v8806_v43 }
0x14e9   :  { %v10429_v44 = vpop.eup %10428 }
0x14ea   :  { %v7515_v14 = vmul.f32 %v10429_v44, %v10421_v48  ;;  %v8808_v44 = vld [vmem:[%s12064_s9 + $0x50] sm:$0xff] }
0x14ec   :  { %9950 = vmatmul.mubr.msk.f32.vlgmr.msra.gmra.mrb[88].mxu1 %vm1063_vm2, %v7515_v14  ;;  %v8809_v14 = vld [vmem:[%s12064_s9 + $0x58] sm:$0xff] }
0x14ed   :  { %9958 = vmatpush3.msra.mxu1 %v7152_v1  ;;  %9959 = vmatprep.mubr.msk.f32.mxu1 %vm10469_vm1, %v10470_v20  ;;  %v10336_v1 = vpack.c.bf16 %v8809_v14, %v8808_v44  ;;  %v12076_v14 = vsub.s32 5, %v10578_v25 }
0x14ee   :  { %9967 = vmatprep.subr.mxu1 %v10470_v20 }
0x14f1   :  { %v10431_v5 = vpop.eup %10430 }
0x14f2   :  { %v7517_v36 = vmul.f32 %v10431_v5, %v10423_v26  ;;  %v8810_v5 = vld [vmem:[%s12064_s9 + $0x60] sm:$0xff] }
0x14f4   :  { %9960 = vmatmul.mubr.msk.f32.vlgmr.msra.gmra.mrb[90].mxu1 %vm1063_vm2, %v7517_v36  ;;  %v8811_v36 = vld [vmem:[%s12064_s9 + $0x68] sm:$0xff] }
0x14f5   :  { %9968 = vmatpush3.msra.mxu1 %v11741_v22  ;;  %9969 = vmatprep.mubr.msk.f32.mxu1 %vm10469_vm1, %v10470_v20 }
0x14f6   :  { %9977 = vmatprep.subr.mxu1 %v10470_v20 }
0x156f   :  { %v8131_v41 = vpop.xlane.xlu0 %8130 }
0x1570   :  { %v8135_v49 = vmul.f32 0.03125, %v8131_v41  ;;  %v10340_v41 = vpack.c.bf16 %v8811_v36, %v8810_v5 }
0x1572   :  { %v8137_v54 = vadd.f32 1e-12, %v8135_v49  ;;  %v8812_v49 = vld [vmem:[%s12064_s9 + $0x70] sm:$0xff] }
0x1574   :  { %10432 = vrsqrt.f32 %v8137_v54  ;;  %v8813_v54 = vld [vmem:[%s12064_s9 + $0x78] sm:$0xff] }
0x157e   :  { %v10433_v50 = vpop.eup %10432 }
0x157f   :  { %v8141_v31 = vmul.f32 %v10433_v50, %v8125_v10  ;;  %v10344_v50 = vpack.c.bf16 %v8813_v54, %v8812_v49 }
0x1581   :  { %v8147_v22 = vmul.f32 %v8146_v21, %v8141_v31 }
0x1583   :  { %v11969_v51 = vadd.f32 %v8152_v29, %v8147_v22 }
0x15af   :  { %v7587_v60 = vpop.f32.mrb[92].mxu0 }
0x15b0   :  { %v9946_v47 = vpop.f32.mrb[93].mxu0  ;;  %9965 = vmatmul.mubr.msk.f32.vlgmr.msra.gmra.mrb[96].mxu0 %vm1063_vm2, %v7587_v60  ;;  %v8803_v60 = vld [vmem:[%s12063_s8 + $0x1] ss:$0 sm:$0xff]  ;;  %s10471_s8 = smov [#allocation2]  }
0x15b1   :  { %9973 = vmatpush3.msra.mxu0 %v11748_v30  ;;  %9974 = vmatprep.mubr.msk.f32.mxu0 %vm10469_vm1, %v10470_v20  ;;  %s8414_s9 = sshll.u32 %s10471_s8, 4  ;;  %s8415_s9 = int_to_ptr.vmem [resolvable:$true] %s8414_s9 }
0x15b2   :  { %s10444_s1 = scalar_lea.vmem %s8415_s9, 32  ;;  %p10449_p1 = scmp.lt.s32.totalorder %s8415_s9, %s8415_s9 }
0x15b3   :  { %p10445_p0 = scmp.ne.s32.totalorder %s8415_s9, %s10444_s1  ;;  %p10450_p2 = scmp.lt.s32.totalorder %s10444_s1, %s10444_s1 }
0x15b5   :  { %p10451_p3 = por %p10450_p2, %p10449_p1 }
0x15b7   :  { %v7733_v46 = vpop.f32.mrb[94].mxu0  ;;  %p10452_p4 = pnand %p10451_p3, %p10445_p0 }
0x15b8   :  { %v9956_v15 = vpop.f32.mrb[95].mxu0  ;;  %9975 = vmatmul.mubr.msk.f32.vlgmr.msra.gmra.mrb[98].mxu0 %vm1063_vm2, %v7733_v46 }
0x15b9   :  { %9990 = vmatprep.mubr.msk.f32.mxu0 %vm39_vm0, %v11969_v51 }
0x15bf   :  { %v7660_v28 = vpop.f32.mrb[88].mxu1 }
0x15c0   :  { %v9951_v8 = vpop.f32.mrb[89].mxu1  ;;  %9970 = vmatmul.mubr.msk.f32.vlgmr.msra.gmra.mrb[92].mxu1 %vm1063_vm2, %v7660_v28 }
0x15c1   :  { %9978 = vmatpush3.msra.mxu1 %v11769_v56  ;;  %9979 = vmatprep.mubr.msk.f32.mxu1 %vm10469_vm1, %v10470_v20 }
0x15c2   :  { %10333 = vmatprep.subr.bf16.mxu1 %v10332_v40 }
0x15c7   :  { %v7806_v30 = vpop.f32.mrb[90].mxu1 }
0x15c8   :  { %v9961_v3 = vpop.f32.mrb[91].mxu1  ;;  %9980 = vmatmul.mubr.msk.f32.vlgmr.msra.gmra.mrb[94].mxu1 %vm1063_vm2, %v7806_v30 }
0x15c9   :  { %10335 = vmatpush3.bf16.msra.mxu1 %v10332_v40 }
0x15ca   :  { %10337 = vmatprep.subr.bf16.mxu1 %v10336_v1 }
0x15cd   :  { %10339 = vmatpush3.bf16.msra.mxu1 %v10336_v1  ;;  %v8398_v1 = vrot.slane %v11924_v27, %v12076_v14 }
0x15ce   :  { %10341 = vmatprep.subr.bf16.mxu1 %v10340_v41 }
0x15d1   :  { %10343 = vmatpush3.bf16.msra.mxu1 %v10340_v41 }
0x15d2   :  { %10345 = vmatprep.subr.bf16.mxu1 %v10344_v50 }
0x15d5   :  { %10347 = vmatpush3.bf16.msra.mxu1 %v10344_v50 }
0x1683   :  { %v7879_v62 = vpop.f32.mrb[96].mxu0 }
0x1684   :  { %v9966_v11 = vpop.f32.mrb[97].mxu0  ;;  %v8102_v39 = vsel %vm39_vm0, %v7879_v62, 0.0 }
0x168b   :  { %v8025_v58 = vpop.f32.mrb[98].mxu0 }
0x168c   :  { %v9976_v52 = vpop.f32.mrb[99].mxu0  ;;  %v8105_v56 = vsel %vm39_vm0, %v8025_v58, 0.0 }
0x1693   :  { %v7952_v16 = vpop.f32.mrb[92].mxu1 }
0x1694   :  { %v8103_v38 = vsel %vm39_vm0, %v7952_v16, 0.0  ;;  %v9971_v24 = vpop.f32.mrb[93].mxu1 }
0x1695   :  { %v8104_v63 = vadd.f32 %v8103_v38, %v8102_v39 }
0x1697   :  { %v8106_v13 = vadd.f32 %v8105_v56, %v8104_v63 }
0x169b   :  { %v8098_v59 = vpop.f32.mrb[94].mxu1 }
0x169c   :  { %v8107_v20 = vsel %vm39_vm0, %v8098_v59, 0.0  ;;  %v9981_v57 = vpop.f32.mrb[95].mxu1 }
0x169d   :  { %v8108_v55 = vadd.f32 %v8107_v20, %v8106_v13  ;;  %v12074_v13 = vsub.s32 3, %v10578_v25 }
0x169f   :  { %v8110_v32 = vadd.f32 %v8108_v55, %v11763_v17  ;;  %v8799_v17 = vld [vmem:[%s12062_s7 + $0x28] sm:$0xff]  ;;  %v8279_v59 = vrot.slane %v11924_v27, %v12074_v13 }
0x16a0   :  { %v10324_v4 = vpack.c.bf16 %v8799_v17, %v8798_v35 }
0x16a1   :  { %v8116_v61 = vadd.f32 %v11930_v53, %v8110_v32  ;;  %v8800_v53 = vld [vmem:[%s12062_s7 + $0x30] sm:$0xff] }
0x16a2   :  { %10325 = vmatprep.subr.bf16.mxu0 %v10324_v4  ;;  %v10328_v19 = vpack.c.bf16 %v8801_v2, %v8800_v53 }
0x16a3   :  { %v8120_v9 = vsel %vm39_vm0, %v8116_v61, 0.0  ;;  %10327 = vmatpush3.bf16.msra.mxu0 %v10324_v4 }
0x16a4   :  { %8121 = vadd.xlane.f32.xlu1 %v8120_v9  ;;  %10329 = vmatprep.subr.bf16.mxu0 %v10328_v19 }
0x16a7   :  { %10331 = vmatpush3.bf16.msra.mxu0 %v10328_v19 }
0x1731   :  { %v8122_v37 = vpop.xlane.xlu1 %8121 }
0x1732   :  { %v8124_v48 = vmul.f32 0.03125, %v8122_v37 }
0x1734   :  { %v8126_v7 = vsub.f32 %v8116_v61, %v8124_v48 }
0x1736   :  { %v8128_v26 = vmul.f32 %v8126_v7, %v8126_v7 }
0x1738   :  { %v8132_v23 = vsel %vm39_vm0, %v8128_v26, 0.0 }
0x1739   :  { %8133 = vadd.xlane.f32.xlu1 %v8132_v23 }
0x17c6   :  { %v8134_v12 = vpop.xlane.xlu1 %8133 }
0x17c7   :  { %v8136_v18 = vmul.f32 0.03125, %v8134_v12 }
0x17c9   :  { %v8138_v33 = vadd.f32 1e-12, %v8136_v18 }
0x17cb   :  { %10434 = vrsqrt.f32 %v8138_v33 }
0x17d5   :  { %v10435_v10 = vpop.eup %10434 }
0x17d6   :  { %v8142_v45 = vmul.f32 %v10435_v10, %v8126_v7 }
0x17d8   :  { %v8148_v0 = vmul.f32 %v8146_v21, %v8142_v45 }
0x17da   :  { %v8154_v6 = vadd.f32 %v8152_v29, %v8148_v0 }
0x17dc   :  { %9991 = vmatmul.mubr.msk.f32.vlgmr.msra.gmra.mrb[100].mxu0 %vm39_vm0, %v8154_v6 }
0x18af   :  { %v9992_v31 = vpop.f32.mrb[100].mxu0 }
0x18b0   :  { %v8246_v21 = vadd.f32 %v9992_v31, %v8803_v60  ;;  %v8240_v47 = vpop.f32.mrb[101].mxu0 }
0x18b1   :  { %v8241_v22 = vadd.f32 %v8803_v60, %v8240_v47 }
0x18b2   :  { %v8252_v34 = vmul.f32 0.044715, %v8246_v21  ;;  %v8250_v24 = vmul.f32 0.5, %v8246_v21 }
0x18b3   :  { %v8251_v29 = vmul.f32 0.044715, %v8241_v22  ;;  %v8249_v39 = vmul.f32 0.5, %v8241_v22 }
0x18b4   :  { %v8254_v46 = vmul.f32 %v8252_v34, %v8246_v21 }
0x18b5   :  { %v8253_v15 = vmul.f32 %v8251_v29, %v8241_v22 }
0x18b6   :  { %v8256_v28 = vmul.f32 %v8254_v46, %v8246_v21 }
0x18b7   :  { %v8255_v8 = vmul.f32 %v8253_v15, %v8241_v22 }
0x18b8   :  { %v8258_v30 = vadd.f32 %v8256_v28, %v8246_v21 }
0x18b9   :  { %v8257_v3 = vadd.f32 %v8255_v8, %v8241_v22 }
0x18ba   :  { %v8260_v62 = vmul.f32 0.7978846, %v8258_v30 }
0x18bb   :  { %v8259_v11 = vmul.f32 0.7978846, %v8257_v3 }
0x18bc   :  { %10436 = vtanh.f32 %v8260_v62 }
0x18bd   :  { %10438 = vtanh.f32 %v8259_v11 }
0x18c6   :  { %v10437_v58 = vpop.eup %10436 }
0x18c7   :  { %v10439_v52 = vpop.eup %10438  ;;  %v8264_v16 = vadd.f32 1.0, %v10437_v58 }
0x18c8   :  { %v8263_v38 = vadd.f32 1.0, %v10439_v52 }
0x18c9   :  { %v8266_v56 = vmul.f32 %v8264_v16, %v8250_v24 }
0x18ca   :  { %v8265_v63 = vmul.f32 %v8263_v38, %v8249_v39 }
0x18cc   :  { %10009 = vmatprep.mubr.msk.f32.mxu1 %vm4116_vm3, %v8265_v63 }
0x18cd   :  { %10010 = vmatmul.mubr.msk.f32.vlgmr.msra.gmra.mrb[96].mxu1 %vm4116_vm3, %v8266_v56 }
0x19a0   :  { %v10011_v20 = vpop.f32.mrb[96].mxu1 }
0x19a1   :  { %v8358_v57 = vadd.f32 %v10011_v20, %v8279_v59  ;;  %v8352_v55 = vpop.f32.mrb[97].mxu1 }
0x19a2   :  { %v8353_v32 = vadd.f32 %v8352_v55, %v8279_v59 }
0x19a3   :  { %v8362_v61 = vadd.f32 %v8358_v57, %v8154_v6  ;;  %v12075_v6 = vsub.s32 4, %v10578_v25 }
0x19a4   :  { %v8361_v9 = vadd.f32 %v8353_v32, %v11969_v51 }
0x19a5   :  { %v8366_v37 = vsel %vm39_vm0, %v8362_v61, 0.0  ;;  %v8392_v43 = vrot.slane %v11924_v27, %v12075_v6 }
0x19a6   :  { %8367 = vadd.xlane.f32.xlu0 %v8366_v37  ;;  %v8363_v48 = vsel %vm39_vm0, %v8361_v9, 0.0 }
0x19a7   :  { %8364 = vadd.xlane.f32.xlu1 %v8363_v48 }
0x1a33   :  { %v8368_v7 = vpop.xlane.xlu0 %8367 }
0x1a34   :  { %v8370_v26 = vmul.f32 0.03125, %v8368_v7  ;;  %v8365_v23 = vpop.xlane.xlu1 %8364 }
0x1a35   :  { %v8369_v35 = vmul.f32 0.03125, %v8365_v23 }
0x1a36   :  { %v8372_v17 = vsub.f32 %v8362_v61, %v8370_v26 }
0x1a37   :  { %v8371_v4 = vsub.f32 %v8361_v9, %v8369_v35 }
0x1a38   :  { %v8374_v53 = vmul.f32 %v8372_v17, %v8372_v17 }
0x1a39   :  { %v8373_v2 = vmul.f32 %v8371_v4, %v8371_v4 }
0x1a3a   :  { %v8378_v19 = vsel %vm39_vm0, %v8374_v53, 0.0 }
0x1a3b   :  { %8379 = vadd.xlane.f32.xlu0 %v8378_v19  ;;  %v8375_v12 = vsel %vm39_vm0, %v8373_v2, 0.0 }
0x1a3c   :  { %8376 = vadd.xlane.f32.xlu1 %v8375_v12 }
0x1ac8   :  { %v8380_v51 = vpop.xlane.xlu0 %8379 }
0x1ac9   :  { %v8382_v18 = vmul.f32 0.03125, %v8380_v51  ;;  %v8377_v33 = vpop.xlane.xlu1 %8376 }
0x1aca   :  { %v8381_v10 = vmul.f32 0.03125, %v8377_v33 }
0x1acb   :  { %v8384_v45 = vadd.f32 1e-12, %v8382_v18 }
0x1acc   :  { %v8383_v0 = vadd.f32 1e-12, %v8381_v10 }
0x1acd   :  { %10440 = vrsqrt.f32 %v8384_v45 }
0x1ace   :  { %10442 = vrsqrt.f32 %v8383_v0 }
0x1ad7   :  { %v10441_v42 = vpop.eup %10440 }
0x1ad8   :  { %v10443_v40 = vpop.eup %10442  ;;  %v8388_v44 = vmul.f32 %v10441_v42, %v8372_v17 }
0x1ad9   :  { %v8387_v5 = vmul.f32 %v10443_v40, %v8371_v4 }
0x1ada   :  { %v8394_v36 = vmul.f32 %v8392_v43, %v8388_v44 }
0x1adb   :  { %v8393_v41 = vmul.f32 %v8392_v43, %v8387_v5 }
0x1adc   :  { %v8400_v49 = vadd.f32 %v8398_v1, %v8394_v36 }
0x1add   :  { %v8399_v54 = vadd.f32 %v8398_v1, %v8393_v41 }
0x1ade   :  { %v8402_v50 = vrot.slane %v8400_v49, 7 }
0x1ae0   :  { %v8405_v60 = vsel %vm8404_vm4, %v8399_v54, %v8402_v50 }
0x1ae1   :  { %8407 = vst.msk [vmem:[#allocation2] sm:$0x3] %vm8406_vm5, %v8405_v60 }
0x1ae2   :  { %10455 = shalt.err (!%p10452_p4)
}
0x1ae3   :  { %s10456_s27 = scalar_lea.hbm %s12065_s10, 32 }
0x1ae4   :  { %p10457_p5 = scmp.ne.s32.totalorder %s12065_s10, %s10456_s27  ;;  %p10460_p6 = scmp.lt.u32.totalorder %s10456_s27, %s12065_s10 }
0x1ae6   :  { %p10462_p7 = pnand %p10460_p6, %p10457_p5 }
0x1ae8   :  { %10465 = shalt.err (!%p10462_p7)
}
0x1ae9   :  { %8417 = dma.vmem_to_hbm [thread:$0]  %s8415_s9, 32, %s12065_s10, [#allocation3]  }
0x1aea   :  { %10466 = dma.done.wait [#allocation3], 32  }
0x1aeb   :  { %10467 = vsyncadd [#allocation3], 4294967264 }
0x1aec   :  { %8421 = vsyncpa [#allocation3], 1 }

</bundles_post_ra>
